<compile_context>
chip_gen: v7x
topology: tpu7x:2x2x1
jax: 0.10.0
libtpu: 0.0.40
codegen_flags: <defaults>
</compile_context>

<pallas_src>
import functools

import jax
import jax.numpy as jnp
from jax.experimental import pallas as pl
from jax.experimental.pallas import tpu as pltpu

D_IN = 1024       # feature dim (fixed by the module)
D_HID = 1024      # hidden dim (fixed by the module)
N_CLASSES = 2     # module asserts n_classes == 2
C_PAD = 128       # pad class dim to a full lane width for a dense vst
DEFAULT_TM = 512  # row tile: multiple of 256 (MXU height), ~11 MiB live VMEM


def mil_mlp_kernel(h_ref, w1_ref, b1_ref, w2_ref, b2_ref, logits_ref):
    # h_ref: (TM, D_IN) f32/bf16, w1_ref: (D_IN, D_HID) bf16, b1_ref: (1, D_HID) f32
    # w2_ref: (D_HID, C_PAD) f32, b2_ref: (1, C_PAD) f32, logits_ref: (TM, C_PAD) f32
    x = h_ref[...]
    if x.dtype != jnp.bfloat16:               # trace-time branch; no-op for bf16 h
        x = x.astype(jnp.bfloat16)            # bf16 MXU operand
    z = jnp.dot(x, w1_ref[...], preferred_element_type=jnp.float32)
    z = jnp.maximum(z + b1_ref[...], 0.0)     # f32 bias add + ReLU (VPU)
    # Second matmul in f32 (only ~12% of the MXU work) to keep the argmax /
    # top-k instance selection numerically close to the f32 reference.
    logits_ref[...] = (
        jnp.dot(z, w2_ref[...], preferred_element_type=jnp.float32) + b2_ref[...]
    )


def _pick_row_tile(n, tm):
    """Static (trace-time) row-tile choice.

    - tiny bags: one full-bag block (block == full dim is always legal),
    - mid bags (256 < N <= tm): split into two steps so a 2-TC chip (v7x) can
      put one step on each TensorCore,
    - large bags: the full tm tile; the last partial block relies on Pallas
      edge-block handling (each output row depends only on its own input row,
      and out-of-range rows of the last block are never written back).
    """
    if n <= 256:
        return n
    if n <= tm:
        half = -(-n // 2)
        return min(tm, ((half + 7) // 8) * 8)   # multiple of 8 sublanes
    return tm


def mlp_logits(h, prepared_params, *, tm=DEFAULT_TM):
    """Compute classifier logits [N, 2] with the Pallas kernel."""
    w1_bf, b1_r, w2_p, b2_p = prepared_params
    N = h.shape[0]

    tm_eff = _pick_row_tile(N, tm)
    grid_m = pl.cdiv(N, tm_eff)

    out = pl.pallas_call(
        mil_mlp_kernel,
        out_shape=jax.ShapeDtypeStruct((N, C_PAD), jnp.float32),
        grid_spec=pltpu.PrefetchScalarGridSpec(
            num_scalar_prefetch=0,
            grid=(grid_m,),
            in_specs=[
                pl.BlockSpec((tm_eff, D_IN), lambda i: (i, 0)),   # h tile
                pl.BlockSpec((D_IN, D_HID), lambda i: (0, 0)),    # W1 (resident, bf16)
                pl.BlockSpec((1, D_HID), lambda i: (0, 0)),       # b1 (f32)
                pl.BlockSpec((D_HID, C_PAD), lambda i: (0, 0)),   # W2 (padded, f32)
                pl.BlockSpec((1, C_PAD), lambda i: (0, 0)),       # b2 (padded, f32)
            ],
            out_specs=pl.BlockSpec((tm_eff, C_PAD), lambda i: (i, 0)),
        ),
        compiler_params=pltpu.CompilerParams(
            # Row axis is embarrassingly parallel -> sharded across the two
            # TensorCores on v7x; no-op on single-TC v5e/v6e.
            dimension_semantics=("parallel",),
        ),
    )(h, w1_bf, b1_r, w2_p, b2_p)
    return out[:, :N_CLASSES]


@functools.partial(jax.jit, static_argnames=("top_k",))
def mil_mlp_forward(h, prepared_params, *, top_k=1):
    """Mirrors MIL_mlp.forward(h, return_features=False) (eval mode, no dropout)."""
    logits = mlp_logits(h, prepared_params)                    # (N, 2)
    # TODO(synk): the 2-class softmax / p1 column could be fused into the kernel
    # (EUP slot is idle) to avoid re-reading the logits slab; low priority.
    y_probs = jax.nn.softmax(logits, axis=1)                   # (N, 2)
    # torch.topk(y_probs[:, 1], top_k, dim=0)[1].view(top_k)
    top_instance_idx = jax.lax.top_k(y_probs[:, 1], top_k)[1]  # (top_k,)
    top_instance = jnp.take(logits, top_instance_idx, axis=0)  # (top_k, 2)
    Y_hat = jnp.argmax(top_instance, axis=1, keepdims=True)    # (top_k, 1)
    Y_prob = jax.nn.softmax(top_instance, axis=1)              # (top_k, 2)
    results_dict = {}
    # TODO(synk): return_features=True branch (index_select on hidden features)
    # is not exercised here; only the default forward path is implemented.
    return top_instance, Y_prob, Y_hat, y_probs, results_dict


def prepare_params(w1, b1, w2, b2):
    """One-time (not per-call) padding + casting of the parameters."""
    w1_bf = w1.astype(jnp.bfloat16)                                   # (1024, 1024) bf16
    b1_r = b1.reshape(1, D_HID).astype(jnp.float32)                   # (1, 1024) f32
    # W2 / b2 stay f32 (accuracy of the 2-class head; negligible MXU cost).
    w2_p = jnp.pad(w2, ((0, 0), (0, C_PAD - N_CLASSES))).astype(jnp.float32)  # (1024, 128)
    b2_p = jnp.pad(b2.reshape(1, N_CLASSES),
                   ((0, 0), (0, C_PAD - N_CLASSES))).astype(jnp.float32)      # (1, 128)
    return w1_bf, b1_r, w2_p, b2_p


def init_params(key):
    """Deterministic init matching the layer shapes of MIL_mlp.__init__."""
    k1, k2 = jax.random.split(key)
    # Xavier-normal-ish init (as initialize_weights would do), biases zero.
    std1 = (2.0 / (D_IN + D_HID)) ** 0.5
    std2 = (2.0 / (D_HID + N_CLASSES)) ** 0.5
    w1 = jax.random.normal(k1, (D_IN, D_HID), jnp.float32) * std1
    b1 = jnp.zeros((D_HID,), jnp.float32)
    w2 = jax.random.normal(k2, (D_HID, N_CLASSES), jnp.float32) * std2
    b2 = jnp.zeros((N_CLASSES,), jnp.float32)
    return w1, b1, w2, b2


if __name__ == "__main__":
    key = jax.random.PRNGKey(0)
    k_param, k_data = jax.random.split(key)
    w1, b1, w2, b2 = init_params(k_param)
    prepared = prepare_params(w1, b1, w2, b2)

    # Three bag sizes: a tiny bag (single small tile), a mid-size bag (split
    # into two steps for v7x), and one exercising the full 512-row tile plus a
    # partial edge block (no jnp.pad of h).
    for N in (8, 300, 600):
        h = jax.random.normal(jax.random.fold_in(k_data, N), (N, D_IN), jnp.float32)

        top_instance, Y_prob, Y_hat, y_probs, _ = jax.block_until_ready(
            mil_mlp_forward(h, prepared, top_k=1)
        )

        # Pure-JAX f32 reference of the same math (loose tol: bf16 MXU LHS).
        ref_logits = jnp.maximum(h @ w1 + b1, 0.0) @ w2 + b2
        ref_probs = jax.nn.softmax(ref_logits, axis=1)
        assert top_instance.shape == (1, 2)
        assert Y_prob.shape == (1, 2)
        assert Y_hat.shape == (1, 1)
        assert y_probs.shape == (N, 2)
        assert jnp.allclose(ref_probs, y_probs, atol=3e-2), (
            f"N={N}: max prob err "
            f"{float(jnp.max(jnp.abs(ref_probs - y_probs))):.4f}"
        )

    print("KERNEL_OK")
</pallas_src>

<mosaic_0001>
module attributes {stable_mosaic.version = 11 : i64} {
  func.func @mil_mlp_kernel(%arg0: i32, %arg1: memref<8x1024xf32, #tpu.memory_space<vmem>>, %arg2: memref<1024x1024xbf16, #tpu.memory_space<vmem>>, %arg3: memref<1x1024xf32, #tpu.memory_space<vmem>>, %arg4: memref<1024x128xf32, #tpu.memory_space<vmem>>, %arg5: memref<1x128xf32, #tpu.memory_space<vmem>>, %arg6: memref<8x128xf32, #tpu.memory_space<vmem>>) attributes {dimension_semantics = [#tpu.dimension_semantics<parallel>], iteration_bounds = array<i64: 1>, scalar_prefetch = 0 : i64, scratch_operands = 0 : i64, tpu.core_type = #tpu.core_type<tc>, window_params = [{transform_indices = @transform_0, window_bounds = array<i64: 8, 1024>}, {pipeline_mode = #tpu.pipeline_mode<synchronous>, transform_indices = @transform_1, window_bounds = array<i64: 1024, 1024>}, {pipeline_mode = #tpu.pipeline_mode<synchronous>, transform_indices = @transform_2, window_bounds = array<i64: 1, 1024>}, {pipeline_mode = #tpu.pipeline_mode<synchronous>, transform_indices = @transform_3, window_bounds = array<i64: 1024, 128>}, {pipeline_mode = #tpu.pipeline_mode<synchronous>, transform_indices = @transform_4, window_bounds = array<i64: 1, 128>}, {transform_indices = @transform_5, window_bounds = array<i64: 8, 128>}]} {
    %c0 = arith.constant 0 : index
    %c0_0 = arith.constant 0 : index
    %0 = vector.load %arg1[%c0, %c0_0] : memref<8x1024xf32, #tpu.memory_space<vmem>>, vector<8x1024xf32>
    %1 = arith.truncf %0 : vector<8x1024xf32> to vector<8x1024xbf16>
    %c0_1 = arith.constant 0 : index
    %c0_2 = arith.constant 0 : index
    %2 = vector.load %arg2[%c0_1, %c0_2] : memref<1024x1024xbf16, #tpu.memory_space<vmem>>, vector<1024x1024xbf16>
    %cst = arith.constant dense<0.000000e+00> : vector<8x1024xf32>
    %3 = tpu.matmul %1, %2, %cst {dimension_numbers = #tpu.dot_dimension_numbers<[1], [0], [0], [1], [0, 0, 1, 1], [], []>} : vector<8x1024xbf16>, vector<1024x1024xbf16>, vector<8x1024xf32> -> vector<8x1024xf32>
    %c0_3 = arith.constant 0 : index
    %c0_4 = arith.constant 0 : index
    %4 = vector.load %arg3[%c0_3, %c0_4] : memref<1x1024xf32, #tpu.memory_space<vmem>>, vector<1x1024xf32>
    %5 = vector.broadcast %4 : vector<1x1024xf32> to vector<8x1024xf32>
    %6 = arith.addf %3, %5 : vector<8x1024xf32>
    %cst_5 = arith.constant 0.000000e+00 : f32
    %7 = vector.broadcast %cst_5 : f32 to vector<8x1024xf32>
    %8 = arith.maximumf %6, %7 : vector<8x1024xf32>
    %c0_6 = arith.constant 0 : index
    %c0_7 = arith.constant 0 : index
    %9 = vector.load %arg4[%c0_6, %c0_7] : memref<1024x128xf32, #tpu.memory_space<vmem>>, vector<1024x128xf32>
    %cst_8 = arith.constant dense<0.000000e+00> : vector<8x128xf32>
    %10 = tpu.matmul %8, %9, %cst_8 {dimension_numbers = #tpu.dot_dimension_numbers<[1], [0], [0], [1], [0, 0, 1, 1], [], []>} : vector<8x1024xf32>, vector<1024x128xf32>, vector<8x128xf32> -> vector<8x128xf32>
    %c0_9 = arith.constant 0 : index
    %c0_10 = arith.constant 0 : index
    %11 = vector.load %arg5[%c0_9, %c0_10] : memref<1x128xf32, #tpu.memory_space<vmem>>, vector<1x128xf32>
    %12 = vector.broadcast %11 : vector<1x128xf32> to vector<8x128xf32>
    %13 = arith.addf %10, %12 : vector<8x128xf32>
    %c0_11 = arith.constant 0 : index
    %c0_12 = arith.constant 0 : index
    %14 = vector.load %arg6[%c0_11, %c0_12] : memref<8x128xf32, #tpu.memory_space<vmem>>, vector<8x128xf32>
    tpu.vector_store %arg6[%c0_11, %c0_12], %13 {strides = array<i32>} : memref<8x128xf32, #tpu.memory_space<vmem>>, vector<8x128xf32>,
    return
  }
  func.func @transform_0(%arg0: i32) -> (i32, i32) {
    %c0_i32 = arith.constant 0 : i32
    %c0_i32_0 = arith.constant 0 : i32
    return %arg0, %c0_i32 : i32, i32
  }
  func.func @transform_1(%arg0: i32) -> (i32, i32) {
    %c0_i32 = arith.constant 0 : i32
    %c0_i32_0 = arith.constant 0 : i32
    %c0_i32_1 = arith.constant 0 : i32
    return %c0_i32, %c0_i32_0 : i32, i32
  }
  func.func @transform_2(%arg0: i32) -> (i32, i32) {
    %c0_i32 = arith.constant 0 : i32
    %c0_i32_0 = arith.constant 0 : i32
    %c0_i32_1 = arith.constant 0 : i32
    return %c0_i32, %c0_i32_0 : i32, i32
  }
  func.func @transform_3(%arg0: i32) -> (i32, i32) {
    %c0_i32 = arith.constant 0 : i32
    %c0_i32_0 = arith.constant 0 : i32
    %c0_i32_1 = arith.constant 0 : i32
    return %c0_i32, %c0_i32_0 : i32, i32
  }
  func.func @transform_4(%arg0: i32) -> (i32, i32) {
    %c0_i32 = arith.constant 0 : i32
    %c0_i32_0 = arith.constant 0 : i32
    %c0_i32_1 = arith.constant 0 : i32
    return %c0_i32, %c0_i32_0 : i32, i32
  }
  func.func @transform_5(%arg0: i32) -> (i32, i32) {
    %c0_i32 = arith.constant 0 : i32
    %c0_i32_0 = arith.constant 0 : i32
    return %arg0, %c0_i32 : i32, i32
  }
}

</mosaic_0001>

<bundles_post_ra>
// kernel: mil_mlp_forward.1
= control target key start
LH: loop header
LB: loop body
LE: loop exit
PB: predicated region body
PF: predicated region fallthrough
CT: control target
= control target key end

     0   :  { %10 = vsyncpa [#allocation3], 0  ;;  %s5443_s0 = inlined_call_operand.hbm [shape: f32[8,1024], index: 0, kind: input, shape index: {}]   ;;  %s5444_s1 = inlined_call_operand.hbm [shape: bf16[1024,1024], index: 1, kind: input, shape index: {}]   ;;  %s5445_s2 = inlined_call_operand.hbm [shape: f32[1,1024], index: 2, kind: input, shape index: {}]   ;;  %s5446_s3 = inlined_call_operand.hbm [shape: f32[1024,128], index: 3, kind: input, shape index: {}]   ;;  %s5447_s4 = inlined_call_operand.hbm [shape: f32[1,128], index: 4, kind: input, shape index: {}]   ;;  %s5448_s5 = inlined_call_operand.vmem [shape: f32[8,128], index: 5, kind: output, shape index: {}]  }
   0x1   :  { %11 = vsyncpa [#allocation5], 0 }
   0x2   :  { %12 = vsyncpa [#allocation8], 0  ;;  %s5261_s18 = smov [#allocation4]   ;;  %s5145_s22 = scalar_lea.hbm %s5444_s1, 65536 }
   0x3   :  { %s28_s19 = sshll.u32 %s5261_s18, 4  ;;  %p5146_p0 = scmp.ne.s32.totalorder %s5444_s1, %s5145_s22  ;;  %s29_s19 = int_to_ptr.vmem [resolvable:$true] %s28_s19 }
   0x4   :  { %p5149_p1 = scmp.lt.u32.totalorder %s5145_s22, %s5444_s1 }
   0x6   :  { %p5151_p2 = pnand %p5149_p1, %p5146_p0 }
   0x8   :  { %5154 = shalt.err (!%p5151_p2)
}
   0x9   :  { %s5155_s27 = scalar_lea.vmem %s29_s19, 65536  ;;  %p5160_p4 = scmp.lt.s32.totalorder %s29_s19, %s29_s19 }
   0xa   :  { %p5156_p3 = scmp.ne.s32.totalorder %s29_s19, %s5155_s27  ;;  %p5161_p5 = scmp.lt.s32.totalorder %s5155_s27, %s5155_s27 }
   0xc   :  { %p5162_p6 = por %p5161_p5, %p5160_p4 }
   0xe   :  { %p5163_p7 = pnand %p5162_p6, %p5156_p3 }
  0x10   :  { %5166 = shalt.err (!%p5163_p7)
}
  0x11   :  { %s5262_s28 = smov 512   ;;  %s5263_s29 = smov 32  }
  0x12   :  { %34 = dma.hbm_to_vmem [thread:$0]  %s5444_s1, 65536, %s29_s19, [#allocation5], %s5262_s28, %s5262_s28, %s5263_s29  }
  0x13   :  { %s5264_s7 = smov [#allocation7]   ;;  %s5167_s11 = scalar_lea.hbm %s5446_s3, 16384 }
  0x14   :  { %s50_s8 = sshll.u32 %s5264_s7, 4  ;;  %p5168_p8 = scmp.ne.s32.totalorder %s5446_s3, %s5167_s11  ;;  %s51_s8 = int_to_ptr.vmem [resolvable:$true] %s50_s8 }
  0x15   :  { %p5171_p9 = scmp.lt.u32.totalorder %s5167_s11, %s5446_s3 }
  0x17   :  { %p5173_p10 = pnand %p5171_p9, %p5168_p8 }
  0x19   :  { %5176 = shalt.err (!%p5173_p10)
}
  0x1a   :  { %s5177_s16 = scalar_lea.vmem %s51_s8, 16384  ;;  %p5182_p12 = scmp.lt.s32.totalorder %s51_s8, %s51_s8 }
  0x1b   :  { %p5178_p11 = scmp.ne.s32.totalorder %s51_s8, %s5177_s16  ;;  %p5183_p13 = scmp.lt.s32.totalorder %s5177_s16, %s5177_s16 }
  0x1d   :  { %p5184_p0 = por %p5183_p13, %p5182_p12 }
  0x1f   :  { %p5185_p1 = pnand %p5184_p0, %p5178_p11 }
  0x21   :  { %5188 = shalt.err (!%p5185_p1)
}
  0x22   :  { %s5265_s1 = smov 128   ;;  %s5266_s17 = smov 8  }
  0x23   :  { %56 = dma.hbm_to_vmem [thread:$0]  %s5446_s3, 16384, %s51_s8, [#allocation8], %s5265_s1, %s5265_s1, %s5266_s17  }
  0x24   :  { %s5267_s20 = smov [#allocation2]   ;;  %s5268_s22 = smov [#allocation6]  }
  0x25   :  { %s19_s21 = sshll.u32 %s5267_s20, 4  ;;  %s41_s23 = sshll.u32 %s5268_s22, 4  ;;  %s20_s21 = int_to_ptr.vmem [resolvable:$true] %s19_s21  ;;  %s42_s23 = int_to_ptr.vmem [resolvable:$true] %s41_s23 }
  0x26   :  { %s5189_s26 = scalar_lea.hbm %s5443_s0, 1024 }
  0x27   :  { %p5190_p2 = scmp.ne.s32.totalorder %s5443_s0, %s5189_s26  ;;  %p5193_p3 = scmp.lt.u32.totalorder %s5189_s26, %s5443_s0 }
  0x29   :  { %p5195_p4 = pnand %p5193_p3, %p5190_p2 }
  0x2b   :  { %5198 = shalt.err (!%p5195_p4)
}
  0x2c   :  { %s5199_s3 = scalar_lea.vmem %s20_s21, 1024  ;;  %p5204_p6 = scmp.lt.s32.totalorder %s20_s21, %s20_s21 }
  0x2d   :  { %p5200_p5 = scmp.ne.s32.totalorder %s20_s21, %s5199_s3  ;;  %p5205_p7 = scmp.lt.s32.totalorder %s5199_s3, %s5199_s3 }
  0x2f   :  { %p5206_p8 = por %p5205_p7, %p5204_p6 }
  0x31   :  { %p5207_p9 = pnand %p5206_p8, %p5200_p5 }
  0x33   :  { %5210 = shalt.err (!%p5207_p9)
}
  0x34   :  { %22 = dma.hbm_to_vmem [thread:$0]  %s5443_s0, 1024, %s20_s21, [#allocation3]  }
  0x35   :  { %s5211_s10 = scalar_lea.hbm %s5445_s2, 128 }
  0x36   :  { %p5212_p10 = scmp.ne.s32.totalorder %s5445_s2, %s5211_s10  ;;  %p5215_p11 = scmp.lt.u32.totalorder %s5211_s10, %s5445_s2 }
  0x38   :  { %p5217_p12 = pnand %p5215_p11, %p5212_p10 }
  0x3a   :  { %5220 = shalt.err (!%p5217_p12)
}
  0x3b   :  { %s5221_s15 = scalar_lea.vmem %s42_s23, 128  ;;  %p5226_p0 = scmp.lt.s32.totalorder %s42_s23, %s42_s23 }
  0x3c   :  { %p5222_p13 = scmp.ne.s32.totalorder %s42_s23, %s5221_s15  ;;  %p5227_p1 = scmp.lt.s32.totalorder %s5221_s15, %s5221_s15 }
  0x3e   :  { %p5228_p2 = por %p5227_p1, %p5226_p0 }
  0x40   :  { %p5229_p3 = pnand %p5228_p2, %p5222_p13 }
  0x42   :  { %5232 = shalt.err (!%p5229_p3)
}
  0x43   :  { %44 = dma.hbm_to_vmem [thread:$0]  %s5445_s2, 128, %s42_s23, [#allocation5]  }
  0x44   :  { %s5269_s1 = smov [#allocation9]   ;;  %s5233_s20 = scalar_lea.hbm %s5447_s4, 16 }
  0x45   :  { %s63_s17 = sshll.u32 %s5269_s1, 4  ;;  %p5234_p4 = scmp.ne.s32.totalorder %s5447_s4, %s5233_s20  ;;  %s64_s17 = int_to_ptr.vmem [resolvable:$true] %s63_s17 }
  0x46   :  { %p5237_p5 = scmp.lt.u32.totalorder %s5233_s20, %s5447_s4 }
  0x48   :  { %p5239_p6 = pnand %p5237_p5, %p5234_p4 }
  0x4a   :  { %5242 = shalt.err (!%p5239_p6)
}
  0x4b   :  { %s5243_s26 = scalar_lea.vmem %s64_s17, 16  ;;  %s5247_s2 = scalar_lea.vmem %s64_s17, 32 }
  0x4c   :  { %p5244_p7 = scmp.ne.s32.totalorder %s64_s17, %s5243_s26  ;;  %p5248_p8 = scmp.lt.s32.totalorder %s64_s17, %s64_s17 }
  0x4d   :  { %p5249_p9 = scmp.lt.s32.totalorder %s5247_s2, %s5243_s26 }
  0x4f   :  { %p5250_p10 = por %p5249_p9, %p5248_p8 }
  0x51   :  { %p5251_p11 = pnand %p5250_p10, %p5244_p7 }
  0x53   :  { %5254 = shalt.err (!%p5251_p11)
}
  0x54   :  { %66 = dma.hbm_to_vmem [thread:$0]  %s5447_s4, 16, %s64_s17, [#allocation8]  }
  0x55   :  { %5255 = dma.done.wait [#allocation3], 1024  }
  0x56   :  { %5256 = vsyncadd [#allocation3], 4294966272 }
  0x57   :  { %5257 = dma.done.wait [#allocation5], 65664  }
  0x58   :  { %5258 = vsyncadd [#allocation5], 4294901632 }
  0x59   :  { %5259 = dma.done.wait [#allocation8], 16400  }
  0x5a   :  { %5260 = vsyncadd [#allocation8], 4294950896  ;;  %v98_v0 = vld [vmem:[#allocation4] sm:$0xff]  ;;  %v99_v2 = vld [vmem:[#allocation4 + $0x8] sm:$0xff] }
  0x5b   :  { %v102_v1 = vld [vmem:[#allocation4 + $0x20] sm:$0xff]  ;;  %v103_v4 = vld [vmem:[#allocation4 + $0x28] sm:$0xff] }
  0x5c   :  { %v4300_v3 = vcombine.high %v98_v0, %v102_v1  ;;  %v4299_v5 = vcombine.low %v98_v0, %v102_v1  ;;  %v106_v6 = vld [vmem:[#allocation4 + $0x40] sm:$0xff]  ;;  %v4302_v8 = vcombine.high %v99_v2, %v103_v4  ;;  %v4301_v9 = vcombine.low %v99_v2, %v103_v4  ;;  %v107_v11 = vld [vmem:[#allocation4 + $0x48] sm:$0xff] }
  0x5d   :  { %v110_v7 = vld [vmem:[#allocation4 + $0x60] sm:$0xff]  ;;  %v111_v12 = vld [vmem:[#allocation4 + $0x68] sm:$0xff] }
  0x5e   :  { %v4308_v10 = vcombine.high %v106_v6, %v110_v7  ;;  %v114_v13 = vld [vmem:[#allocation4 + $0x80] sm:$0xff]  ;;  %3212 = vmatprep.subr.bf16.mxu0 %v4300_v3  ;;  %v4310_v14 = vcombine.high %v107_v11, %v111_v12  ;;  %v115_v16 = vld [vmem:[#allocation4 + $0x88] sm:$0xff]  ;;  %3376 = vmatprep.subr.bf16.mxu1 %v4302_v8  ;;  %v4307_v18 = vcombine.low %v106_v6, %v110_v7 }
  0x5f   :  { %v118_v15 = vld [vmem:[#allocation4 + $0xa0] sm:$0xff]  ;;  %v119_v17 = vld [vmem:[#allocation4 + $0xa8] sm:$0xff]  ;;  %3213 = vmatpush1.bf16.msra.mxu0 %v4299_v5  ;;  %3377 = vmatpush1.bf16.msra.mxu1 %v4301_v9  ;;  %v4309_v19 = vcombine.low %v107_v11, %v111_v12 }
  0x60   :  { %3214 = vmatprep.subr.bf16.mxu0 %v4308_v10  ;;  %v4316_v20 = vcombine.high %v114_v13, %v118_v15  ;;  %3378 = vmatprep.subr.bf16.mxu1 %v4310_v14  ;;  %v4318_v21 = vcombine.high %v115_v16, %v119_v17  ;;  %v122_v22 = vld [vmem:[#allocation4 + $0xc0] sm:$0xff]  ;;  %v123_v24 = vld [vmem:[#allocation4 + $0xc8] sm:$0xff]  ;;  %v4315_v26 = vcombine.low %v114_v13, %v118_v15 }
  0x61   :  { %v126_v23 = vld [vmem:[#allocation4 + $0xe0] sm:$0xff]  ;;  %v127_v25 = vld [vmem:[#allocation4 + $0xe8] sm:$0xff]  ;;  %v4317_v27 = vcombine.low %v115_v16, %v119_v17 }
  0x62   :  { %v4324_v28 = vcombine.high %v122_v22, %v126_v23  ;;  %v4326_v29 = vcombine.high %v123_v24, %v127_v25  ;;  %v130_v30 = vld [vmem:[#allocation4 + $0x100] sm:$0xff]  ;;  %v131_v32 = vld [vmem:[#allocation4 + $0x108] sm:$0xff]  ;;  %v4323_v34 = vcombine.low %v122_v22, %v126_v23  ;;  %v4325_v35 = vcombine.low %v123_v24, %v127_v25 }
  0x63   :  { %3215 = vmatpush1.bf16.msra.mxu0 %v4307_v18  ;;  %3379 = vmatpush1.bf16.msra.mxu1 %v4309_v19  ;;  %v134_v31 = vld [vmem:[#allocation4 + $0x120] sm:$0xff]  ;;  %v135_v33 = vld [vmem:[#allocation4 + $0x128] sm:$0xff] }
  0x64   :  { %3216 = vmatprep.subr.bf16.mxu0 %v4316_v20  ;;  %3380 = vmatprep.subr.bf16.mxu1 %v4318_v21  ;;  %v4332_v36 = vcombine.high %v130_v30, %v134_v31  ;;  %v4334_v37 = vcombine.high %v131_v32, %v135_v33  ;;  %v138_v38 = vld [vmem:[#allocation4 + $0x140] sm:$0xff]  ;;  %v139_v40 = vld [vmem:[#allocation4 + $0x148] sm:$0xff]  ;;  %v4331_v42 = vcombine.low %v130_v30, %v134_v31 }
  0x65   :  { %v142_v39 = vld [vmem:[#allocation4 + $0x160] sm:$0xff]  ;;  %v143_v41 = vld [vmem:[#allocation4 + $0x168] sm:$0xff]  ;;  %v4333_v43 = vcombine.low %v131_v32, %v135_v33 }
  0x66   :  { %v4340_v44 = vcombine.high %v138_v38, %v142_v39  ;;  %v4342_v45 = vcombine.high %v139_v40, %v143_v41  ;;  %v146_v46 = vld [vmem:[#allocation4 + $0x180] sm:$0xff]  ;;  %v147_v48 = vld [vmem:[#allocation4 + $0x188] sm:$0xff]  ;;  %v4339_v50 = vcombine.low %v138_v38, %v142_v39  ;;  %v4341_v51 = vcombine.low %v139_v40, %v143_v41 }
  0x67   :  { %3217 = vmatpush1.bf16.msra.mxu0 %v4315_v26  ;;  %3381 = vmatpush1.bf16.msra.mxu1 %v4317_v27  ;;  %v150_v47 = vld [vmem:[#allocation4 + $0x1a0] sm:$0xff]  ;;  %v151_v49 = vld [vmem:[#allocation4 + $0x1a8] sm:$0xff] }
  0x68   :  { %3218 = vmatprep.subr.bf16.mxu0 %v4324_v28  ;;  %3382 = vmatprep.subr.bf16.mxu1 %v4326_v29  ;;  %v4348_v52 = vcombine.high %v146_v46, %v150_v47  ;;  %v83_v53 = vld [vmem:[#allocation2 + $0x8] sm:$0xff]  ;;  %v4350_v54 = vcombine.high %v147_v48, %v151_v49  ;;  %v154_v55 = vld [vmem:[#allocation4 + $0x1c0] sm:$0xff]  ;;  %v4347_v60 = vcombine.low %v146_v46, %v150_v47 }
  0x69   :  { %v158_v56 = vld [vmem:[#allocation4 + $0x1e0] sm:$0xff]  ;;  %v5360_v57 = vpack.c.bf16 %v83_v53, %v83_v53  ;;  %v155_v58 = vld [vmem:[#allocation4 + $0x1c8] sm:$0xff]  ;;  %v4349_v61 = vcombine.low %v147_v48, %v151_v49 }
  0x6a   :  { %v159_v59 = vld [vmem:[#allocation4 + $0x1e8] sm:$0xff]  ;;  %v4356_v62 = vcombine.high %v154_v55, %v158_v56  ;;  %v162_v0 = vld [vmem:[#allocation4 + $0x200] sm:$0xff]  ;;  %v4355_v4 = vcombine.low %v154_v55, %v158_v56 }
  0x6b   :  { %3219 = vmatpush1.bf16.msra.mxu0 %v4323_v34  ;;  %3383 = vmatpush1.bf16.msra.mxu1 %v4325_v35  ;;  %v4358_v63 = vcombine.high %v155_v58, %v159_v59  ;;  %v166_v1 = vld [vmem:[#allocation4 + $0x220] sm:$0xff]  ;;  %v163_v2 = vld [vmem:[#allocation4 + $0x208] sm:$0xff]  ;;  %v4357_v5 = vcombine.low %v155_v58, %v159_v59 }
  0x6c   :  { %3220 = vmatprep.subr.bf16.mxu0 %v4332_v36  ;;  %3384 = vmatprep.subr.bf16.mxu1 %v4334_v37  ;;  %v167_v3 = vld [vmem:[#allocation4 + $0x228] sm:$0xff]  ;;  %v4364_v6 = vcombine.high %v162_v0, %v166_v1  ;;  %v170_v8 = vld [vmem:[#allocation4 + $0x240] sm:$0xff]  ;;  %v4363_v12 = vcombine.low %v162_v0, %v166_v1 }
  0x6d   :  { %3244 = vmatprep.mubr.bf16.mxu0 %v5360_v57  ;;  %3408 = vmatprep.mubr.bf16.mxu1 %v5360_v57  ;;  %v4366_v7 = vcombine.high %v163_v2, %v167_v3  ;;  %v174_v9 = vld [vmem:[#allocation4 + $0x260] sm:$0xff]  ;;  %v171_v10 = vld [vmem:[#allocation4 + $0x248] sm:$0xff]  ;;  %v4365_v13 = vcombine.low %v163_v2, %v167_v3 }
  0x6e   :  { %v175_v11 = vld [vmem:[#allocation4 + $0x268] sm:$0xff]  ;;  %v4372_v14 = vcombine.high %v170_v8, %v174_v9  ;;  %v178_v16 = vld [vmem:[#allocation4 + $0x280] sm:$0xff]  ;;  %v4371_v20 = vcombine.low %v170_v8, %v174_v9 }
  0x6f   :  { %3221 = vmatpush1.bf16.msra.mxu0 %v4331_v42  ;;  %3385 = vmatpush1.bf16.msra.mxu1 %v4333_v43  ;;  %v4374_v15 = vcombine.high %v171_v10, %v175_v11  ;;  %v182_v17 = vld [vmem:[#allocation4 + $0x2a0] sm:$0xff]  ;;  %v179_v18 = vld [vmem:[#allocation4 + $0x288] sm:$0xff]  ;;  %v4373_v21 = vcombine.low %v171_v10, %v175_v11 }
  0x70   :  { %3222 = vmatprep.subr.bf16.mxu0 %v4340_v44  ;;  %3386 = vmatprep.subr.bf16.mxu1 %v4342_v45  ;;  %v183_v19 = vld [vmem:[#allocation4 + $0x2a8] sm:$0xff]  ;;  %v4380_v22 = vcombine.high %v178_v16, %v182_v17  ;;  %v186_v24 = vld [vmem:[#allocation4 + $0x2c0] sm:$0xff]  ;;  %v4379_v28 = vcombine.low %v178_v16, %v182_v17 }
  0x71   :  { %v4382_v23 = vcombine.high %v179_v18, %v183_v19  ;;  %v190_v25 = vld [vmem:[#allocation4 + $0x2e0] sm:$0xff]  ;;  %v187_v26 = vld [vmem:[#allocation4 + $0x2c8] sm:$0xff]  ;;  %v4381_v29 = vcombine.low %v179_v18, %v183_v19 }
  0x72   :  { %v191_v27 = vld [vmem:[#allocation4 + $0x2e8] sm:$0xff]  ;;  %v4388_v30 = vcombine.high %v186_v24, %v190_v25  ;;  %v194_v32 = vld [vmem:[#allocation4 + $0x300] sm:$0xff]  ;;  %v4387_v36 = vcombine.low %v186_v24, %v190_v25 }
  0x73   :  { %3223 = vmatpush1.bf16.msra.mxu0 %v4339_v50  ;;  %3387 = vmatpush1.bf16.msra.mxu1 %v4341_v51  ;;  %v4390_v31 = vcombine.high %v187_v26, %v191_v27  ;;  %v198_v33 = vld [vmem:[#allocation4 + $0x320] sm:$0xff]  ;;  %v195_v34 = vld [vmem:[#allocation4 + $0x308] sm:$0xff]  ;;  %v4389_v37 = vcombine.low %v187_v26, %v191_v27 }
  0x74   :  { %3224 = vmatprep.subr.bf16.mxu0 %v4348_v52  ;;  %3388 = vmatprep.subr.bf16.mxu1 %v4350_v54  ;;  %v199_v35 = vld [vmem:[#allocation4 + $0x328] sm:$0xff]  ;;  %v4396_v38 = vcombine.high %v194_v32, %v198_v33  ;;  %v202_v40 = vld [vmem:[#allocation4 + $0x340] sm:$0xff]  ;;  %v4395_v44 = vcombine.low %v194_v32, %v198_v33 }
  0x75   :  { %v4398_v39 = vcombine.high %v195_v34, %v199_v35  ;;  %v206_v41 = vld [vmem:[#allocation4 + $0x360] sm:$0xff]  ;;  %v203_v42 = vld [vmem:[#allocation4 + $0x348] sm:$0xff]  ;;  %v4397_v45 = vcombine.low %v195_v34, %v199_v35 }
  0x76   :  { %v207_v43 = vld [vmem:[#allocation4 + $0x368] sm:$0xff]  ;;  %v4404_v46 = vcombine.high %v202_v40, %v206_v41  ;;  %v210_v48 = vld [vmem:[#allocation4 + $0x380] sm:$0xff]  ;;  %v4403_v52 = vcombine.low %v202_v40, %v206_v41 }
  0x77   :  { %3225 = vmatpush1.bf16.msra.mxu0 %v4347_v60  ;;  %3389 = vmatpush1.bf16.msra.mxu1 %v4349_v61  ;;  %v4406_v47 = vcombine.high %v203_v42, %v207_v43  ;;  %v214_v49 = vld [vmem:[#allocation4 + $0x3a0] sm:$0xff]  ;;  %v211_v50 = vld [vmem:[#allocation4 + $0x388] sm:$0xff]  ;;  %v4405_v53 = vcombine.low %v203_v42, %v207_v43 }
  0x78   :  { %3226 = vmatprep.subr.bf16.mxu0 %v4356_v62  ;;  %3390 = vmatprep.subr.bf16.mxu1 %v4358_v63  ;;  %v215_v51 = vld [vmem:[#allocation4 + $0x3a8] sm:$0xff]  ;;  %v4412_v54 = vcombine.high %v210_v48, %v214_v49  ;;  %v218_v56 = vld [vmem:[#allocation4 + $0x3c0] sm:$0xff]  ;;  %v4411_v61 = vcombine.low %v210_v48, %v214_v49 }
  0x79   :  { %v4414_v55 = vcombine.high %v211_v50, %v215_v51  ;;  %v222_v58 = vld [vmem:[#allocation4 + $0x3e0] sm:$0xff]  ;;  %v219_v59 = vld [vmem:[#allocation4 + $0x3c8] sm:$0xff]  ;;  %v4413_v62 = vcombine.low %v211_v50, %v215_v51 }
  0x7a   :  { %v223_v60 = vld [vmem:[#allocation4 + $0x3e8] sm:$0xff]  ;;  %v4420_v63 = vcombine.high %v218_v56, %v222_v58  ;;  %v226_v1 = vld [vmem:[#allocation4 + $0x400] sm:$0xff] }
  0x7b   :  { %3227 = vmatpush1.bf16.msra.mxu0 %v4355_v4  ;;  %3391 = vmatpush1.bf16.msra.mxu1 %v4357_v5  ;;  %v4422_v0 = vcombine.high %v219_v59, %v223_v60  ;;  %v230_v2 = vld [vmem:[#allocation4 + $0x420] sm:$0xff]  ;;  %v227_v3 = vld [vmem:[#allocation4 + $0x408] sm:$0xff]  ;;  %v4419_v5 = vcombine.low %v218_v56, %v222_v58 }
  0x7c   :  { %3228 = vmatprep.subr.bf16.mxu0 %v4364_v6  ;;  %3392 = vmatprep.subr.bf16.mxu1 %v4366_v7  ;;  %v231_v4 = vld [vmem:[#allocation4 + $0x428] sm:$0xff]  ;;  %v82_v6 = vld [vmem:[#allocation2] sm:$0xff]  ;;  %v4421_v7 = vcombine.low %v219_v59, %v223_v60  ;;  %v4428_v8 = vcombine.high %v226_v1, %v230_v2  ;;  %v4427_v16 = vcombine.low %v226_v1, %v230_v2 }
  0x7d   :  { %v4430_v9 = vcombine.high %v227_v3, %v231_v4  ;;  %v234_v10 = vld [vmem:[#allocation4 + $0x440] sm:$0xff]  ;;  %v4429_v17 = vcombine.low %v227_v3, %v231_v4  ;;  %v247_v24 = vld [vmem:[#allocation4 + $0x4a8] sm:$0xff] }
  0x7e   :  { %v238_v11 = vld [vmem:[#allocation4 + $0x460] sm:$0xff]  ;;  %v255_v32 = vld [vmem:[#allocation4 + $0x4e8] sm:$0xff] }
  0x7f   :  { %3229 = vmatpush1.bf16.msra.mxu0 %v4363_v12  ;;  %3393 = vmatpush1.bf16.msra.mxu1 %v4365_v13  ;;  %v5364_v12 = vpack.c.bf16 %v82_v6, %v82_v6  ;;  %v235_v13 = vld [vmem:[#allocation4 + $0x448] sm:$0xff]  ;;  %v4436_v18 = vcombine.high %v234_v10, %v238_v11  ;;  %v4435_v25 = vcombine.low %v234_v10, %v238_v11  ;;  %v290_v6 = vld [vmem:[#allocation4 + $0x600] sm:$0xff] }
  0x80   :  { %3230 = vmatprep.subr.bf16.mxu0 %v4372_v14  ;;  %3394 = vmatprep.subr.bf16.mxu1 %v4374_v15  ;;  %v239_v14 = vld [vmem:[#allocation4 + $0x468] sm:$0xff]  ;;  %v85_v15 = vld [vmem:[#allocation2 + $0x18] sm:$0xff] }
  0x81   :  { %v4438_v19 = vcombine.high %v235_v13, %v239_v14  ;;  %v4437_v26 = vcombine.low %v235_v13, %v239_v14  ;;  %v263_v40 = vld [vmem:[#allocation4 + $0x528] sm:$0xff] }
  0x82   :  { %v271_v48 = vld [vmem:[#allocation4 + $0x568] sm:$0xff] }
  0x83   :  { %3231 = vmatpush1.bf16.msra.mxu0 %v4371_v20  ;;  %3395 = vmatpush1.bf16.msra.mxu1 %v4373_v21  ;;  %v242_v20 = vld [vmem:[#allocation4 + $0x480] sm:$0xff]  ;;  %v279_v56 = vld [vmem:[#allocation4 + $0x5a8] sm:$0xff] }
  0x84   :  { %3232 = vmatprep.subr.bf16.mxu0 %v4380_v22  ;;  %3396 = vmatprep.subr.bf16.mxu1 %v4382_v23  ;;  %v246_v21 = vld [vmem:[#allocation4 + $0x4a0] sm:$0xff]  ;;  %v5366_v22 = vpack.c.bf16 %v85_v15, %v85_v15  ;;  %v243_v23 = vld [vmem:[#allocation4 + $0x488] sm:$0xff] }
  0x85   :  { %v4444_v27 = vcombine.high %v242_v20, %v246_v21  ;;  %v4443_v33 = vcombine.low %v242_v20, %v246_v21  ;;  %v4445_v34 = vcombine.low %v243_v23, %v247_v24  ;;  %v287_v1 = vld [vmem:[#allocation4 + $0x5e8] sm:$0xff]  ;;  %v298_v15 = vld [vmem:[#allocation4 + $0x640] sm:$0xff] }
  0x87   :  { %3233 = vmatpush1.bf16.msra.mxu0 %v4379_v28  ;;  %3397 = vmatpush1.bf16.msra.mxu1 %v4381_v29  ;;  %v4446_v28 = vcombine.high %v243_v23, %v247_v24  ;;  %v250_v29 = vld [vmem:[#allocation4 + $0x4c0] sm:$0xff] }
  0x88   :  { %3234 = vmatprep.subr.bf16.mxu0 %v4388_v30  ;;  %3398 = vmatprep.subr.bf16.mxu1 %v4390_v31  ;;  %v254_v30 = vld [vmem:[#allocation4 + $0x4e0] sm:$0xff]  ;;  %v251_v31 = vld [vmem:[#allocation4 + $0x4c8] sm:$0xff] }
  0x89   :  { %v4452_v35 = vcombine.high %v250_v29, %v254_v30  ;;  %v4451_v41 = vcombine.low %v250_v29, %v254_v30  ;;  %v4453_v42 = vcombine.low %v251_v31, %v255_v32  ;;  %v306_v24 = vld [vmem:[#allocation4 + $0x680] sm:$0xff] }
  0x8b   :  { %3235 = vmatpush1.bf16.msra.mxu0 %v4387_v36  ;;  %3399 = vmatpush1.bf16.msra.mxu1 %v4389_v37  ;;  %v4454_v36 = vcombine.high %v251_v31, %v255_v32  ;;  %v258_v37 = vld [vmem:[#allocation4 + $0x500] sm:$0xff] }
  0x8c   :  { %3236 = vmatprep.subr.bf16.mxu0 %v4396_v38  ;;  %3400 = vmatprep.subr.bf16.mxu1 %v4398_v39  ;;  %v262_v38 = vld [vmem:[#allocation4 + $0x520] sm:$0xff]  ;;  %v259_v39 = vld [vmem:[#allocation4 + $0x508] sm:$0xff] }
  0x8d   :  { %v4460_v43 = vcombine.high %v258_v37, %v262_v38  ;;  %v4459_v49 = vcombine.low %v258_v37, %v262_v38  ;;  %v4461_v50 = vcombine.low %v259_v39, %v263_v40  ;;  %v314_v32 = vld [vmem:[#allocation4 + $0x6c0] sm:$0xff] }
  0x8f   :  { %3237 = vmatpush1.bf16.msra.mxu0 %v4395_v44  ;;  %3401 = vmatpush1.bf16.msra.mxu1 %v4397_v45  ;;  %v4462_v44 = vcombine.high %v259_v39, %v263_v40  ;;  %v266_v45 = vld [vmem:[#allocation4 + $0x540] sm:$0xff] }
  0x90   :  { %3238 = vmatprep.subr.bf16.mxu0 %v4404_v46  ;;  %3402 = vmatprep.subr.bf16.mxu1 %v4406_v47  ;;  %v270_v46 = vld [vmem:[#allocation4 + $0x560] sm:$0xff]  ;;  %v267_v47 = vld [vmem:[#allocation4 + $0x548] sm:$0xff] }
  0x91   :  { %v4468_v51 = vcombine.high %v266_v45, %v270_v46  ;;  %v4467_v58 = vcombine.low %v266_v45, %v270_v46  ;;  %v4469_v59 = vcombine.low %v267_v47, %v271_v48  ;;  %v322_v40 = vld [vmem:[#allocation4 + $0x700] sm:$0xff] }
  0x93   :  { %3239 = vmatpush1.bf16.msra.mxu0 %v4403_v52  ;;  %3403 = vmatpush1.bf16.msra.mxu1 %v4405_v53  ;;  %v4470_v52 = vcombine.high %v267_v47, %v271_v48  ;;  %v274_v53 = vld [vmem:[#allocation4 + $0x580] sm:$0xff] }
  0x94   :  { %3240 = vmatprep.subr.bf16.mxu0 %v4412_v54  ;;  %3404 = vmatprep.subr.bf16.mxu1 %v4414_v55  ;;  %v278_v54 = vld [vmem:[#allocation4 + $0x5a0] sm:$0xff]  ;;  %v275_v55 = vld [vmem:[#allocation4 + $0x588] sm:$0xff] }
  0x95   :  { %v4476_v60 = vcombine.high %v274_v53, %v278_v54  ;;  %v4475_v2 = vcombine.low %v274_v53, %v278_v54  ;;  %v4477_v3 = vcombine.low %v275_v55, %v279_v56  ;;  %v330_v48 = vld [vmem:[#allocation4 + $0x740] sm:$0xff] }
  0x97   :  { %3241 = vmatpush1.bf16.msra.mxu0 %v4411_v61  ;;  %3405 = vmatpush1.bf16.msra.mxu1 %v4413_v62  ;;  %v4478_v61 = vcombine.high %v275_v55, %v279_v56  ;;  %v282_v62 = vld [vmem:[#allocation4 + $0x5c0] sm:$0xff] }
  0x98   :  { %3242 = vmatprep.subr.bf16.mxu0 %v4420_v63  ;;  %3406 = vmatprep.subr.bf16.mxu1 %v4422_v0  ;;  %v286_v63 = vld [vmem:[#allocation4 + $0x5e0] sm:$0xff]  ;;  %v283_v0 = vld [vmem:[#allocation4 + $0x5c8] sm:$0xff] }
  0x99   :  { %v4484_v4 = vcombine.high %v282_v62, %v286_v63  ;;  %v4483_v10 = vcombine.low %v282_v62, %v286_v63  ;;  %v4485_v11 = vcombine.low %v283_v0, %v287_v1  ;;  %v338_v56 = vld [vmem:[#allocation4 + $0x780] sm:$0xff] }
  0x9b   :  { %3243 = vmatpush1.bf16.msra.mxu0 %v4419_v5  ;;  %3407 = vmatpush1.bf16.msra.mxu1 %v4421_v7  ;;  %v4486_v5 = vcombine.high %v283_v0, %v287_v1  ;;  %v294_v7 = vld [vmem:[#allocation4 + $0x620] sm:$0xff] }
  0x9c   :  { %3253 = vmatprep.subr.bf16.mxu0 %v4428_v8  ;;  %3417 = vmatprep.subr.bf16.mxu1 %v4430_v9  ;;  %v291_v8 = vld [vmem:[#allocation4 + $0x608] sm:$0xff]  ;;  %v4492_v13 = vcombine.high %v290_v6, %v294_v7  ;;  %v346_v1 = vld [vmem:[#allocation4 + $0x7c0] sm:$0xff] }
  0x9d   :  { %v295_v9 = vld [vmem:[#allocation4 + $0x628] sm:$0xff] }
  0x9e   :  { %3245 = vmatmul.mubr.bf16.vlgmr.msra.gmra.mrb[0].mxu0 %v5364_v12  ;;  %3409 = vmatmul.mubr.bf16.vlgmr.msra.gmra.mrb[0].mxu1 %v5364_v12  ;;  %v4494_v14 = vcombine.high %v291_v8, %v295_v9  ;;  %v4493_v20 = vcombine.low %v291_v8, %v295_v9  ;;  %v354_v9 = vld [vmem:[#allocation4 + $0x800] sm:$0xff] }
  0x9f   :  { %3254 = vmatpush1.bf16.msra.mxu0 %v4427_v16  ;;  %3418 = vmatpush1.bf16.msra.mxu1 %v4429_v17  ;;  %v302_v16 = vld [vmem:[#allocation4 + $0x660] sm:$0xff]  ;;  %v299_v17 = vld [vmem:[#allocation4 + $0x648] sm:$0xff] }
  0xa0   :  { %3255 = vmatprep.subr.bf16.mxu0 %v4436_v18  ;;  %3419 = vmatprep.subr.bf16.mxu1 %v4438_v19  ;;  %v303_v18 = vld [vmem:[#allocation4 + $0x668] sm:$0xff]  ;;  %v4491_v19 = vcombine.low %v290_v6, %v294_v7  ;;  %v4500_v21 = vcombine.high %v298_v15, %v302_v16 }
  0xa1   :  { %3285 = vmatprep.mubr.bf16.mxu0 %v5366_v22  ;;  %3449 = vmatprep.mubr.bf16.mxu1 %v5366_v22  ;;  %v4502_v23 = vcombine.high %v299_v17, %v303_v18  ;;  %v4501_v29 = vcombine.low %v299_v17, %v303_v18 }
  0xa3   :  { %3256 = vmatpush1.bf16.msra.mxu0 %v4435_v25  ;;  %3420 = vmatpush1.bf16.msra.mxu1 %v4437_v26  ;;  %v310_v25 = vld [vmem:[#allocation4 + $0x6a0] sm:$0xff]  ;;  %v307_v26 = vld [vmem:[#allocation4 + $0x688] sm:$0xff] }
  0xa4   :  { %3257 = vmatprep.subr.bf16.mxu0 %v4444_v27  ;;  %3421 = vmatprep.subr.bf16.mxu1 %v4446_v28  ;;  %v311_v27 = vld [vmem:[#allocation4 + $0x6a8] sm:$0xff]  ;;  %v4499_v28 = vcombine.low %v298_v15, %v302_v16  ;;  %v4508_v30 = vcombine.high %v306_v24, %v310_v25  ;;  %v84_v15 = vld [vmem:[#allocation2 + $0x10] sm:$0xff] }
  0xa5   :  { %v4510_v31 = vcombine.high %v307_v26, %v311_v27  ;;  %v4509_v37 = vcombine.low %v307_v26, %v311_v27 }
  0xa7   :  { %3258 = vmatpush1.bf16.msra.mxu0 %v4443_v33  ;;  %3422 = vmatpush1.bf16.msra.mxu1 %v4445_v34  ;;  %v318_v33 = vld [vmem:[#allocation4 + $0x6e0] sm:$0xff]  ;;  %v315_v34 = vld [vmem:[#allocation4 + $0x6c8] sm:$0xff] }
  0xa8   :  { %3259 = vmatprep.subr.bf16.mxu0 %v4452_v35  ;;  %3423 = vmatprep.subr.bf16.mxu1 %v4454_v36  ;;  %v319_v35 = vld [vmem:[#allocation4 + $0x6e8] sm:$0xff]  ;;  %v4507_v36 = vcombine.low %v306_v24, %v310_v25  ;;  %v4516_v38 = vcombine.high %v314_v32, %v318_v33 }
  0xa9   :  { %v4518_v39 = vcombine.high %v315_v34, %v319_v35  ;;  %v4517_v45 = vcombine.low %v315_v34, %v319_v35  ;;  %v367_v24 = vld [vmem:[#allocation4 + $0x868] sm:$0xff] }
  0xaa   :  { %v87_v25 = vld [vmem:[#allocation2 + $0x28] sm:$0xff] }
  0xab   :  { %3260 = vmatpush1.bf16.msra.mxu0 %v4451_v41  ;;  %3424 = vmatpush1.bf16.msra.mxu1 %v4453_v42  ;;  %v326_v41 = vld [vmem:[#allocation4 + $0x720] sm:$0xff]  ;;  %v323_v42 = vld [vmem:[#allocation4 + $0x708] sm:$0xff] }
  0xac   :  { %3261 = vmatprep.subr.bf16.mxu0 %v4460_v43  ;;  %3425 = vmatprep.subr.bf16.mxu1 %v4462_v44  ;;  %v327_v43 = vld [vmem:[#allocation4 + $0x728] sm:$0xff]  ;;  %v4515_v44 = vcombine.low %v314_v32, %v318_v33  ;;  %v4524_v46 = vcombine.high %v322_v40, %v326_v41  ;;  %v5374_v32 = vpack.c.bf16 %v87_v25, %v87_v25 }
  0xad   :  { %v4526_v47 = vcombine.high %v323_v42, %v327_v43  ;;  %v4525_v53 = vcombine.low %v323_v42, %v327_v43  ;;  %v371_v33 = vld [vmem:[#allocation4 + $0x888] sm:$0xff] }
  0xae   :  { %v375_v34 = vld [vmem:[#allocation4 + $0x8a8] sm:$0xff] }
  0xaf   :  { %3262 = vmatpush1.bf16.msra.mxu0 %v4459_v49  ;;  %3426 = vmatpush1.bf16.msra.mxu1 %v4461_v50  ;;  %v334_v49 = vld [vmem:[#allocation4 + $0x760] sm:$0xff]  ;;  %v331_v50 = vld [vmem:[#allocation4 + $0x748] sm:$0xff] }
  0xb0   :  { %3263 = vmatprep.subr.bf16.mxu0 %v4468_v51  ;;  %3427 = vmatprep.subr.bf16.mxu1 %v4470_v52  ;;  %v335_v51 = vld [vmem:[#allocation4 + $0x768] sm:$0xff]  ;;  %v4523_v52 = vcombine.low %v322_v40, %v326_v41  ;;  %v4532_v54 = vcombine.high %v330_v48, %v334_v49  ;;  %v382_v40 = vld [vmem:[#allocation4 + $0x8e0] sm:$0xff] }
  0xb1   :  { %v4534_v55 = vcombine.high %v331_v50, %v335_v51  ;;  %v4533_v62 = vcombine.low %v331_v50, %v335_v51  ;;  %v379_v41 = vld [vmem:[#allocation4 + $0x8c8] sm:$0xff] }
  0xb2   :  { %v383_v42 = vld [vmem:[#allocation4 + $0x8e8] sm:$0xff] }
  0xb3   :  { %3264 = vmatpush1.bf16.msra.mxu0 %v4467_v58  ;;  %3428 = vmatpush1.bf16.msra.mxu1 %v4469_v59  ;;  %v342_v58 = vld [vmem:[#allocation4 + $0x7a0] sm:$0xff]  ;;  %v339_v59 = vld [vmem:[#allocation4 + $0x788] sm:$0xff] }
  0xb4   :  { %3265 = vmatprep.subr.bf16.mxu0 %v4476_v60  ;;  %3429 = vmatprep.subr.bf16.mxu1 %v4478_v61  ;;  %v343_v60 = vld [vmem:[#allocation4 + $0x7a8] sm:$0xff]  ;;  %v4531_v61 = vcombine.low %v330_v48, %v334_v49  ;;  %v4540_v63 = vcombine.high %v338_v56, %v342_v58  ;;  %v390_v48 = vld [vmem:[#allocation4 + $0x920] sm:$0xff] }
  0xb5   :  { %v4542_v0 = vcombine.high %v339_v59, %v343_v60  ;;  %v4541_v6 = vcombine.low %v339_v59, %v343_v60  ;;  %v387_v49 = vld [vmem:[#allocation4 + $0x908] sm:$0xff] }
  0xb6   :  { %v391_v50 = vld [vmem:[#allocation4 + $0x928] sm:$0xff] }
  0xb7   :  { %3266 = vmatpush1.bf16.msra.mxu0 %v4475_v2  ;;  %3430 = vmatpush1.bf16.msra.mxu1 %v4477_v3  ;;  %v350_v2 = vld [vmem:[#allocation4 + $0x7e0] sm:$0xff]  ;;  %v347_v3 = vld [vmem:[#allocation4 + $0x7c8] sm:$0xff] }
  0xb8   :  { %3267 = vmatprep.subr.bf16.mxu0 %v4484_v4  ;;  %3431 = vmatprep.subr.bf16.mxu1 %v4486_v5  ;;  %v351_v4 = vld [vmem:[#allocation4 + $0x7e8] sm:$0xff]  ;;  %v4539_v5 = vcombine.low %v338_v56, %v342_v58  ;;  %v4548_v7 = vcombine.high %v346_v1, %v350_v2  ;;  %v398_v56 = vld [vmem:[#allocation4 + $0x960] sm:$0xff] }
  0xb9   :  { %v4550_v8 = vcombine.high %v347_v3, %v351_v4  ;;  %v4549_v16 = vcombine.low %v347_v3, %v351_v4  ;;  %v395_v58 = vld [vmem:[#allocation4 + $0x948] sm:$0xff] }
  0xba   :  { %v399_v59 = vld [vmem:[#allocation4 + $0x968] sm:$0xff] }
  0xbb   :  { %3268 = vmatpush1.bf16.msra.mxu0 %v4483_v10  ;;  %3432 = vmatpush1.bf16.msra.mxu1 %v4485_v11  ;;  %v358_v10 = vld [vmem:[#allocation4 + $0x820] sm:$0xff]  ;;  %v355_v11 = vld [vmem:[#allocation4 + $0x808] sm:$0xff] }
  0xbc   :  { %3269 = vmatprep.subr.bf16.mxu0 %v4492_v13  ;;  %3433 = vmatprep.subr.bf16.mxu1 %v4494_v14  ;;  %v359_v13 = vld [vmem:[#allocation4 + $0x828] sm:$0xff]  ;;  %v4547_v14 = vcombine.low %v346_v1, %v350_v2  ;;  %v4556_v17 = vcombine.high %v354_v9, %v358_v10  ;;  %v4555_v26 = vcombine.low %v354_v9, %v358_v10  ;;  %v406_v1 = vld [vmem:[#allocation4 + $0x9a0] sm:$0xff] }
  0xbd   :  { %v4558_v18 = vcombine.high %v355_v11, %v359_v13  ;;  %v4557_v27 = vcombine.low %v355_v11, %v359_v13  ;;  %v403_v2 = vld [vmem:[#allocation4 + $0x988] sm:$0xff]  ;;  %v414_v9 = vld [vmem:[#allocation4 + $0x9e0] sm:$0xff] }
  0xbe   :  { %v407_v3 = vld [vmem:[#allocation4 + $0x9a8] sm:$0xff] }
  0xbf   :  { %3270 = vmatpush1.bf16.msra.mxu0 %v4491_v19  ;;  %3434 = vmatpush1.bf16.msra.mxu1 %v4493_v20  ;;  %v362_v19 = vld [vmem:[#allocation4 + $0x840] sm:$0xff]  ;;  %v411_v10 = vld [vmem:[#allocation4 + $0x9c8] sm:$0xff] }
  0xc0   :  { %3271 = vmatprep.subr.bf16.mxu0 %v4500_v21  ;;  %3435 = vmatprep.subr.bf16.mxu1 %v4502_v23  ;;  %v366_v20 = vld [vmem:[#allocation4 + $0x860] sm:$0xff]  ;;  %v5372_v21 = vpack.c.bf16 %v84_v15, %v84_v15  ;;  %v363_v23 = vld [vmem:[#allocation4 + $0x848] sm:$0xff] }
  0xc1   :  { %v4563_v35 = vcombine.low %v362_v19, %v366_v20  ;;  %v415_v11 = vld [vmem:[#allocation4 + $0x9e8] sm:$0xff] }
  0xc3   :  { %3272 = vmatpush1.bf16.msra.mxu0 %v4499_v28  ;;  %3436 = vmatpush1.bf16.msra.mxu1 %v4501_v29  ;;  %v4564_v28 = vcombine.high %v362_v19, %v366_v20  ;;  %v4566_v29 = vcombine.high %v363_v23, %v367_v24  ;;  %v419_v19 = vld [vmem:[#allocation4 + $0xa08] sm:$0xff] }
  0xc4   :  { %3273 = vmatprep.subr.bf16.mxu0 %v4508_v30  ;;  %3437 = vmatprep.subr.bf16.mxu1 %v4510_v31  ;;  %v370_v30 = vld [vmem:[#allocation4 + $0x880] sm:$0xff]  ;;  %v423_v20 = vld [vmem:[#allocation4 + $0xa28] sm:$0xff] }
  0xc5   :  { %v374_v31 = vld [vmem:[#allocation4 + $0x8a0] sm:$0xff] }
  0xc6   :  { %v4571_v43 = vcombine.low %v370_v30, %v374_v31 }
  0xc7   :  { %3274 = vmatpush1.bf16.msra.mxu0 %v4507_v36  ;;  %3438 = vmatpush1.bf16.msra.mxu1 %v4509_v37  ;;  %v4565_v36 = vcombine.low %v363_v23, %v367_v24  ;;  %v4572_v37 = vcombine.high %v370_v30, %v374_v31  ;;  %v4613_v24 = vcombine.low %v411_v10, %v415_v11  ;;  %v431_v30 = vld [vmem:[#allocation4 + $0xa68] sm:$0xff] }
  0xc8   :  { %3275 = vmatprep.subr.bf16.mxu0 %v4516_v38  ;;  %3439 = vmatprep.subr.bf16.mxu1 %v4518_v39  ;;  %v4574_v38 = vcombine.high %v371_v33, %v375_v34  ;;  %v378_v39 = vld [vmem:[#allocation4 + $0x8c0] sm:$0xff] }
  0xc9   :  { %v4579_v51 = vcombine.low %v378_v39, %v382_v40 }
  0xcb   :  { %3276 = vmatpush1.bf16.msra.mxu0 %v4515_v44  ;;  %3440 = vmatpush1.bf16.msra.mxu1 %v4517_v45  ;;  %v4573_v44 = vcombine.low %v371_v33, %v375_v34  ;;  %v4580_v45 = vcombine.high %v378_v39, %v382_v40  ;;  %v4621_v33 = vcombine.low %v419_v19, %v423_v20  ;;  %v439_v39 = vld [vmem:[#allocation4 + $0xaa8] sm:$0xff] }
  0xcc   :  { %3277 = vmatprep.subr.bf16.mxu0 %v4524_v46  ;;  %3441 = vmatprep.subr.bf16.mxu1 %v4526_v47  ;;  %v4582_v46 = vcombine.high %v379_v41, %v383_v42  ;;  %v386_v47 = vld [vmem:[#allocation4 + $0x900] sm:$0xff] }
  0xcd   :  { %v4587_v60 = vcombine.low %v386_v47, %v390_v48 }
  0xcf   :  { %3278 = vmatpush1.bf16.msra.mxu0 %v4523_v52  ;;  %3442 = vmatpush1.bf16.msra.mxu1 %v4525_v53  ;;  %v4581_v52 = vcombine.low %v379_v41, %v383_v42  ;;  %v4588_v53 = vcombine.high %v386_v47, %v390_v48  ;;  %v447_v47 = vld [vmem:[#allocation4 + $0xae8] sm:$0xff] }
  0xd0   :  { %3279 = vmatprep.subr.bf16.mxu0 %v4532_v54  ;;  %3443 = vmatprep.subr.bf16.mxu1 %v4534_v55  ;;  %v4590_v54 = vcombine.high %v387_v49, %v391_v50  ;;  %v394_v55 = vld [vmem:[#allocation4 + $0x940] sm:$0xff] }
  0xd1   :  { %v4595_v4 = vcombine.low %v394_v55, %v398_v56 }
  0xd3   :  { %3280 = vmatpush1.bf16.msra.mxu0 %v4531_v61  ;;  %3444 = vmatpush1.bf16.msra.mxu1 %v4533_v62  ;;  %v4589_v61 = vcombine.low %v387_v49, %v391_v50  ;;  %v4596_v62 = vcombine.high %v394_v55, %v398_v56  ;;  %v455_v55 = vld [vmem:[#allocation4 + $0xb28] sm:$0xff] }
  0xd4   :  { %3281 = vmatprep.subr.bf16.mxu0 %v4540_v63  ;;  %3445 = vmatprep.subr.bf16.mxu1 %v4542_v0  ;;  %v4598_v63 = vcombine.high %v395_v58, %v399_v59  ;;  %v402_v0 = vld [vmem:[#allocation4 + $0x980] sm:$0xff] }
  0xd5   :  { %v4603_v13 = vcombine.low %v402_v0, %v406_v1 }
  0xd7   :  { %3282 = vmatpush1.bf16.msra.mxu0 %v4539_v5  ;;  %3446 = vmatpush1.bf16.msra.mxu1 %v4541_v6  ;;  %v4597_v5 = vcombine.low %v395_v58, %v399_v59  ;;  %v4604_v6 = vcombine.high %v402_v0, %v406_v1  ;;  %v463_v0 = vld [vmem:[#allocation4 + $0xb68] sm:$0xff] }
  0xd8   :  { %3283 = vmatprep.subr.bf16.mxu0 %v4548_v7  ;;  %3447 = vmatprep.subr.bf16.mxu1 %v4550_v8  ;;  %v4606_v7 = vcombine.high %v403_v2, %v407_v3  ;;  %v410_v8 = vld [vmem:[#allocation4 + $0x9c0] sm:$0xff] }
  0xd9   :  { %v4612_v15 = vcombine.high %v410_v8, %v414_v9  ;;  %v4611_v23 = vcombine.low %v410_v8, %v414_v9  ;;  %v471_v8 = vld [vmem:[#allocation4 + $0xba8] sm:$0xff] }
  0xdb   :  { %3284 = vmatpush1.bf16.msra.mxu0 %v4547_v14  ;;  %3448 = vmatpush1.bf16.msra.mxu1 %v4549_v16  ;;  %v4605_v14 = vcombine.low %v403_v2, %v407_v3  ;;  %v4614_v16 = vcombine.high %v411_v10, %v415_v11 }
  0xdc   :  { %3294 = vmatprep.subr.bf16.mxu0 %v4556_v17  ;;  %3458 = vmatprep.subr.bf16.mxu1 %v4558_v18  ;;  %v418_v17 = vld [vmem:[#allocation4 + $0xa00] sm:$0xff] }
  0xdd   :  { %v422_v18 = vld [vmem:[#allocation4 + $0xa20] sm:$0xff] }
  0xde   :  { %3286 = vmatmul.mubr.bf16.vlgmr.msra.gmra.mrb[0].mxu0 %v5372_v21  ;;  %3450 = vmatmul.mubr.bf16.vlgmr.msra.gmra.mrb[0].mxu1 %v5372_v21  ;;  %v4620_v25 = vcombine.high %v418_v17, %v422_v18  ;;  %v4619_v31 = vcombine.low %v418_v17, %v422_v18  ;;  %v479_v17 = vld [vmem:[#allocation4 + $0xbe8] sm:$0xff] }
  0xdf   :  { %3295 = vmatpush1.bf16.msra.mxu0 %v4555_v26  ;;  %3459 = vmatpush1.bf16.msra.mxu1 %v4557_v27  ;;  %v4622_v26 = vcombine.high %v419_v19, %v423_v20  ;;  %v426_v27 = vld [vmem:[#allocation4 + $0xa40] sm:$0xff] }
  0xe0   :  { %3296 = vmatprep.subr.bf16.mxu0 %v4564_v28  ;;  %3460 = vmatprep.subr.bf16.mxu1 %v4566_v29  ;;  %v430_v28 = vld [vmem:[#allocation4 + $0xa60] sm:$0xff]  ;;  %v427_v29 = vld [vmem:[#allocation4 + $0xa48] sm:$0xff] }
  0xe1   :  { %3326 = vmatprep.mubr.bf16.mxu0 %v5374_v32  ;;  %3490 = vmatprep.mubr.bf16.mxu1 %v5374_v32  ;;  %v4628_v34 = vcombine.high %v426_v27, %v430_v28  ;;  %v4627_v40 = vcombine.low %v426_v27, %v430_v28  ;;  %v4629_v41 = vcombine.low %v427_v29, %v431_v30  ;;  %v487_v27 = vld [vmem:[#allocation4 + $0xc28] sm:$0xff] }
  0xe3   :  { %3297 = vmatpush1.bf16.msra.mxu0 %v4563_v35  ;;  %3461 = vmatpush1.bf16.msra.mxu1 %v4565_v36  ;;  %v4630_v35 = vcombine.high %v427_v29, %v431_v30  ;;  %v434_v36 = vld [vmem:[#allocation4 + $0xa80] sm:$0xff] }
  0xe4   :  { %3298 = vmatprep.subr.bf16.mxu0 %v4572_v37  ;;  %3462 = vmatprep.subr.bf16.mxu1 %v4574_v38  ;;  %v438_v37 = vld [vmem:[#allocation4 + $0xaa0] sm:$0xff]  ;;  %v435_v38 = vld [vmem:[#allocation4 + $0xa88] sm:$0xff] }
  0xe5   :  { %v4636_v42 = vcombine.high %v434_v36, %v438_v37  ;;  %v4635_v48 = vcombine.low %v434_v36, %v438_v37  ;;  %v4637_v49 = vcombine.low %v435_v38, %v439_v39  ;;  %v86_v29 = vld [vmem:[#allocation2 + $0x20] sm:$0xff]  ;;  %v491_v37 = vld [vmem:[#allocation4 + $0xc48] sm:$0xff] }
  0xe6   :  { %v5380_v36 = vpack.c.bf16 %v86_v29, %v86_v29 }
  0xe7   :  { %3299 = vmatpush1.bf16.msra.mxu0 %v4571_v43  ;;  %3463 = vmatpush1.bf16.msra.mxu1 %v4573_v44  ;;  %v4638_v43 = vcombine.high %v435_v38, %v439_v39  ;;  %v442_v44 = vld [vmem:[#allocation4 + $0xac0] sm:$0xff]  ;;  %v495_v38 = vld [vmem:[#allocation4 + $0xc68] sm:$0xff]  ;;  %v89_v39 = vld [vmem:[#allocation2 + $0x38] sm:$0xff] }
  0xe8   :  { %3300 = vmatprep.subr.bf16.mxu0 %v4580_v45  ;;  %3464 = vmatprep.subr.bf16.mxu1 %v4582_v46  ;;  %v446_v45 = vld [vmem:[#allocation4 + $0xae0] sm:$0xff]  ;;  %v443_v46 = vld [vmem:[#allocation4 + $0xac8] sm:$0xff] }
  0xe9   :  { %v4644_v50 = vcombine.high %v442_v44, %v446_v45  ;;  %v4643_v56 = vcombine.low %v442_v44, %v446_v45  ;;  %v4645_v58 = vcombine.low %v443_v46, %v447_v47  ;;  %v498_v44 = vld [vmem:[#allocation4 + $0xc80] sm:$0xff] }
  0xea   :  { %v502_v45 = vld [vmem:[#allocation4 + $0xca0] sm:$0xff] }
  0xeb   :  { %3301 = vmatpush1.bf16.msra.mxu0 %v4579_v51  ;;  %3465 = vmatpush1.bf16.msra.mxu1 %v4581_v52  ;;  %v4646_v51 = vcombine.high %v443_v46, %v447_v47  ;;  %v450_v52 = vld [vmem:[#allocation4 + $0xb00] sm:$0xff]  ;;  %v5382_v46 = vpack.c.bf16 %v89_v39, %v89_v39  ;;  %v499_v47 = vld [vmem:[#allocation4 + $0xc88] sm:$0xff] }
  0xec   :  { %3302 = vmatprep.subr.bf16.mxu0 %v4588_v53  ;;  %3466 = vmatprep.subr.bf16.mxu1 %v4590_v54  ;;  %v454_v53 = vld [vmem:[#allocation4 + $0xb20] sm:$0xff]  ;;  %v451_v54 = vld [vmem:[#allocation4 + $0xb08] sm:$0xff] }
  0xed   :  { %v4652_v59 = vcombine.high %v450_v52, %v454_v53  ;;  %v4651_v1 = vcombine.low %v450_v52, %v454_v53  ;;  %v4653_v2 = vcombine.low %v451_v54, %v455_v55  ;;  %v506_v53 = vld [vmem:[#allocation4 + $0xcc0] sm:$0xff] }
  0xef   :  { %3303 = vmatpush1.bf16.msra.mxu0 %v4587_v60  ;;  %3467 = vmatpush1.bf16.msra.mxu1 %v4589_v61  ;;  %v4654_v60 = vcombine.high %v451_v54, %v455_v55  ;;  %v458_v61 = vld [vmem:[#allocation4 + $0xb40] sm:$0xff]  ;;  %v507_v55 = vld [vmem:[#allocation4 + $0xcc8] sm:$0xff] }
  0xf0   :  { %3304 = vmatprep.subr.bf16.mxu0 %v4596_v62  ;;  %3468 = vmatprep.subr.bf16.mxu1 %v4598_v63  ;;  %v462_v62 = vld [vmem:[#allocation4 + $0xb60] sm:$0xff]  ;;  %v459_v63 = vld [vmem:[#allocation4 + $0xb48] sm:$0xff] }
  0xf1   :  { %v4660_v3 = vcombine.high %v458_v61, %v462_v62  ;;  %v4659_v9 = vcombine.low %v458_v61, %v462_v62  ;;  %v4661_v10 = vcombine.low %v459_v63, %v463_v0  ;;  %v510_v54 = vld [vmem:[#allocation4 + $0xce0] sm:$0xff] }
  0xf2   :  { %v514_v62 = vld [vmem:[#allocation4 + $0xd00] sm:$0xff] }
  0xf3   :  { %3305 = vmatpush1.bf16.msra.mxu0 %v4595_v4  ;;  %3469 = vmatpush1.bf16.msra.mxu1 %v4597_v5  ;;  %v4662_v4 = vcombine.high %v459_v63, %v463_v0  ;;  %v466_v5 = vld [vmem:[#allocation4 + $0xb80] sm:$0xff]  ;;  %v515_v0 = vld [vmem:[#allocation4 + $0xd08] sm:$0xff] }
  0xf4   :  { %3306 = vmatprep.subr.bf16.mxu0 %v4604_v6  ;;  %3470 = vmatprep.subr.bf16.mxu1 %v4606_v7  ;;  %v470_v6 = vld [vmem:[#allocation4 + $0xba0] sm:$0xff]  ;;  %v467_v7 = vld [vmem:[#allocation4 + $0xb88] sm:$0xff] }
  0xf5   :  { %v4668_v11 = vcombine.high %v466_v5, %v470_v6  ;;  %v4667_v18 = vcombine.low %v466_v5, %v470_v6  ;;  %v4669_v19 = vcombine.low %v467_v7, %v471_v8  ;;  %v518_v63 = vld [vmem:[#allocation4 + $0xd20] sm:$0xff] }
  0xf6   :  { %v522_v6 = vld [vmem:[#allocation4 + $0xd40] sm:$0xff] }
  0xf7   :  { %3307 = vmatpush1.bf16.msra.mxu0 %v4603_v13  ;;  %3471 = vmatpush1.bf16.msra.mxu1 %v4605_v14  ;;  %v4670_v13 = vcombine.high %v467_v7, %v471_v8  ;;  %v474_v14 = vld [vmem:[#allocation4 + $0xbc0] sm:$0xff]  ;;  %v523_v8 = vld [vmem:[#allocation4 + $0xd48] sm:$0xff] }
  0xf8   :  { %3308 = vmatprep.subr.bf16.mxu0 %v4612_v15  ;;  %3472 = vmatprep.subr.bf16.mxu1 %v4614_v16  ;;  %v478_v15 = vld [vmem:[#allocation4 + $0xbe0] sm:$0xff]  ;;  %v475_v16 = vld [vmem:[#allocation4 + $0xbc8] sm:$0xff] }
  0xf9   :  { %v4676_v20 = vcombine.high %v474_v14, %v478_v15  ;;  %v4675_v28 = vcombine.low %v474_v14, %v478_v15  ;;  %v4677_v30 = vcombine.low %v475_v16, %v479_v17  ;;  %v526_v7 = vld [vmem:[#allocation4 + $0xd60] sm:$0xff] }
  0xfa   :  { %v530_v15 = vld [vmem:[#allocation4 + $0xd80] sm:$0xff] }
  0xfb   :  { %3309 = vmatpush1.bf16.msra.mxu0 %v4611_v23  ;;  %3473 = vmatpush1.bf16.msra.mxu1 %v4613_v24  ;;  %v4678_v23 = vcombine.high %v475_v16, %v479_v17  ;;  %v482_v24 = vld [vmem:[#allocation4 + $0xc00] sm:$0xff]  ;;  %v531_v17 = vld [vmem:[#allocation4 + $0xd88] sm:$0xff] }
  0xfc   :  { %3310 = vmatprep.subr.bf16.mxu0 %v4620_v25  ;;  %3474 = vmatprep.subr.bf16.mxu1 %v4622_v26  ;;  %v486_v25 = vld [vmem:[#allocation4 + $0xc20] sm:$0xff]  ;;  %v483_v26 = vld [vmem:[#allocation4 + $0xc08] sm:$0xff] }
  0xfd   :  { %v534_v16 = vld [vmem:[#allocation4 + $0xda0] sm:$0xff] }
  0xfe   :  { %v4731_v29 = vcombine.low %v530_v15, %v534_v16 }
  0xff   :  { %3311 = vmatpush1.bf16.msra.mxu0 %v4619_v31  ;;  %3475 = vmatpush1.bf16.msra.mxu1 %v4621_v33  ;;  %v4684_v31 = vcombine.high %v482_v24, %v486_v25  ;;  %v4686_v33 = vcombine.high %v483_v26, %v487_v27 }
 0x100   :  { %3312 = vmatprep.subr.bf16.mxu0 %v4628_v34  ;;  %3476 = vmatprep.subr.bf16.mxu1 %v4630_v35  ;;  %v490_v34 = vld [vmem:[#allocation4 + $0xc40] sm:$0xff] }
 0x101   :  { %v494_v35 = vld [vmem:[#allocation4 + $0xc60] sm:$0xff] }
 0x103   :  { %3313 = vmatpush1.bf16.msra.mxu0 %v4627_v40  ;;  %3477 = vmatpush1.bf16.msra.mxu1 %v4629_v41  ;;  %v4683_v40 = vcombine.low %v482_v24, %v486_v25  ;;  %v4685_v41 = vcombine.low %v483_v26, %v487_v27  ;;  %v538_v25 = vld [vmem:[#allocation4 + $0xdc0] sm:$0xff]  ;;  %v539_v27 = vld [vmem:[#allocation4 + $0xdc8] sm:$0xff] }
 0x104   :  { %3314 = vmatprep.subr.bf16.mxu0 %v4636_v42  ;;  %3478 = vmatprep.subr.bf16.mxu1 %v4638_v43  ;;  %v4692_v42 = vcombine.high %v490_v34, %v494_v35  ;;  %v4694_v43 = vcombine.high %v491_v37, %v495_v38  ;;  %v542_v26 = vld [vmem:[#allocation4 + $0xde0] sm:$0xff] }
 0x105   :  { %v4739_v39 = vcombine.low %v538_v25, %v542_v26 }
 0x107   :  { %3315 = vmatpush1.bf16.msra.mxu0 %v4635_v48  ;;  %3479 = vmatpush1.bf16.msra.mxu1 %v4637_v49  ;;  %v503_v48 = vld [vmem:[#allocation4 + $0xca8] sm:$0xff]  ;;  %v4691_v49 = vcombine.low %v490_v34, %v494_v35  ;;  %v546_v34 = vld [vmem:[#allocation4 + $0xe00] sm:$0xff] }
 0x108   :  { %3316 = vmatprep.subr.bf16.mxu0 %v4644_v50  ;;  %3480 = vmatprep.subr.bf16.mxu1 %v4646_v51  ;;  %v4693_v50 = vcombine.low %v491_v37, %v495_v38  ;;  %v4700_v51 = vcombine.high %v498_v44, %v502_v45  ;;  %v4702_v52 = vcombine.high %v499_v47, %v503_v48  ;;  %v550_v35 = vld [vmem:[#allocation4 + $0xe20] sm:$0xff]  ;;  %v547_v37 = vld [vmem:[#allocation4 + $0xe08] sm:$0xff] }
 0x109   :  { %v551_v38 = vld [vmem:[#allocation4 + $0xe28] sm:$0xff] }
 0x10b   :  { %3317 = vmatpush1.bf16.msra.mxu0 %v4643_v56  ;;  %3481 = vmatpush1.bf16.msra.mxu1 %v4645_v58  ;;  %v511_v56 = vld [vmem:[#allocation4 + $0xce8] sm:$0xff]  ;;  %v4699_v58 = vcombine.low %v498_v44, %v502_v45  ;;  %v558_v44 = vld [vmem:[#allocation4 + $0xe60] sm:$0xff] }
 0x10c   :  { %3318 = vmatprep.subr.bf16.mxu0 %v4652_v59  ;;  %3482 = vmatprep.subr.bf16.mxu1 %v4654_v60  ;;  %v4701_v59 = vcombine.low %v499_v47, %v503_v48  ;;  %v4708_v60 = vcombine.high %v506_v53, %v510_v54  ;;  %v4710_v61 = vcombine.high %v507_v55, %v511_v56  ;;  %v555_v45 = vld [vmem:[#allocation4 + $0xe48] sm:$0xff] }
 0x10d   :  { %v559_v47 = vld [vmem:[#allocation4 + $0xe68] sm:$0xff]  ;;  %v4747_v48 = vcombine.low %v546_v34, %v550_v35 }
 0x10f   :  { %3319 = vmatpush1.bf16.msra.mxu0 %v4651_v1  ;;  %3483 = vmatpush1.bf16.msra.mxu1 %v4653_v2  ;;  %v519_v1 = vld [vmem:[#allocation4 + $0xd28] sm:$0xff]  ;;  %v4707_v2 = vcombine.low %v506_v53, %v510_v54  ;;  %v566_v53 = vld [vmem:[#allocation4 + $0xea0] sm:$0xff] }
 0x110   :  { %3320 = vmatprep.subr.bf16.mxu0 %v4660_v3  ;;  %3484 = vmatprep.subr.bf16.mxu1 %v4662_v4  ;;  %v4709_v3 = vcombine.low %v507_v55, %v511_v56  ;;  %v4716_v4 = vcombine.high %v514_v62, %v518_v63  ;;  %v4718_v5 = vcombine.high %v515_v0, %v519_v1  ;;  %v563_v54 = vld [vmem:[#allocation4 + $0xe88] sm:$0xff] }
 0x111   :  { %v567_v55 = vld [vmem:[#allocation4 + $0xea8] sm:$0xff] }
 0x113   :  { %3321 = vmatpush1.bf16.msra.mxu0 %v4659_v9  ;;  %3485 = vmatpush1.bf16.msra.mxu1 %v4661_v10  ;;  %v527_v9 = vld [vmem:[#allocation4 + $0xd68] sm:$0xff]  ;;  %v4715_v10 = vcombine.low %v514_v62, %v518_v63  ;;  %v574_v62 = vld [vmem:[#allocation4 + $0xee0] sm:$0xff] }
 0x114   :  { %3322 = vmatprep.subr.bf16.mxu0 %v4668_v11  ;;  %3486 = vmatprep.subr.bf16.mxu1 %v4670_v13  ;;  %v4717_v11 = vcombine.low %v515_v0, %v519_v1  ;;  %v4724_v13 = vcombine.high %v522_v6, %v526_v7  ;;  %v4726_v14 = vcombine.high %v523_v8, %v527_v9  ;;  %v571_v63 = vld [vmem:[#allocation4 + $0xec8] sm:$0xff] }
 0x115   :  { %v575_v0 = vld [vmem:[#allocation4 + $0xee8] sm:$0xff] }
 0x117   :  { %3323 = vmatpush1.bf16.msra.mxu0 %v4667_v18  ;;  %3487 = vmatpush1.bf16.msra.mxu1 %v4669_v19  ;;  %v535_v18 = vld [vmem:[#allocation4 + $0xda8] sm:$0xff]  ;;  %v4723_v19 = vcombine.low %v522_v6, %v526_v7  ;;  %v582_v6 = vld [vmem:[#allocation4 + $0xf20] sm:$0xff] }
 0x118   :  { %3324 = vmatprep.subr.bf16.mxu0 %v4676_v20  ;;  %3488 = vmatprep.subr.bf16.mxu1 %v4678_v23  ;;  %v4725_v20 = vcombine.low %v523_v8, %v527_v9  ;;  %v4732_v23 = vcombine.high %v530_v15, %v534_v16  ;;  %v4734_v24 = vcombine.high %v531_v17, %v535_v18  ;;  %v579_v7 = vld [vmem:[#allocation4 + $0xf08] sm:$0xff]  ;;  %v590_v15 = vld [vmem:[#allocation4 + $0xf60] sm:$0xff] }
 0x119   :  { %v583_v8 = vld [vmem:[#allocation4 + $0xf28] sm:$0xff] }
 0x11a   :  { %v587_v16 = vld [vmem:[#allocation4 + $0xf48] sm:$0xff] }
 0x11b   :  { %3325 = vmatpush1.bf16.msra.mxu0 %v4675_v28  ;;  %3489 = vmatpush1.bf16.msra.mxu1 %v4677_v30  ;;  %v543_v28 = vld [vmem:[#allocation4 + $0xde8] sm:$0xff]  ;;  %v4733_v30 = vcombine.low %v531_v17, %v535_v18 }
 0x11c   :  { %3335 = vmatprep.subr.bf16.mxu0 %v4684_v31  ;;  %3499 = vmatprep.subr.bf16.mxu1 %v4686_v33  ;;  %v4740_v31 = vcombine.high %v538_v25, %v542_v26  ;;  %v4742_v33 = vcombine.high %v539_v27, %v543_v28  ;;  %v591_v17 = vld [vmem:[#allocation4 + $0xf68] sm:$0xff]  ;;  %v598_v25 = vld [vmem:[#allocation4 + $0xfa0] sm:$0xff] }
 0x11d   :  { %v595_v26 = vld [vmem:[#allocation4 + $0xf88] sm:$0xff] }
 0x11e   :  { %3327 = vmatmul.mubr.bf16.vlgmr.msra.gmra.mrb[0].mxu0 %v5380_v36  ;;  %3491 = vmatmul.mubr.bf16.vlgmr.msra.gmra.mrb[0].mxu1 %v5380_v36 }
 0x11f   :  { %3336 = vmatpush1.bf16.msra.mxu0 %v4683_v40  ;;  %3500 = vmatpush1.bf16.msra.mxu1 %v4685_v41  ;;  %v4741_v40 = vcombine.low %v539_v27, %v543_v28  ;;  %v4748_v41 = vcombine.high %v546_v34, %v550_v35  ;;  %v599_v27 = vld [vmem:[#allocation4 + $0xfa8] sm:$0xff]  ;;  %v606_v34 = vld [vmem:[#allocation4 + $0xfe0] sm:$0xff] }
 0x120   :  { %3337 = vmatprep.subr.bf16.mxu0 %v4692_v42  ;;  %3501 = vmatprep.subr.bf16.mxu1 %v4694_v43  ;;  %v4750_v42 = vcombine.high %v547_v37, %v551_v38  ;;  %v554_v43 = vld [vmem:[#allocation4 + $0xe40] sm:$0xff]  ;;  %v603_v35 = vld [vmem:[#allocation4 + $0xfc8] sm:$0xff] }
 0x121   :  { %3367 = vmatprep.mubr.bf16.mxu0 %v5382_v46  ;;  %3531 = vmatprep.mubr.bf16.mxu1 %v5382_v46  ;;  %v4755_v56 = vcombine.low %v554_v43, %v558_v44 }
 0x123   :  { %3338 = vmatpush1.bf16.msra.mxu0 %v4691_v49  ;;  %3502 = vmatpush1.bf16.msra.mxu1 %v4693_v50  ;;  %v4749_v49 = vcombine.low %v547_v37, %v551_v38  ;;  %v4756_v50 = vcombine.high %v554_v43, %v558_v44  ;;  %v607_v37 = vld [vmem:[#allocation4 + $0xfe8] sm:$0xff]  ;;  %v104_v43 = vld [vmem:[#allocation4 + $0x30] sm:$0xff]  ;;  %v101_v44 = vld [vmem:[#allocation4 + $0x18] sm:$0xff] }
 0x124   :  { %3339 = vmatprep.subr.bf16.mxu0 %v4700_v51  ;;  %3503 = vmatprep.subr.bf16.mxu1 %v4702_v52  ;;  %v4758_v51 = vcombine.high %v555_v45, %v559_v47  ;;  %v562_v52 = vld [vmem:[#allocation4 + $0xe80] sm:$0xff] }
 0x125   :  { %v4763_v1 = vcombine.low %v562_v52, %v566_v53 }
 0x127   :  { %3340 = vmatpush1.bf16.msra.mxu0 %v4699_v58  ;;  %3504 = vmatpush1.bf16.msra.mxu1 %v4701_v59  ;;  %v4757_v58 = vcombine.low %v555_v45, %v559_v47  ;;  %v4764_v59 = vcombine.high %v562_v52, %v566_v53  ;;  %v105_v45 = vld [vmem:[#allocation4 + $0x38] sm:$0xff]  ;;  %v108_v52 = vld [vmem:[#allocation4 + $0x50] sm:$0xff] }
 0x128   :  { %3341 = vmatprep.subr.bf16.mxu0 %v4708_v60  ;;  %3505 = vmatprep.subr.bf16.mxu1 %v4710_v61  ;;  %v4766_v60 = vcombine.high %v563_v54, %v567_v55  ;;  %v570_v61 = vld [vmem:[#allocation4 + $0xec0] sm:$0xff]  ;;  %v112_v53 = vld [vmem:[#allocation4 + $0x70] sm:$0xff] }
 0x129   :  { %v4771_v9 = vcombine.low %v570_v61, %v574_v62 }
 0x12b   :  { %3342 = vmatpush1.bf16.msra.mxu0 %v4707_v2  ;;  %3506 = vmatpush1.bf16.msra.mxu1 %v4709_v3  ;;  %v4765_v2 = vcombine.low %v563_v54, %v567_v55  ;;  %v4772_v3 = vcombine.high %v570_v61, %v574_v62  ;;  %v109_v55 = vld [vmem:[#allocation4 + $0x58] sm:$0xff]  ;;  %v116_v62 = vld [vmem:[#allocation4 + $0x90] sm:$0xff] }
 0x12c   :  { %3343 = vmatprep.subr.bf16.mxu0 %v4716_v4  ;;  %3507 = vmatprep.subr.bf16.mxu1 %v4718_v5  ;;  %v4774_v4 = vcombine.high %v571_v63, %v575_v0  ;;  %v578_v5 = vld [vmem:[#allocation4 + $0xf00] sm:$0xff] }
 0x12d   :  { %v4779_v18 = vcombine.low %v578_v5, %v582_v6 }
 0x12f   :  { %3344 = vmatpush1.bf16.msra.mxu0 %v4715_v10  ;;  %3508 = vmatpush1.bf16.msra.mxu1 %v4717_v11  ;;  %v4773_v10 = vcombine.low %v571_v63, %v575_v0  ;;  %v4780_v11 = vcombine.high %v578_v5, %v582_v6  ;;  %v120_v63 = vld [vmem:[#allocation4 + $0xb0] sm:$0xff]  ;;  %v117_v0 = vld [vmem:[#allocation4 + $0x98] sm:$0xff] }
 0x130   :  { %3345 = vmatprep.subr.bf16.mxu0 %v4724_v13  ;;  %3509 = vmatprep.subr.bf16.mxu1 %v4726_v14  ;;  %v4782_v13 = vcombine.high %v579_v7, %v583_v8  ;;  %v586_v14 = vld [vmem:[#allocation4 + $0xf40] sm:$0xff]  ;;  %v124_v6 = vld [vmem:[#allocation4 + $0xd0] sm:$0xff] }
 0x131   :  { %v4787_v28 = vcombine.low %v586_v14, %v590_v15 }
 0x133   :  { %3346 = vmatpush1.bf16.msra.mxu0 %v4723_v19  ;;  %3510 = vmatpush1.bf16.msra.mxu1 %v4725_v20  ;;  %v4781_v19 = vcombine.low %v579_v7, %v583_v8  ;;  %v4788_v20 = vcombine.high %v586_v14, %v590_v15  ;;  %v128_v7 = vld [vmem:[#allocation4 + $0xf0] sm:$0xff]  ;;  %v125_v8 = vld [vmem:[#allocation4 + $0xd8] sm:$0xff] }
 0x134   :  { %3347 = vmatprep.subr.bf16.mxu0 %v4732_v23  ;;  %3511 = vmatprep.subr.bf16.mxu1 %v4734_v24  ;;  %v4790_v23 = vcombine.high %v587_v16, %v591_v17  ;;  %v594_v24 = vld [vmem:[#allocation4 + $0xf80] sm:$0xff]  ;;  %v132_v15 = vld [vmem:[#allocation4 + $0x110] sm:$0xff] }
 0x135   :  { %v4795_v38 = vcombine.low %v594_v24, %v598_v25 }
 0x137   :  { %3348 = vmatpush1.bf16.msra.mxu0 %v4731_v29  ;;  %3512 = vmatpush1.bf16.msra.mxu1 %v4733_v30  ;;  %v4789_v29 = vcombine.low %v587_v16, %v591_v17  ;;  %v4796_v30 = vcombine.high %v594_v24, %v598_v25  ;;  %v136_v16 = vld [vmem:[#allocation4 + $0x130] sm:$0xff]  ;;  %v133_v17 = vld [vmem:[#allocation4 + $0x118] sm:$0xff] }
 0x138   :  { %3349 = vmatprep.subr.bf16.mxu0 %v4740_v31  ;;  %3513 = vmatprep.subr.bf16.mxu1 %v4742_v33  ;;  %v4798_v31 = vcombine.high %v595_v26, %v599_v27  ;;  %v602_v33 = vld [vmem:[#allocation4 + $0xfc0] sm:$0xff]  ;;  %v140_v24 = vld [vmem:[#allocation4 + $0x150] sm:$0xff] }
 0x139   :  { %v4803_v47 = vcombine.low %v602_v33, %v606_v34  ;;  %v144_v25 = vld [vmem:[#allocation4 + $0x170] sm:$0xff] }
 0x13b   :  { %3350 = vmatpush1.bf16.msra.mxu0 %v4739_v39  ;;  %3514 = vmatpush1.bf16.msra.mxu1 %v4741_v40  ;;  %v4797_v39 = vcombine.low %v595_v26, %v599_v27  ;;  %v4804_v40 = vcombine.high %v602_v33, %v606_v34  ;;  %v141_v26 = vld [vmem:[#allocation4 + $0x158] sm:$0xff]  ;;  %v148_v33 = vld [vmem:[#allocation4 + $0x190] sm:$0xff] }
 0x13c   :  { %3351 = vmatprep.subr.bf16.mxu0 %v4748_v41  ;;  %3515 = vmatprep.subr.bf16.mxu1 %v4750_v42  ;;  %v4806_v41 = vcombine.high %v603_v35, %v607_v37  ;;  %v100_v42 = vld [vmem:[#allocation4 + $0x10] sm:$0xff]  ;;  %v145_v27 = vld [vmem:[#allocation4 + $0x178] sm:$0xff] }
 0x13d   :  { %v152_v34 = vld [vmem:[#allocation4 + $0x1b0] sm:$0xff] }
 0x13f   :  { %3352 = vmatpush1.bf16.msra.mxu0 %v4747_v48  ;;  %3516 = vmatpush1.bf16.msra.mxu1 %v4749_v49  ;;  %v88_v48 = vld [vmem:[#allocation2 + $0x30] sm:$0xff]  ;;  %v4805_v49 = vcombine.low %v603_v35, %v607_v37  ;;  %v149_v35 = vld [vmem:[#allocation4 + $0x198] sm:$0xff] }
 0x140   :  { %3353 = vmatprep.subr.bf16.mxu0 %v4756_v50  ;;  %3517 = vmatprep.subr.bf16.mxu1 %v4758_v51  ;;  %v4304_v50 = vcombine.high %v100_v42, %v104_v43  ;;  %v4306_v51 = vcombine.high %v101_v44, %v105_v45  ;;  %v5388_v54 = vpack.c.bf16 %v88_v48, %v88_v48  ;;  %v153_v37 = vld [vmem:[#allocation4 + $0x1b8] sm:$0xff] }
 0x141   :  { %v4353_v48 = vcombine.low %v149_v35, %v153_v37 }
 0x143   :  { %3354 = vmatpush1.bf16.msra.mxu0 %v4755_v56  ;;  %3518 = vmatpush1.bf16.msra.mxu1 %v4757_v58  ;;  %v113_v56 = vld [vmem:[#allocation4 + $0x78] sm:$0xff]  ;;  %v4303_v58 = vcombine.low %v100_v42, %v104_v43  ;;  %v156_v42 = vld [vmem:[#allocation4 + $0x1d0] sm:$0xff] }
 0x144   :  { %3355 = vmatprep.subr.bf16.mxu0 %v4764_v59  ;;  %3519 = vmatprep.subr.bf16.mxu1 %v4766_v60  ;;  %v4305_v59 = vcombine.low %v101_v44, %v105_v45  ;;  %v4312_v60 = vcombine.high %v108_v52, %v112_v53  ;;  %v4314_v61 = vcombine.high %v109_v55, %v113_v56  ;;  %v160_v43 = vld [vmem:[#allocation4 + $0x1f0] sm:$0xff]  ;;  %v157_v44 = vld [vmem:[#allocation4 + $0x1d8] sm:$0xff] }
 0x145   :  { %v161_v45 = vld [vmem:[#allocation4 + $0x1f8] sm:$0xff] }
 0x147   :  { %3356 = vmatpush1.bf16.msra.mxu0 %v4763_v1  ;;  %3520 = vmatpush1.bf16.msra.mxu1 %v4765_v2  ;;  %v121_v1 = vld [vmem:[#allocation4 + $0xb8] sm:$0xff]  ;;  %v4311_v2 = vcombine.low %v108_v52, %v112_v53  ;;  %v168_v52 = vld [vmem:[#allocation4 + $0x230] sm:$0xff] }
 0x148   :  { %3357 = vmatprep.subr.bf16.mxu0 %v4772_v3  ;;  %3521 = vmatprep.subr.bf16.mxu1 %v4774_v4  ;;  %v4313_v3 = vcombine.low %v109_v55, %v113_v56  ;;  %v4320_v4 = vcombine.high %v116_v62, %v120_v63  ;;  %v4322_v5 = vcombine.high %v117_v0, %v121_v1  ;;  %v165_v53 = vld [vmem:[#allocation4 + $0x218] sm:$0xff] }
 0x149   :  { %v169_v55 = vld [vmem:[#allocation4 + $0x238] sm:$0xff]  ;;  %v4359_v56 = vcombine.low %v156_v42, %v160_v43 }
 0x14b   :  { %3358 = vmatpush1.bf16.msra.mxu0 %v4771_v9  ;;  %3522 = vmatpush1.bf16.msra.mxu1 %v4773_v10  ;;  %v129_v9 = vld [vmem:[#allocation4 + $0xf8] sm:$0xff]  ;;  %v4319_v10 = vcombine.low %v116_v62, %v120_v63  ;;  %v176_v62 = vld [vmem:[#allocation4 + $0x270] sm:$0xff] }
 0x14c   :  { %3359 = vmatprep.subr.bf16.mxu0 %v4780_v11  ;;  %3523 = vmatprep.subr.bf16.mxu1 %v4782_v13  ;;  %v4321_v11 = vcombine.low %v117_v0, %v121_v1  ;;  %v4328_v13 = vcombine.high %v124_v6, %v128_v7  ;;  %v4330_v14 = vcombine.high %v125_v8, %v129_v9  ;;  %v173_v63 = vld [vmem:[#allocation4 + $0x258] sm:$0xff] }
 0x14d   :  { %v177_v0 = vld [vmem:[#allocation4 + $0x278] sm:$0xff] }
 0x14f   :  { %3360 = vmatpush1.bf16.msra.mxu0 %v4779_v18  ;;  %3524 = vmatpush1.bf16.msra.mxu1 %v4781_v19  ;;  %v137_v18 = vld [vmem:[#allocation4 + $0x138] sm:$0xff]  ;;  %v4327_v19 = vcombine.low %v124_v6, %v128_v7  ;;  %v184_v6 = vld [vmem:[#allocation4 + $0x2b0] sm:$0xff] }
 0x150   :  { %3361 = vmatprep.subr.bf16.mxu0 %v4788_v20  ;;  %3525 = vmatprep.subr.bf16.mxu1 %v4790_v23  ;;  %v4329_v20 = vcombine.low %v125_v8, %v129_v9  ;;  %v4336_v23 = vcombine.high %v132_v15, %v136_v16  ;;  %v181_v7 = vld [vmem:[#allocation4 + $0x298] sm:$0xff] }
 0x151   :  { %v185_v8 = vld [vmem:[#allocation4 + $0x2b8] sm:$0xff] }
 0x153   :  { %3362 = vmatpush1.bf16.msra.mxu0 %v4787_v28  ;;  %3526 = vmatpush1.bf16.msra.mxu1 %v4789_v29  ;;  %v4335_v28 = vcombine.low %v132_v15, %v136_v16  ;;  %v4337_v29 = vcombine.low %v133_v17, %v137_v18  ;;  %v192_v15 = vld [vmem:[#allocation4 + $0x2f0] sm:$0xff]  ;;  %v189_v16 = vld [vmem:[#allocation4 + $0x2d8] sm:$0xff] }
 0x154   :  { %3363 = vmatprep.subr.bf16.mxu0 %v4796_v30  ;;  %3527 = vmatprep.subr.bf16.mxu1 %v4798_v31  ;;  %v4344_v30 = vcombine.high %v140_v24, %v144_v25  ;;  %v4346_v31 = vcombine.high %v141_v26, %v145_v27 }
 0x157   :  { %3364 = vmatpush1.bf16.msra.mxu0 %v4795_v38  ;;  %3528 = vmatpush1.bf16.msra.mxu1 %v4797_v39  ;;  %v4343_v38 = vcombine.low %v140_v24, %v144_v25  ;;  %v4345_v39 = vcombine.low %v141_v26, %v145_v27  ;;  %v200_v24 = vld [vmem:[#allocation4 + $0x330] sm:$0xff]  ;;  %v197_v25 = vld [vmem:[#allocation4 + $0x318] sm:$0xff] }
 0x158   :  { %3365 = vmatprep.subr.bf16.mxu0 %v4804_v40  ;;  %3529 = vmatprep.subr.bf16.mxu1 %v4806_v41  ;;  %v4352_v40 = vcombine.high %v148_v33, %v152_v34  ;;  %v4354_v41 = vcombine.high %v149_v35, %v153_v37  ;;  %v201_v26 = vld [vmem:[#allocation4 + $0x338] sm:$0xff] }
 0x159   :  { %v209_v35 = vld [vmem:[#allocation4 + $0x378] sm:$0xff] }
 0x15b   :  { %3366 = vmatpush1.bf16.msra.mxu0 %v4803_v47  ;;  %3530 = vmatpush1.bf16.msra.mxu1 %v4805_v49  ;;  %v4351_v47 = vcombine.low %v148_v33, %v152_v34  ;;  %v4360_v49 = vcombine.high %v156_v42, %v160_v43  ;;  %v208_v33 = vld [vmem:[#allocation4 + $0x370] sm:$0xff]  ;;  %v205_v34 = vld [vmem:[#allocation4 + $0x358] sm:$0xff] }
 0x15c   :  { %3540 = vmatprep.subr.bf16.mxu0 %v4304_v50  ;;  %3704 = vmatprep.subr.bf16.mxu1 %v4306_v51  ;;  %v4362_v50 = vcombine.high %v157_v44, %v161_v45  ;;  %v164_v51 = vld [vmem:[#allocation4 + $0x210] sm:$0xff]  ;;  %v213_v43 = vld [vmem:[#allocation4 + $0x398] sm:$0xff] }
 0x15d   :  { %v4367_v1 = vcombine.low %v164_v51, %v168_v52  ;;  %v216_v42 = vld [vmem:[#allocation4 + $0x3b0] sm:$0xff] }
 0x15e   :  { %3368 = vmatmul.mubr.bf16.vlgmr.msra.gmra.mrb[0].mxu0 %v5388_v54  ;;  %3532 = vmatmul.mubr.bf16.vlgmr.msra.gmra.mrb[0].mxu1 %v5388_v54 }
 0x15f   :  { %3541 = vmatpush1.bf16.msra.mxu0 %v4303_v58  ;;  %3705 = vmatpush1.bf16.msra.mxu1 %v4305_v59  ;;  %v4361_v58 = vcombine.low %v157_v44, %v161_v45  ;;  %v4368_v59 = vcombine.high %v164_v51, %v168_v52  ;;  %v217_v44 = vld [vmem:[#allocation4 + $0x3b8] sm:$0xff]  ;;  %v224_v51 = vld [vmem:[#allocation4 + $0x3f0] sm:$0xff] }
 0x160   :  { %3542 = vmatprep.subr.bf16.mxu0 %v4312_v60  ;;  %3706 = vmatprep.subr.bf16.mxu1 %v4314_v61  ;;  %v4370_v60 = vcombine.high %v165_v53, %v169_v55  ;;  %v172_v61 = vld [vmem:[#allocation4 + $0x250] sm:$0xff]  ;;  %v221_v52 = vld [vmem:[#allocation4 + $0x3d8] sm:$0xff] }
 0x161   :  { %3572 = vmatprep.mubr.bf16.mxu0 %v5360_v57  ;;  %3736 = vmatprep.mubr.bf16.mxu1 %v5360_v57  ;;  %v4338_v57 = vcombine.high %v133_v17, %v137_v18  ;;  %v4375_v9 = vcombine.low %v172_v61, %v176_v62  ;;  %v193_v17 = vld [vmem:[#allocation4 + $0x2f8] sm:$0xff] }
 0x163   :  { %3543 = vmatpush1.bf16.msra.mxu0 %v4311_v2  ;;  %3707 = vmatpush1.bf16.msra.mxu1 %v4313_v3  ;;  %v4369_v2 = vcombine.low %v165_v53, %v169_v55  ;;  %v4376_v3 = vcombine.high %v172_v61, %v176_v62  ;;  %v225_v53 = vld [vmem:[#allocation4 + $0x3f8] sm:$0xff]  ;;  %v232_v61 = vld [vmem:[#allocation4 + $0x430] sm:$0xff] }
 0x164   :  { %3544 = vmatprep.subr.bf16.mxu0 %v4320_v4  ;;  %3708 = vmatprep.subr.bf16.mxu1 %v4322_v5  ;;  %v4378_v4 = vcombine.high %v173_v63, %v177_v0  ;;  %v180_v5 = vld [vmem:[#allocation4 + $0x290] sm:$0xff]  ;;  %v229_v62 = vld [vmem:[#allocation4 + $0x418] sm:$0xff] }
 0x165   :  { %v4383_v18 = vcombine.low %v180_v5, %v184_v6 }
 0x167   :  { %3545 = vmatpush1.bf16.msra.mxu0 %v4319_v10  ;;  %3709 = vmatpush1.bf16.msra.mxu1 %v4321_v11  ;;  %v4377_v10 = vcombine.low %v173_v63, %v177_v0  ;;  %v4384_v11 = vcombine.high %v180_v5, %v184_v6  ;;  %v233_v63 = vld [vmem:[#allocation4 + $0x438] sm:$0xff]  ;;  %v240_v5 = vld [vmem:[#allocation4 + $0x470] sm:$0xff] }
 0x168   :  { %3546 = vmatprep.subr.bf16.mxu0 %v4328_v13  ;;  %3710 = vmatprep.subr.bf16.mxu1 %v4330_v14  ;;  %v4386_v13 = vcombine.high %v181_v7, %v185_v8  ;;  %v188_v14 = vld [vmem:[#allocation4 + $0x2d0] sm:$0xff]  ;;  %v237_v6 = vld [vmem:[#allocation4 + $0x458] sm:$0xff] }
 0x169   :  { %v4391_v27 = vcombine.low %v188_v14, %v192_v15 }
 0x16b   :  { %3547 = vmatpush1.bf16.msra.mxu0 %v4327_v19  ;;  %3711 = vmatpush1.bf16.msra.mxu1 %v4329_v20  ;;  %v4385_v19 = vcombine.low %v181_v7, %v185_v8  ;;  %v4392_v20 = vcombine.high %v188_v14, %v192_v15  ;;  %v241_v7 = vld [vmem:[#allocation4 + $0x478] sm:$0xff]  ;;  %v248_v14 = vld [vmem:[#allocation4 + $0x4b0] sm:$0xff] }
 0x16c   :  { %3548 = vmatprep.subr.bf16.mxu0 %v4336_v23  ;;  %3712 = vmatprep.subr.bf16.mxu1 %v4338_v57  ;;  %v4394_v23 = vcombine.high %v189_v16, %v193_v17  ;;  %v196_v57 = vld [vmem:[#allocation4 + $0x310] sm:$0xff]  ;;  %v245_v15 = vld [vmem:[#allocation4 + $0x498] sm:$0xff] }
 0x16d   :  { %v4399_v37 = vcombine.low %v196_v57, %v200_v24 }
 0x16f   :  { %3549 = vmatpush1.bf16.msra.mxu0 %v4335_v28  ;;  %3713 = vmatpush1.bf16.msra.mxu1 %v4337_v29  ;;  %v4393_v28 = vcombine.low %v189_v16, %v193_v17  ;;  %v4400_v29 = vcombine.high %v196_v57, %v200_v24  ;;  %v249_v16 = vld [vmem:[#allocation4 + $0x4b8] sm:$0xff]  ;;  %v256_v57 = vld [vmem:[#allocation4 + $0x4f0] sm:$0xff] }
 0x170   :  { %3550 = vmatprep.subr.bf16.mxu0 %v4344_v30  ;;  %3714 = vmatprep.subr.bf16.mxu1 %v4346_v31  ;;  %v4402_v30 = vcombine.high %v197_v25, %v201_v26  ;;  %v204_v31 = vld [vmem:[#allocation4 + $0x350] sm:$0xff]  ;;  %v253_v24 = vld [vmem:[#allocation4 + $0x4d8] sm:$0xff] }
 0x171   :  { %v4407_v45 = vcombine.low %v204_v31, %v208_v33 }
 0x173   :  { %3551 = vmatpush1.bf16.msra.mxu0 %v4343_v38  ;;  %3715 = vmatpush1.bf16.msra.mxu1 %v4345_v39  ;;  %v4401_v38 = vcombine.low %v197_v25, %v201_v26  ;;  %v4408_v39 = vcombine.high %v204_v31, %v208_v33  ;;  %v257_v25 = vld [vmem:[#allocation4 + $0x4f8] sm:$0xff] }
 0x174   :  { %3552 = vmatprep.subr.bf16.mxu0 %v4352_v40  ;;  %3716 = vmatprep.subr.bf16.mxu1 %v4354_v41  ;;  %v4410_v40 = vcombine.high %v205_v34, %v209_v35  ;;  %v212_v41 = vld [vmem:[#allocation4 + $0x390] sm:$0xff]  ;;  %v261_v31 = vld [vmem:[#allocation4 + $0x518] sm:$0xff] }
 0x175   :  { %v4415_v55 = vcombine.low %v212_v41, %v216_v42  ;;  %v265_v33 = vld [vmem:[#allocation4 + $0x538] sm:$0xff] }
 0x177   :  { %3553 = vmatpush1.bf16.msra.mxu0 %v4351_v47  ;;  %3717 = vmatpush1.bf16.msra.mxu1 %v4353_v48  ;;  %v4409_v47 = vcombine.low %v205_v34, %v209_v35  ;;  %v4416_v48 = vcombine.high %v212_v41, %v216_v42  ;;  %v4457_v35 = vcombine.low %v253_v24, %v257_v25  ;;  %v273_v41 = vld [vmem:[#allocation4 + $0x578] sm:$0xff] }
 0x178   :  { %3554 = vmatprep.subr.bf16.mxu0 %v4360_v49  ;;  %3718 = vmatprep.subr.bf16.mxu1 %v4362_v50  ;;  %v4418_v49 = vcombine.high %v213_v43, %v217_v44  ;;  %v220_v50 = vld [vmem:[#allocation4 + $0x3d0] sm:$0xff] }
 0x179   :  { %v4423_v0 = vcombine.low %v220_v50, %v224_v51 }
 0x17b   :  { %3555 = vmatpush1.bf16.msra.mxu0 %v4359_v56  ;;  %3719 = vmatpush1.bf16.msra.mxu1 %v4361_v58  ;;  %v4417_v56 = vcombine.low %v213_v43, %v217_v44  ;;  %v4424_v58 = vcombine.high %v220_v50, %v224_v51  ;;  %v4465_v43 = vcombine.low %v261_v31, %v265_v33  ;;  %v281_v50 = vld [vmem:[#allocation4 + $0x5b8] sm:$0xff] }
 0x17c   :  { %3556 = vmatprep.subr.bf16.mxu0 %v4368_v59  ;;  %3720 = vmatprep.subr.bf16.mxu1 %v4370_v60  ;;  %v4426_v59 = vcombine.high %v221_v52, %v225_v53  ;;  %v228_v60 = vld [vmem:[#allocation4 + $0x410] sm:$0xff] }
 0x17d   :  { %v4431_v8 = vcombine.low %v228_v60, %v232_v61 }
 0x17f   :  { %3557 = vmatpush1.bf16.msra.mxu0 %v4367_v1  ;;  %3721 = vmatpush1.bf16.msra.mxu1 %v4369_v2  ;;  %v4425_v1 = vcombine.low %v221_v52, %v225_v53  ;;  %v4432_v2 = vcombine.high %v228_v60, %v232_v61  ;;  %v289_v60 = vld [vmem:[#allocation4 + $0x5f8] sm:$0xff] }
 0x180   :  { %3558 = vmatprep.subr.bf16.mxu0 %v4376_v3  ;;  %3722 = vmatprep.subr.bf16.mxu1 %v4378_v4  ;;  %v4434_v3 = vcombine.high %v229_v62, %v233_v63  ;;  %v236_v4 = vld [vmem:[#allocation4 + $0x450] sm:$0xff] }
 0x181   :  { %v4439_v17 = vcombine.low %v236_v4, %v240_v5 }
 0x183   :  { %3559 = vmatpush1.bf16.msra.mxu0 %v4375_v9  ;;  %3723 = vmatpush1.bf16.msra.mxu1 %v4377_v10  ;;  %v4433_v9 = vcombine.low %v229_v62, %v233_v63  ;;  %v4440_v10 = vcombine.high %v236_v4, %v240_v5  ;;  %v297_v4 = vld [vmem:[#allocation4 + $0x638] sm:$0xff] }
 0x184   :  { %3560 = vmatprep.subr.bf16.mxu0 %v4384_v11  ;;  %3724 = vmatprep.subr.bf16.mxu1 %v4386_v13  ;;  %v4442_v11 = vcombine.high %v237_v6, %v241_v7  ;;  %v244_v13 = vld [vmem:[#allocation4 + $0x490] sm:$0xff] }
 0x185   :  { %v4447_v26 = vcombine.low %v244_v13, %v248_v14 }
 0x187   :  { %3561 = vmatpush1.bf16.msra.mxu0 %v4383_v18  ;;  %3725 = vmatpush1.bf16.msra.mxu1 %v4385_v19  ;;  %v4441_v18 = vcombine.low %v237_v6, %v241_v7  ;;  %v4448_v19 = vcombine.high %v244_v13, %v248_v14  ;;  %v305_v13 = vld [vmem:[#allocation4 + $0x678] sm:$0xff] }
 0x188   :  { %3562 = vmatprep.subr.bf16.mxu0 %v4392_v20  ;;  %3726 = vmatprep.subr.bf16.mxu1 %v4394_v23  ;;  %v4450_v20 = vcombine.high %v245_v15, %v249_v16  ;;  %v252_v23 = vld [vmem:[#allocation4 + $0x4d0] sm:$0xff] }
 0x189   :  { %v4455_v34 = vcombine.low %v252_v23, %v256_v57 }
 0x18b   :  { %3563 = vmatpush1.bf16.msra.mxu0 %v4391_v27  ;;  %3727 = vmatpush1.bf16.msra.mxu1 %v4393_v28  ;;  %v4456_v27 = vcombine.high %v252_v23, %v256_v57  ;;  %v4458_v28 = vcombine.high %v253_v24, %v257_v25  ;;  %v313_v23 = vld [vmem:[#allocation4 + $0x6b8] sm:$0xff] }
 0x18c   :  { %3564 = vmatprep.subr.bf16.mxu0 %v4400_v29  ;;  %3728 = vmatprep.subr.bf16.mxu1 %v4402_v30  ;;  %v260_v29 = vld [vmem:[#allocation4 + $0x510] sm:$0xff] }
 0x18d   :  { %v264_v30 = vld [vmem:[#allocation4 + $0x530] sm:$0xff] }
 0x18e   :  { %v4463_v42 = vcombine.low %v260_v29, %v264_v30 }
 0x18f   :  { %3565 = vmatpush1.bf16.msra.mxu0 %v4399_v37  ;;  %3729 = vmatpush1.bf16.msra.mxu1 %v4401_v38  ;;  %v4464_v37 = vcombine.high %v260_v29, %v264_v30  ;;  %v268_v38 = vld [vmem:[#allocation4 + $0x550] sm:$0xff]  ;;  %v321_v29 = vld [vmem:[#allocation4 + $0x6f8] sm:$0xff] }
 0x190   :  { %3566 = vmatprep.subr.bf16.mxu0 %v4408_v39  ;;  %3730 = vmatprep.subr.bf16.mxu1 %v4410_v40  ;;  %v272_v39 = vld [vmem:[#allocation4 + $0x570] sm:$0xff]  ;;  %v269_v40 = vld [vmem:[#allocation4 + $0x558] sm:$0xff] }
 0x191   :  { %v4472_v44 = vcombine.high %v268_v38, %v272_v39  ;;  %v4471_v51 = vcombine.low %v268_v38, %v272_v39  ;;  %v4473_v52 = vcombine.low %v269_v40, %v273_v41  ;;  %v329_v38 = vld [vmem:[#allocation4 + $0x738] sm:$0xff] }
 0x193   :  { %3567 = vmatpush1.bf16.msra.mxu0 %v4407_v45  ;;  %3731 = vmatpush1.bf16.msra.mxu1 %v4409_v47  ;;  %v4474_v45 = vcombine.high %v269_v40, %v273_v41  ;;  %v276_v47 = vld [vmem:[#allocation4 + $0x590] sm:$0xff] }
 0x194   :  { %3568 = vmatprep.subr.bf16.mxu0 %v4416_v48  ;;  %3732 = vmatprep.subr.bf16.mxu1 %v4418_v49  ;;  %v280_v48 = vld [vmem:[#allocation4 + $0x5b0] sm:$0xff]  ;;  %v277_v49 = vld [vmem:[#allocation4 + $0x598] sm:$0xff] }
 0x195   :  { %v4480_v53 = vcombine.high %v276_v47, %v280_v48  ;;  %v4479_v61 = vcombine.low %v276_v47, %v280_v48  ;;  %v4481_v62 = vcombine.low %v277_v49, %v281_v50  ;;  %v337_v47 = vld [vmem:[#allocation4 + $0x778] sm:$0xff] }
 0x197   :  { %3569 = vmatpush1.bf16.msra.mxu0 %v4415_v55  ;;  %3733 = vmatpush1.bf16.msra.mxu1 %v4417_v56  ;;  %v4482_v55 = vcombine.high %v277_v49, %v281_v50  ;;  %v284_v56 = vld [vmem:[#allocation4 + $0x5d0] sm:$0xff] }
 0x198   :  { %3570 = vmatprep.subr.bf16.mxu0 %v4424_v58  ;;  %3734 = vmatprep.subr.bf16.mxu1 %v4426_v59  ;;  %v288_v58 = vld [vmem:[#allocation4 + $0x5f0] sm:$0xff]  ;;  %v285_v59 = vld [vmem:[#allocation4 + $0x5d8] sm:$0xff] }
 0x199   :  { %v4488_v63 = vcombine.high %v284_v56, %v288_v58  ;;  %v4487_v5 = vcombine.low %v284_v56, %v288_v58  ;;  %v4489_v6 = vcombine.low %v285_v59, %v289_v60  ;;  %v345_v56 = vld [vmem:[#allocation4 + $0x7b8] sm:$0xff] }
 0x19b   :  { %3571 = vmatpush1.bf16.msra.mxu0 %v4423_v0  ;;  %3735 = vmatpush1.bf16.msra.mxu1 %v4425_v1  ;;  %v4490_v0 = vcombine.high %v285_v59, %v289_v60  ;;  %v292_v1 = vld [vmem:[#allocation4 + $0x610] sm:$0xff] }
 0x19c   :  { %3581 = vmatprep.subr.bf16.mxu0 %v4432_v2  ;;  %3745 = vmatprep.subr.bf16.mxu1 %v4434_v3  ;;  %v296_v2 = vld [vmem:[#allocation4 + $0x630] sm:$0xff]  ;;  %v293_v3 = vld [vmem:[#allocation4 + $0x618] sm:$0xff] }
 0x19d   :  { %v4496_v7 = vcombine.high %v292_v1, %v296_v2  ;;  %v4495_v14 = vcombine.low %v292_v1, %v296_v2  ;;  %v353_v1 = vld [vmem:[#allocation4 + $0x7f8] sm:$0xff] }
 0x19e   :  { %3573 = vmatmul.mubr.bf16.vlgmr.msra.gmra.mrb[4].mxu0 %v5364_v12  ;;  %3737 = vmatmul.mubr.bf16.vlgmr.msra.gmra.mrb[4].mxu1 %v5364_v12  ;;  %v4449_v12 = vcombine.low %v245_v15, %v249_v16  ;;  %v4497_v15 = vcombine.low %v293_v3, %v297_v4 }
 0x19f   :  { %3582 = vmatpush1.bf16.msra.mxu0 %v4431_v8  ;;  %3746 = vmatpush1.bf16.msra.mxu1 %v4433_v9  ;;  %v4498_v8 = vcombine.high %v293_v3, %v297_v4  ;;  %v300_v9 = vld [vmem:[#allocation4 + $0x650] sm:$0xff] }
 0x1a0   :  { %3583 = vmatprep.subr.bf16.mxu0 %v4440_v10  ;;  %3747 = vmatprep.subr.bf16.mxu1 %v4442_v11  ;;  %v304_v10 = vld [vmem:[#allocation4 + $0x670] sm:$0xff]  ;;  %v301_v11 = vld [vmem:[#allocation4 + $0x658] sm:$0xff] }
 0x1a1   :  { %3613 = vmatprep.mubr.bf16.mxu0 %v5366_v22  ;;  %3777 = vmatprep.mubr.bf16.mxu1 %v5366_v22  ;;  %v4466_v22 = vcombine.high %v261_v31, %v265_v33  ;;  %v4504_v16 = vcombine.high %v300_v9, %v304_v10  ;;  %v4503_v57 = vcombine.low %v300_v9, %v304_v10  ;;  %v361_v9 = vld [vmem:[#allocation4 + $0x838] sm:$0xff] }
 0x1a2   :  { %v4505_v24 = vcombine.low %v301_v11, %v305_v13 }
 0x1a3   :  { %3584 = vmatpush1.bf16.msra.mxu0 %v4439_v17  ;;  %3748 = vmatpush1.bf16.msra.mxu1 %v4441_v18  ;;  %v4506_v17 = vcombine.high %v301_v11, %v305_v13  ;;  %v308_v18 = vld [vmem:[#allocation4 + $0x690] sm:$0xff] }
 0x1a4   :  { %3585 = vmatprep.subr.bf16.mxu0 %v4448_v19  ;;  %3749 = vmatprep.subr.bf16.mxu1 %v4450_v20  ;;  %v312_v19 = vld [vmem:[#allocation4 + $0x6b0] sm:$0xff]  ;;  %v309_v20 = vld [vmem:[#allocation4 + $0x698] sm:$0xff] }
 0x1a5   :  { %v4512_v25 = vcombine.high %v308_v18, %v312_v19  ;;  %v4511_v30 = vcombine.low %v308_v18, %v312_v19  ;;  %v4513_v31 = vcombine.low %v309_v20, %v313_v23  ;;  %v369_v18 = vld [vmem:[#allocation4 + $0x878] sm:$0xff] }
 0x1a7   :  { %3586 = vmatpush1.bf16.msra.mxu0 %v4447_v26  ;;  %3750 = vmatpush1.bf16.msra.mxu1 %v4449_v12  ;;  %v4514_v26 = vcombine.high %v309_v20, %v313_v23  ;;  %v316_v12 = vld [vmem:[#allocation4 + $0x6d0] sm:$0xff] }
 0x1a8   :  { %3587 = vmatprep.subr.bf16.mxu0 %v4456_v27  ;;  %3751 = vmatprep.subr.bf16.mxu1 %v4458_v28  ;;  %v320_v27 = vld [vmem:[#allocation4 + $0x6f0] sm:$0xff]  ;;  %v317_v28 = vld [vmem:[#allocation4 + $0x6d8] sm:$0xff] }
 0x1a9   :  { %v4520_v33 = vcombine.high %v316_v12, %v320_v27  ;;  %v4519_v39 = vcombine.low %v316_v12, %v320_v27  ;;  %v4521_v40 = vcombine.low %v317_v28, %v321_v29  ;;  %v377_v12 = vld [vmem:[#allocation4 + $0x8b8] sm:$0xff] }
 0x1ab   :  { %3588 = vmatpush1.bf16.msra.mxu0 %v4455_v34  ;;  %3752 = vmatpush1.bf16.msra.mxu1 %v4457_v35  ;;  %v4522_v34 = vcombine.high %v317_v28, %v321_v29  ;;  %v324_v35 = vld [vmem:[#allocation4 + $0x710] sm:$0xff] }
 0x1ac   :  { %3589 = vmatprep.subr.bf16.mxu0 %v4464_v37  ;;  %3753 = vmatprep.subr.bf16.mxu1 %v4466_v22  ;;  %v328_v37 = vld [vmem:[#allocation4 + $0x730] sm:$0xff]  ;;  %v325_v22 = vld [vmem:[#allocation4 + $0x718] sm:$0xff] }
 0x1ad   :  { %v4528_v41 = vcombine.high %v324_v35, %v328_v37  ;;  %v4527_v48 = vcombine.low %v324_v35, %v328_v37  ;;  %v4529_v49 = vcombine.low %v325_v22, %v329_v38  ;;  %v385_v35 = vld [vmem:[#allocation4 + $0x8f8] sm:$0xff] }
 0x1af   :  { %3590 = vmatpush1.bf16.msra.mxu0 %v4463_v42  ;;  %3754 = vmatpush1.bf16.msra.mxu1 %v4465_v43  ;;  %v4530_v42 = vcombine.high %v325_v22, %v329_v38  ;;  %v332_v43 = vld [vmem:[#allocation4 + $0x750] sm:$0xff] }
 0x1b0   :  { %3591 = vmatprep.subr.bf16.mxu0 %v4472_v44  ;;  %3755 = vmatprep.subr.bf16.mxu1 %v4474_v45  ;;  %v336_v44 = vld [vmem:[#allocation4 + $0x770] sm:$0xff]  ;;  %v333_v45 = vld [vmem:[#allocation4 + $0x758] sm:$0xff] }
 0x1b1   :  { %v4536_v50 = vcombine.high %v332_v43, %v336_v44  ;;  %v4535_v58 = vcombine.low %v332_v43, %v336_v44  ;;  %v4537_v59 = vcombine.low %v333_v45, %v337_v47 }
 0x1b3   :  { %3592 = vmatpush1.bf16.msra.mxu0 %v4471_v51  ;;  %3756 = vmatpush1.bf16.msra.mxu1 %v4473_v52  ;;  %v4538_v51 = vcombine.high %v333_v45, %v337_v47  ;;  %v340_v52 = vld [vmem:[#allocation4 + $0x790] sm:$0xff] }
 0x1b4   :  { %3593 = vmatprep.subr.bf16.mxu0 %v4480_v53  ;;  %3757 = vmatprep.subr.bf16.mxu1 %v4482_v55  ;;  %v344_v53 = vld [vmem:[#allocation4 + $0x7b0] sm:$0xff]  ;;  %v341_v55 = vld [vmem:[#allocation4 + $0x798] sm:$0xff] }
 0x1b5   :  { %v4544_v60 = vcombine.high %v340_v52, %v344_v53  ;;  %v4543_v2 = vcombine.low %v340_v52, %v344_v53  ;;  %v4545_v3 = vcombine.low %v341_v55, %v345_v56  ;;  %v396_v47 = vld [vmem:[#allocation4 + $0x950] sm:$0xff] }
 0x1b7   :  { %3594 = vmatpush1.bf16.msra.mxu0 %v4479_v61  ;;  %3758 = vmatpush1.bf16.msra.mxu1 %v4481_v62  ;;  %v4546_v61 = vcombine.high %v341_v55, %v345_v56  ;;  %v348_v62 = vld [vmem:[#allocation4 + $0x7d0] sm:$0xff] }
 0x1b8   :  { %3595 = vmatprep.subr.bf16.mxu0 %v4488_v63  ;;  %3759 = vmatprep.subr.bf16.mxu1 %v4490_v0  ;;  %v352_v63 = vld [vmem:[#allocation4 + $0x7f0] sm:$0xff]  ;;  %v349_v0 = vld [vmem:[#allocation4 + $0x7d8] sm:$0xff] }
 0x1b9   :  { %v4552_v4 = vcombine.high %v348_v62, %v352_v63  ;;  %v4551_v10 = vcombine.low %v348_v62, %v352_v63  ;;  %v4553_v11 = vcombine.low %v349_v0, %v353_v1  ;;  %v404_v56 = vld [vmem:[#allocation4 + $0x990] sm:$0xff] }
 0x1bb   :  { %3596 = vmatpush1.bf16.msra.mxu0 %v4487_v5  ;;  %3760 = vmatpush1.bf16.msra.mxu1 %v4489_v6  ;;  %v4554_v5 = vcombine.high %v349_v0, %v353_v1  ;;  %v356_v6 = vld [vmem:[#allocation4 + $0x810] sm:$0xff] }
 0x1bc   :  { %3597 = vmatprep.subr.bf16.mxu0 %v4496_v7  ;;  %3761 = vmatprep.subr.bf16.mxu1 %v4498_v8  ;;  %v360_v7 = vld [vmem:[#allocation4 + $0x830] sm:$0xff]  ;;  %v357_v8 = vld [vmem:[#allocation4 + $0x818] sm:$0xff] }
 0x1bd   :  { %v4560_v13 = vcombine.high %v356_v6, %v360_v7  ;;  %v4559_v19 = vcombine.low %v356_v6, %v360_v7  ;;  %v4561_v20 = vcombine.low %v357_v8, %v361_v9  ;;  %v412_v1 = vld [vmem:[#allocation4 + $0x9d0] sm:$0xff] }
 0x1bf   :  { %3598 = vmatpush1.bf16.msra.mxu0 %v4495_v14  ;;  %3762 = vmatpush1.bf16.msra.mxu1 %v4497_v15  ;;  %v4562_v14 = vcombine.high %v357_v8, %v361_v9  ;;  %v364_v15 = vld [vmem:[#allocation4 + $0x850] sm:$0xff] }
 0x1c0   :  { %3599 = vmatprep.subr.bf16.mxu0 %v4504_v16  ;;  %3763 = vmatprep.subr.bf16.mxu1 %v4506_v17  ;;  %v368_v16 = vld [vmem:[#allocation4 + $0x870] sm:$0xff]  ;;  %v365_v17 = vld [vmem:[#allocation4 + $0x858] sm:$0xff] }
 0x1c1   :  { %v4568_v23 = vcombine.high %v364_v15, %v368_v16  ;;  %v4567_v27 = vcombine.low %v364_v15, %v368_v16  ;;  %v4569_v28 = vcombine.low %v365_v17, %v369_v18  ;;  %v420_v9 = vld [vmem:[#allocation4 + $0xa10] sm:$0xff] }
 0x1c3   :  { %3600 = vmatpush1.bf16.msra.mxu0 %v4503_v57  ;;  %3764 = vmatpush1.bf16.msra.mxu1 %v4505_v24  ;;  %v4570_v57 = vcombine.high %v365_v17, %v369_v18  ;;  %v372_v24 = vld [vmem:[#allocation4 + $0x890] sm:$0xff] }
 0x1c4   :  { %3601 = vmatprep.subr.bf16.mxu0 %v4512_v25  ;;  %3765 = vmatprep.subr.bf16.mxu1 %v4514_v26  ;;  %v376_v25 = vld [vmem:[#allocation4 + $0x8b0] sm:$0xff]  ;;  %v373_v26 = vld [vmem:[#allocation4 + $0x898] sm:$0xff] }
 0x1c5   :  { %v4576_v29 = vcombine.high %v372_v24, %v376_v25  ;;  %v4575_v37 = vcombine.low %v372_v24, %v376_v25  ;;  %v428_v18 = vld [vmem:[#allocation4 + $0xa50] sm:$0xff] }
 0x1c7   :  { %3602 = vmatpush1.bf16.msra.mxu0 %v4511_v30  ;;  %3766 = vmatpush1.bf16.msra.mxu1 %v4513_v31  ;;  %v4578_v30 = vcombine.high %v373_v26, %v377_v12  ;;  %v380_v31 = vld [vmem:[#allocation4 + $0x8d0] sm:$0xff] }
 0x1c8   :  { %3603 = vmatprep.subr.bf16.mxu0 %v4520_v33  ;;  %3767 = vmatprep.subr.bf16.mxu1 %v4522_v34  ;;  %v384_v33 = vld [vmem:[#allocation4 + $0x8f0] sm:$0xff]  ;;  %v381_v34 = vld [vmem:[#allocation4 + $0x8d8] sm:$0xff] }
 0x1c9   :  { %v4584_v22 = vcombine.high %v380_v31, %v384_v33  ;;  %v4586_v38 = vcombine.high %v381_v34, %v385_v35  ;;  %v4583_v43 = vcombine.low %v380_v31, %v384_v33  ;;  %v4585_v44 = vcombine.low %v381_v34, %v385_v35  ;;  %v444_v35 = vld [vmem:[#allocation4 + $0xad0] sm:$0xff] }
 0x1cb   :  { %3604 = vmatpush1.bf16.msra.mxu0 %v4519_v39  ;;  %3768 = vmatpush1.bf16.msra.mxu1 %v4521_v40  ;;  %v388_v39 = vld [vmem:[#allocation4 + $0x910] sm:$0xff] }
 0x1cc   :  { %3605 = vmatprep.subr.bf16.mxu0 %v4528_v41  ;;  %3769 = vmatprep.subr.bf16.mxu1 %v4530_v42  ;;  %v392_v40 = vld [vmem:[#allocation4 + $0x930] sm:$0xff]  ;;  %v389_v41 = vld [vmem:[#allocation4 + $0x918] sm:$0xff] }
 0x1cd   :  { %v393_v42 = vld [vmem:[#allocation4 + $0x938] sm:$0xff]  ;;  %v4592_v45 = vcombine.high %v388_v39, %v392_v40 }
 0x1ce   :  { %v4593_v52 = vcombine.low %v389_v41, %v393_v42 }
 0x1cf   :  { %3606 = vmatpush1.bf16.msra.mxu0 %v4527_v48  ;;  %3770 = vmatpush1.bf16.msra.mxu1 %v4529_v49  ;;  %v400_v48 = vld [vmem:[#allocation4 + $0x970] sm:$0xff]  ;;  %v397_v49 = vld [vmem:[#allocation4 + $0x958] sm:$0xff] }
 0x1d0   :  { %3607 = vmatprep.subr.bf16.mxu0 %v4536_v50  ;;  %3771 = vmatprep.subr.bf16.mxu1 %v4538_v51  ;;  %v401_v50 = vld [vmem:[#allocation4 + $0x978] sm:$0xff]  ;;  %v4591_v51 = vcombine.low %v388_v39, %v392_v40  ;;  %v4600_v53 = vcombine.high %v396_v47, %v400_v48 }
 0x1d1   :  { %v4602_v55 = vcombine.high %v397_v49, %v401_v50  ;;  %v4601_v62 = vcombine.low %v397_v49, %v401_v50  ;;  %v460_v50 = vld [vmem:[#allocation4 + $0xb50] sm:$0xff] }
 0x1d3   :  { %3608 = vmatpush1.bf16.msra.mxu0 %v4535_v58  ;;  %3772 = vmatpush1.bf16.msra.mxu1 %v4537_v59  ;;  %v408_v58 = vld [vmem:[#allocation4 + $0x9b0] sm:$0xff]  ;;  %v405_v59 = vld [vmem:[#allocation4 + $0x998] sm:$0xff] }
 0x1d4   :  { %3609 = vmatprep.subr.bf16.mxu0 %v4544_v60  ;;  %3773 = vmatprep.subr.bf16.mxu1 %v4546_v61  ;;  %v409_v60 = vld [vmem:[#allocation4 + $0x9b8] sm:$0xff]  ;;  %v4599_v61 = vcombine.low %v396_v47, %v400_v48  ;;  %v4608_v63 = vcombine.high %v404_v56, %v408_v58 }
 0x1d5   :  { %v4610_v0 = vcombine.high %v405_v59, %v409_v60  ;;  %v4609_v6 = vcombine.low %v405_v59, %v409_v60  ;;  %v468_v60 = vld [vmem:[#allocation4 + $0xb90] sm:$0xff] }
 0x1d7   :  { %3610 = vmatpush1.bf16.msra.mxu0 %v4543_v2  ;;  %3774 = vmatpush1.bf16.msra.mxu1 %v4545_v3  ;;  %v416_v2 = vld [vmem:[#allocation4 + $0x9f0] sm:$0xff]  ;;  %v413_v3 = vld [vmem:[#allocation4 + $0x9d8] sm:$0xff] }
 0x1d8   :  { %3611 = vmatprep.subr.bf16.mxu0 %v4552_v4  ;;  %3775 = vmatprep.subr.bf16.mxu1 %v4554_v5  ;;  %v417_v4 = vld [vmem:[#allocation4 + $0x9f8] sm:$0xff]  ;;  %v4607_v5 = vcombine.low %v404_v56, %v408_v58  ;;  %v4616_v7 = vcombine.high %v412_v1, %v416_v2 }
 0x1d9   :  { %v4618_v8 = vcombine.high %v413_v3, %v417_v4  ;;  %v4617_v15 = vcombine.low %v413_v3, %v417_v4  ;;  %v476_v4 = vld [vmem:[#allocation4 + $0xbd0] sm:$0xff] }
 0x1db   :  { %3612 = vmatpush1.bf16.msra.mxu0 %v4551_v10  ;;  %3776 = vmatpush1.bf16.msra.mxu1 %v4553_v11  ;;  %v424_v10 = vld [vmem:[#allocation4 + $0xa30] sm:$0xff]  ;;  %v421_v11 = vld [vmem:[#allocation4 + $0xa18] sm:$0xff] }
 0x1dc   :  { %3622 = vmatprep.subr.bf16.mxu0 %v4560_v13  ;;  %3786 = vmatprep.subr.bf16.mxu1 %v4562_v14  ;;  %v425_v13 = vld [vmem:[#allocation4 + $0xa38] sm:$0xff]  ;;  %v4615_v14 = vcombine.low %v412_v1, %v416_v2  ;;  %v4624_v16 = vcombine.high %v420_v9, %v424_v10 }
 0x1dd   :  { %v4626_v17 = vcombine.high %v421_v11, %v425_v13  ;;  %v4625_v24 = vcombine.low %v421_v11, %v425_v13  ;;  %v484_v13 = vld [vmem:[#allocation4 + $0xc10] sm:$0xff] }
 0x1de   :  { %3614 = vmatmul.mubr.bf16.vlgmr.msra.gmra.mrb[4].mxu0 %v5372_v21  ;;  %3778 = vmatmul.mubr.bf16.vlgmr.msra.gmra.mrb[4].mxu1 %v5372_v21  ;;  %v4577_v21 = vcombine.low %v373_v26, %v377_v12  ;;  %v436_v12 = vld [vmem:[#allocation4 + $0xa90] sm:$0xff] }
 0x1df   :  { %3623 = vmatpush1.bf16.msra.mxu0 %v4559_v19  ;;  %3787 = vmatpush1.bf16.msra.mxu1 %v4561_v20  ;;  %v432_v19 = vld [vmem:[#allocation4 + $0xa70] sm:$0xff]  ;;  %v429_v20 = vld [vmem:[#allocation4 + $0xa58] sm:$0xff] }
 0x1e0   :  { %3624 = vmatprep.subr.bf16.mxu0 %v4568_v23  ;;  %3788 = vmatprep.subr.bf16.mxu1 %v4570_v57  ;;  %v433_v23 = vld [vmem:[#allocation4 + $0xa78] sm:$0xff]  ;;  %v4623_v57 = vcombine.low %v420_v9, %v424_v10  ;;  %v4632_v25 = vcombine.high %v428_v18, %v432_v19 }
 0x1e1   :  { %3654 = vmatprep.mubr.bf16.mxu0 %v5374_v32  ;;  %3818 = vmatprep.mubr.bf16.mxu1 %v5374_v32  ;;  %v4594_v32 = vcombine.high %v389_v41, %v393_v42  ;;  %v4634_v26 = vcombine.high %v429_v20, %v433_v23  ;;  %v4633_v31 = vcombine.low %v429_v20, %v433_v23  ;;  %v452_v42 = vld [vmem:[#allocation4 + $0xb10] sm:$0xff] }
 0x1e2   :  { %v492_v23 = vld [vmem:[#allocation4 + $0xc50] sm:$0xff] }
 0x1e3   :  { %3625 = vmatpush1.bf16.msra.mxu0 %v4567_v27  ;;  %3789 = vmatpush1.bf16.msra.mxu1 %v4569_v28  ;;  %v440_v27 = vld [vmem:[#allocation4 + $0xab0] sm:$0xff]  ;;  %v437_v28 = vld [vmem:[#allocation4 + $0xa98] sm:$0xff] }
 0x1e4   :  { %3626 = vmatprep.subr.bf16.mxu0 %v4576_v29  ;;  %3790 = vmatprep.subr.bf16.mxu1 %v4578_v30  ;;  %v441_v29 = vld [vmem:[#allocation4 + $0xab8] sm:$0xff]  ;;  %v4631_v30 = vcombine.low %v428_v18, %v432_v19  ;;  %v4640_v33 = vcombine.high %v436_v12, %v440_v27 }
 0x1e5   :  { %v4642_v34 = vcombine.high %v437_v28, %v441_v29  ;;  %v4641_v39 = vcombine.low %v437_v28, %v441_v29  ;;  %v500_v29 = vld [vmem:[#allocation4 + $0xc90] sm:$0xff] }
 0x1e7   :  { %3627 = vmatpush1.bf16.msra.mxu0 %v4575_v37  ;;  %3791 = vmatpush1.bf16.msra.mxu1 %v4577_v21  ;;  %v448_v37 = vld [vmem:[#allocation4 + $0xaf0] sm:$0xff]  ;;  %v445_v21 = vld [vmem:[#allocation4 + $0xad8] sm:$0xff] }
 0x1e8   :  { %3628 = vmatprep.subr.bf16.mxu0 %v4584_v22  ;;  %3792 = vmatprep.subr.bf16.mxu1 %v4586_v38  ;;  %v449_v22 = vld [vmem:[#allocation4 + $0xaf8] sm:$0xff]  ;;  %v4639_v38 = vcombine.low %v436_v12, %v440_v27  ;;  %v4648_v40 = vcombine.high %v444_v35, %v448_v37 }
 0x1e9   :  { %v4650_v41 = vcombine.high %v445_v21, %v449_v22  ;;  %v4649_v47 = vcombine.low %v445_v21, %v449_v22  ;;  %v508_v22 = vld [vmem:[#allocation4 + $0xcd0] sm:$0xff] }
 0x1eb   :  { %3629 = vmatpush1.bf16.msra.mxu0 %v4583_v43  ;;  %3793 = vmatpush1.bf16.msra.mxu1 %v4585_v44  ;;  %v456_v43 = vld [vmem:[#allocation4 + $0xb30] sm:$0xff]  ;;  %v453_v44 = vld [vmem:[#allocation4 + $0xb18] sm:$0xff] }
 0x1ec   :  { %3630 = vmatprep.subr.bf16.mxu0 %v4592_v45  ;;  %3794 = vmatprep.subr.bf16.mxu1 %v4594_v32  ;;  %v457_v45 = vld [vmem:[#allocation4 + $0xb38] sm:$0xff]  ;;  %v4647_v32 = vcombine.low %v444_v35, %v448_v37  ;;  %v4656_v48 = vcombine.high %v452_v42, %v456_v43 }
 0x1ed   :  { %v4658_v49 = vcombine.high %v453_v44, %v457_v45  ;;  %v4657_v56 = vcombine.low %v453_v44, %v457_v45  ;;  %v516_v44 = vld [vmem:[#allocation4 + $0xd10] sm:$0xff] }
 0x1ee   :  { %v520_v45 = vld [vmem:[#allocation4 + $0xd30] sm:$0xff] }
 0x1ef   :  { %3631 = vmatpush1.bf16.msra.mxu0 %v4591_v51  ;;  %3795 = vmatpush1.bf16.msra.mxu1 %v4593_v52  ;;  %v464_v51 = vld [vmem:[#allocation4 + $0xb70] sm:$0xff]  ;;  %v461_v52 = vld [vmem:[#allocation4 + $0xb58] sm:$0xff] }
 0x1f0   :  { %3632 = vmatprep.subr.bf16.mxu0 %v4600_v53  ;;  %3796 = vmatprep.subr.bf16.mxu1 %v4602_v55  ;;  %v465_v53 = vld [vmem:[#allocation4 + $0xb78] sm:$0xff]  ;;  %v4655_v55 = vcombine.low %v452_v42, %v456_v43  ;;  %v4664_v58 = vcombine.high %v460_v50, %v464_v51 }
 0x1f1   :  { %v4666_v59 = vcombine.high %v461_v52, %v465_v53  ;;  %v4665_v1 = vcombine.low %v461_v52, %v465_v53  ;;  %v528_v52 = vld [vmem:[#allocation4 + $0xd70] sm:$0xff]  ;;  %v525_v53 = vld [vmem:[#allocation4 + $0xd58] sm:$0xff] }
 0x1f3   :  { %3633 = vmatpush1.bf16.msra.mxu0 %v4599_v61  ;;  %3797 = vmatpush1.bf16.msra.mxu1 %v4601_v62  ;;  %v472_v61 = vld [vmem:[#allocation4 + $0xbb0] sm:$0xff]  ;;  %v469_v62 = vld [vmem:[#allocation4 + $0xb98] sm:$0xff] }
 0x1f4   :  { %3634 = vmatprep.subr.bf16.mxu0 %v4608_v63  ;;  %3798 = vmatprep.subr.bf16.mxu1 %v4610_v0  ;;  %v473_v63 = vld [vmem:[#allocation4 + $0xbb8] sm:$0xff]  ;;  %v4663_v0 = vcombine.low %v460_v50, %v464_v51  ;;  %v4672_v2 = vcombine.high %v468_v60, %v472_v61  ;;  %v4720_v50 = vcombine.high %v516_v44, %v520_v45  ;;  %v524_v51 = vld [vmem:[#allocation4 + $0xd50] sm:$0xff] }
 0x1f5   :  { %v4674_v3 = vcombine.high %v469_v62, %v473_v63  ;;  %v4673_v9 = vcombine.low %v469_v62, %v473_v63  ;;  %v536_v62 = vld [vmem:[#allocation4 + $0xdb0] sm:$0xff]  ;;  %v533_v63 = vld [vmem:[#allocation4 + $0xd98] sm:$0xff] }
 0x1f7   :  { %3635 = vmatpush1.bf16.msra.mxu0 %v4607_v5  ;;  %3799 = vmatpush1.bf16.msra.mxu1 %v4609_v6  ;;  %v480_v5 = vld [vmem:[#allocation4 + $0xbf0] sm:$0xff]  ;;  %v477_v6 = vld [vmem:[#allocation4 + $0xbd8] sm:$0xff] }
 0x1f8   :  { %3636 = vmatprep.subr.bf16.mxu0 %v4616_v7  ;;  %3800 = vmatprep.subr.bf16.mxu1 %v4618_v8  ;;  %v481_v7 = vld [vmem:[#allocation4 + $0xbf8] sm:$0xff]  ;;  %v4671_v8 = vcombine.low %v468_v60, %v472_v61  ;;  %v4680_v10 = vcombine.high %v476_v4, %v480_v5  ;;  %v532_v61 = vld [vmem:[#allocation4 + $0xd90] sm:$0xff] }
 0x1f9   :  { %v4682_v11 = vcombine.high %v477_v6, %v481_v7  ;;  %v4681_v18 = vcombine.low %v477_v6, %v481_v7  ;;  %v540_v6 = vld [vmem:[#allocation4 + $0xdd0] sm:$0xff] }
 0x1fa   :  { %v544_v7 = vld [vmem:[#allocation4 + $0xdf0] sm:$0xff] }
 0x1fb   :  { %3637 = vmatpush1.bf16.msra.mxu0 %v4615_v14  ;;  %3801 = vmatpush1.bf16.msra.mxu1 %v4617_v15  ;;  %v488_v14 = vld [vmem:[#allocation4 + $0xc30] sm:$0xff]  ;;  %v485_v15 = vld [vmem:[#allocation4 + $0xc18] sm:$0xff] }
 0x1fc   :  { %3638 = vmatprep.subr.bf16.mxu0 %v4624_v16  ;;  %3802 = vmatprep.subr.bf16.mxu1 %v4626_v17  ;;  %v489_v16 = vld [vmem:[#allocation4 + $0xc38] sm:$0xff]  ;;  %v4679_v17 = vcombine.low %v476_v4, %v480_v5  ;;  %v4688_v19 = vcombine.high %v484_v13, %v488_v14 }
 0x1fd   :  { %v4690_v20 = vcombine.high %v485_v15, %v489_v16  ;;  %v4689_v12 = vcombine.low %v485_v15, %v489_v16  ;;  %v4735_v15 = vcombine.low %v532_v61, %v536_v62 }
 0x1ff   :  { %3639 = vmatpush1.bf16.msra.mxu0 %v4623_v57  ;;  %3803 = vmatpush1.bf16.msra.mxu1 %v4625_v24  ;;  %v496_v57 = vld [vmem:[#allocation4 + $0xc70] sm:$0xff]  ;;  %v493_v24 = vld [vmem:[#allocation4 + $0xc58] sm:$0xff] }
 0x200   :  { %3640 = vmatprep.subr.bf16.mxu0 %v4632_v25  ;;  %3804 = vmatprep.subr.bf16.mxu1 %v4634_v26  ;;  %v497_v25 = vld [vmem:[#allocation4 + $0xc78] sm:$0xff]  ;;  %v4687_v26 = vcombine.low %v484_v13, %v488_v14  ;;  %v4696_v27 = vcombine.high %v492_v23, %v496_v57 }
 0x201   :  { %v4698_v28 = vcombine.high %v493_v24, %v497_v25  ;;  %v4697_v35 = vcombine.low %v493_v24, %v497_v25  ;;  %v552_v24 = vld [vmem:[#allocation4 + $0xe30] sm:$0xff]  ;;  %v549_v25 = vld [vmem:[#allocation4 + $0xe18] sm:$0xff] }
 0x203   :  { %3641 = vmatpush1.bf16.msra.mxu0 %v4631_v30  ;;  %3805 = vmatpush1.bf16.msra.mxu1 %v4633_v31  ;;  %v504_v30 = vld [vmem:[#allocation4 + $0xcb0] sm:$0xff]  ;;  %v501_v31 = vld [vmem:[#allocation4 + $0xc98] sm:$0xff] }
 0x204   :  { %3642 = vmatprep.subr.bf16.mxu0 %v4640_v33  ;;  %3806 = vmatprep.subr.bf16.mxu1 %v4642_v34  ;;  %v505_v33 = vld [vmem:[#allocation4 + $0xcb8] sm:$0xff]  ;;  %v4695_v34 = vcombine.low %v492_v23, %v496_v57  ;;  %v4704_v37 = vcombine.high %v500_v29, %v504_v30  ;;  %v548_v57 = vld [vmem:[#allocation4 + $0xe10] sm:$0xff] }
 0x205   :  { %v4706_v21 = vcombine.high %v501_v31, %v505_v33 }
 0x207   :  { %3643 = vmatpush1.bf16.msra.mxu0 %v4639_v38  ;;  %3807 = vmatpush1.bf16.msra.mxu1 %v4641_v39  ;;  %v512_v38 = vld [vmem:[#allocation4 + $0xcf0] sm:$0xff]  ;;  %v509_v39 = vld [vmem:[#allocation4 + $0xcd8] sm:$0xff] }
 0x208   :  { %3644 = vmatprep.subr.bf16.mxu0 %v4648_v40  ;;  %3808 = vmatprep.subr.bf16.mxu1 %v4650_v41  ;;  %v513_v40 = vld [vmem:[#allocation4 + $0xcf8] sm:$0xff]  ;;  %v4703_v41 = vcombine.low %v500_v29, %v504_v30  ;;  %v4712_v42 = vcombine.high %v508_v22, %v512_v38  ;;  %v556_v30 = vld [vmem:[#allocation4 + $0xe50] sm:$0xff] }
 0x209   :  { %v4714_v43 = vcombine.high %v509_v39, %v513_v40 }
 0x20b   :  { %3645 = vmatpush1.bf16.msra.mxu0 %v4647_v32  ;;  %3809 = vmatpush1.bf16.msra.mxu1 %v4649_v47  ;;  %v517_v32 = vld [vmem:[#allocation4 + $0xd18] sm:$0xff] }
 0x20c   :  { %3646 = vmatprep.subr.bf16.mxu0 %v4656_v48  ;;  %3810 = vmatprep.subr.bf16.mxu1 %v4658_v49  ;;  %v521_v47 = vld [vmem:[#allocation4 + $0xd38] sm:$0xff]  ;;  %v4711_v48 = vcombine.low %v508_v22, %v512_v38  ;;  %v4713_v49 = vcombine.low %v509_v39, %v513_v40  ;;  %v564_v38 = vld [vmem:[#allocation4 + $0xe90] sm:$0xff] }
 0x20d   :  { %v568_v39 = vld [vmem:[#allocation4 + $0xeb0] sm:$0xff]  ;;  %v565_v40 = vld [vmem:[#allocation4 + $0xe98] sm:$0xff] }
 0x20f   :  { %3647 = vmatpush1.bf16.msra.mxu0 %v4655_v55  ;;  %3811 = vmatpush1.bf16.msra.mxu1 %v4657_v56  ;;  %v529_v55 = vld [vmem:[#allocation4 + $0xd78] sm:$0xff]  ;;  %v4719_v56 = vcombine.low %v516_v44, %v520_v45  ;;  %v572_v45 = vld [vmem:[#allocation4 + $0xed0] sm:$0xff] }
 0x210   :  { %3648 = vmatprep.subr.bf16.mxu0 %v4664_v58  ;;  %3812 = vmatprep.subr.bf16.mxu1 %v4666_v59  ;;  %v4721_v58 = vcombine.low %v517_v32, %v521_v47  ;;  %v4728_v59 = vcombine.high %v524_v51, %v528_v52  ;;  %v4730_v60 = vcombine.high %v525_v53, %v529_v55 }
 0x213   :  { %3649 = vmatpush1.bf16.msra.mxu0 %v4663_v0  ;;  %3813 = vmatpush1.bf16.msra.mxu1 %v4665_v1  ;;  %v537_v0 = vld [vmem:[#allocation4 + $0xdb8] sm:$0xff]  ;;  %v4727_v1 = vcombine.low %v524_v51, %v528_v52  ;;  %v580_v52 = vld [vmem:[#allocation4 + $0xf10] sm:$0xff] }
 0x214   :  { %3650 = vmatprep.subr.bf16.mxu0 %v4672_v2  ;;  %3814 = vmatprep.subr.bf16.mxu1 %v4674_v3  ;;  %v4729_v2 = vcombine.low %v525_v53, %v529_v55  ;;  %v4736_v3 = vcombine.high %v532_v61, %v536_v62  ;;  %v4738_v5 = vcombine.high %v533_v63, %v537_v0  ;;  %v584_v53 = vld [vmem:[#allocation4 + $0xf30] sm:$0xff]  ;;  %v581_v55 = vld [vmem:[#allocation4 + $0xf18] sm:$0xff] }
 0x215   :  { %v588_v62 = vld [vmem:[#allocation4 + $0xf50] sm:$0xff] }
 0x217   :  { %3651 = vmatpush1.bf16.msra.mxu0 %v4671_v8  ;;  %3815 = vmatpush1.bf16.msra.mxu1 %v4673_v9 }
 0x218   :  { %3652 = vmatprep.subr.bf16.mxu0 %v4680_v10  ;;  %3816 = vmatprep.subr.bf16.mxu1 %v4682_v11  ;;  %v541_v10 = vld [vmem:[#allocation4 + $0xdd8] sm:$0xff] }
 0x219   :  { %v545_v11 = vld [vmem:[#allocation4 + $0xdf8] sm:$0xff] }
 0x21a   :  { %v4746_v23 = vcombine.high %v541_v10, %v545_v11 }
 0x21b   :  { %3653 = vmatpush1.bf16.msra.mxu0 %v4679_v17  ;;  %3817 = vmatpush1.bf16.msra.mxu1 %v4681_v18  ;;  %v4737_v18 = vcombine.low %v533_v63, %v537_v0  ;;  %v592_v63 = vld [vmem:[#allocation4 + $0xf70] sm:$0xff]  ;;  %v612_v0 = vlaneseq }
 0x21c   :  { %3663 = vmatprep.subr.bf16.mxu0 %v4688_v19  ;;  %3827 = vmatprep.subr.bf16.mxu1 %v4690_v20  ;;  %v4744_v19 = vcombine.high %v540_v6, %v544_v7 }
 0x21e   :  { %3655 = vmatmul.mubr.bf16.vlgmr.msra.gmra.mrb[4].mxu0 %v5380_v36  ;;  %3819 = vmatmul.mubr.bf16.vlgmr.msra.gmra.mrb[4].mxu1 %v5380_v36  ;;  %v4705_v36 = vcombine.low %v501_v31, %v505_v33  ;;  %v560_v31 = vld [vmem:[#allocation4 + $0xe70] sm:$0xff]  ;;  %v557_v33 = vld [vmem:[#allocation4 + $0xe58] sm:$0xff] }
 0x21f   :  { %3664 = vmatpush1.bf16.msra.mxu0 %v4687_v26  ;;  %3828 = vmatpush1.bf16.msra.mxu1 %v4689_v12  ;;  %v553_v26 = vld [vmem:[#allocation4 + $0xe38] sm:$0xff]  ;;  %v4743_v12 = vcombine.low %v540_v6, %v544_v7  ;;  %v4792_v6 = vcombine.high %v588_v62, %v592_v63 }
 0x220   :  { %3665 = vmatprep.subr.bf16.mxu0 %v4696_v27  ;;  %3829 = vmatprep.subr.bf16.mxu1 %v4698_v28  ;;  %v4745_v27 = vcombine.low %v541_v10, %v545_v11  ;;  %v4752_v28 = vcombine.high %v548_v57, %v552_v24  ;;  %v4754_v29 = vcombine.high %v549_v25, %v553_v26  ;;  %v596_v10 = vld [vmem:[#allocation4 + $0xf90] sm:$0xff] }
 0x221   :  { %3695 = vmatprep.mubr.bf16.mxu0 %v5382_v46  ;;  %3859 = vmatprep.mubr.bf16.mxu1 %v5382_v46  ;;  %v4722_v46 = vcombine.high %v517_v32, %v521_v47  ;;  %v576_v32 = vld [vmem:[#allocation4 + $0xef0] sm:$0xff]  ;;  %v573_v47 = vld [vmem:[#allocation4 + $0xed8] sm:$0xff] }
 0x222   :  { %v600_v11 = vld [vmem:[#allocation4 + $0xfb0] sm:$0xff] }
 0x223   :  { %3666 = vmatpush1.bf16.msra.mxu0 %v4695_v34  ;;  %3830 = vmatpush1.bf16.msra.mxu1 %v4697_v35  ;;  %v561_v34 = vld [vmem:[#allocation4 + $0xe78] sm:$0xff]  ;;  %v4751_v35 = vcombine.low %v548_v57, %v552_v24  ;;  %v608_v57 = vld [vmem:[#allocation4 + $0xff0] sm:$0xff] }
 0x224   :  { %3667 = vmatprep.subr.bf16.mxu0 %v4704_v37  ;;  %3831 = vmatprep.subr.bf16.mxu1 %v4706_v21  ;;  %v4753_v37 = vcombine.low %v549_v25, %v553_v26  ;;  %v4760_v21 = vcombine.high %v556_v30, %v560_v31  ;;  %v4762_v22 = vcombine.high %v557_v33, %v561_v34  ;;  %v605_v25 = vld [vmem:[#allocation4 + $0xfd8] sm:$0xff] }
 0x225   :  { %v609_v26 = vld [vmem:[#allocation4 + $0xff8] sm:$0xff] }
 0x227   :  { %3668 = vmatpush1.bf16.msra.mxu0 %v4703_v41  ;;  %3832 = vmatpush1.bf16.msra.mxu1 %v4705_v36  ;;  %v569_v41 = vld [vmem:[#allocation4 + $0xeb8] sm:$0xff]  ;;  %v4759_v36 = vcombine.low %v556_v30, %v560_v31  ;;  %v4810_v31 = vcombine.high %v605_v25, %v609_v26 }
 0x228   :  { %3669 = vmatprep.subr.bf16.mxu0 %v4712_v42  ;;  %3833 = vmatprep.subr.bf16.mxu1 %v4714_v43  ;;  %v4761_v42 = vcombine.low %v557_v33, %v561_v34  ;;  %v4768_v43 = vcombine.high %v564_v38, %v568_v39  ;;  %v4770_v44 = vcombine.high %v565_v40, %v569_v41  ;;  %v3892_v33 = vld [vmem:[#allocation7 + $0x80] sm:$0xff]  ;;  %v3893_v34 = vld [vmem:[#allocation7 + $0x88] sm:$0xff] }
 0x22b   :  { %3670 = vmatpush1.bf16.msra.mxu0 %v4711_v48  ;;  %3834 = vmatpush1.bf16.msra.mxu1 %v4713_v49  ;;  %v577_v48 = vld [vmem:[#allocation4 + $0xef8] sm:$0xff]  ;;  %v4767_v49 = vcombine.low %v564_v38, %v568_v39  ;;  %v4809_v39 = vcombine.low %v605_v25, %v609_v26  ;;  %v3915_v25 = vld [vmem:[#allocation7 + $0x138] sm:$0xff]  ;;  %v3900_v26 = vld [vmem:[#allocation7 + $0xc0] sm:$0xff] }
 0x22c   :  { %3671 = vmatprep.subr.bf16.mxu0 %v4720_v50  ;;  %3835 = vmatprep.subr.bf16.mxu1 %v4722_v46  ;;  %v4769_v50 = vcombine.low %v565_v40, %v569_v41  ;;  %v4776_v46 = vcombine.high %v572_v45, %v576_v32  ;;  %v4778_v51 = vcombine.high %v573_v47, %v577_v48  ;;  %v3876_v41 = vld [vmem:[#allocation7] sm:$0xff] }
 0x22d   :  { %v4952_v40 = vpack.c.bf16 %v3893_v34, %v3892_v33  ;;  %v3884_v34 = vld [vmem:[#allocation7 + $0x40] sm:$0xff] }
 0x22f   :  { %3672 = vmatpush1.bf16.msra.mxu0 %v4719_v56  ;;  %3836 = vmatpush1.bf16.msra.mxu1 %v4721_v58  ;;  %v585_v56 = vld [vmem:[#allocation4 + $0xf38] sm:$0xff]  ;;  %v4775_v58 = vcombine.low %v572_v45, %v576_v32 }
 0x230   :  { %3673 = vmatprep.subr.bf16.mxu0 %v4728_v59  ;;  %3837 = vmatprep.subr.bf16.mxu1 %v4730_v60  ;;  %v4777_v59 = vcombine.low %v573_v47, %v577_v48  ;;  %v4784_v60 = vcombine.high %v580_v52, %v584_v53  ;;  %v4786_v61 = vcombine.high %v581_v55, %v585_v56  ;;  %v3894_v32 = vld [vmem:[#allocation7 + $0x90] sm:$0xff]  ;;  %v3895_v47 = vld [vmem:[#allocation7 + $0x98] sm:$0xff] }
 0x231   :  { %v5406_v4 = vpop.f32.mrb[0].mxu0  ;;  %v5408_v8 = vpop.f32.mrb[0].mxu1 }
 0x232   :  { %v5410_v9 = vpop.f32.mrb[1].mxu0  ;;  %v5412_v13 = vpop.f32.mrb[1].mxu1 }
 0x233   :  { %v3373_v14 = vpop.f32.mrb[2].mxu0  ;;  %3674 = vmatpush1.bf16.msra.mxu0 %v4727_v1  ;;  %v3537_v16 = vpop.f32.mrb[2].mxu1  ;;  %3838 = vmatpush1.bf16.msra.mxu1 %v4729_v2  ;;  %v589_v1 = vld [vmem:[#allocation4 + $0xf58] sm:$0xff] }
 0x234   :  { %v3374_v17 = vpop.f32.mrb[3].mxu0  ;;  %3675 = vmatprep.subr.bf16.mxu0 %v4736_v3  ;;  %v3538_v20 = vpop.f32.mrb[3].mxu1  ;;  %3839 = vmatprep.subr.bf16.mxu1 %v4738_v5  ;;  %v593_v2 = vld [vmem:[#allocation4 + $0xf78] sm:$0xff]  ;;  %v4783_v3 = vcombine.low %v580_v52, %v584_v53  ;;  %v4785_v5 = vcombine.low %v581_v55, %v585_v56  ;;  %v5414_v14 = vshrl.u32 %v612_v0, 7  ;;  %v3879_v53 = vld [vmem:[#allocation7 + $0x18] sm:$0xff]  ;;  %v4956_v56 = vpack.c.bf16 %v3895_v47, %v3894_v32 }
 0x235   :  { %v4794_v7 = vcombine.high %v589_v1, %v593_v2  ;;  %v601_v16 = vld [vmem:[#allocation4 + $0xfb8] sm:$0xff]  ;;  %v4791_v17 = vcombine.low %v588_v62, %v592_v63  ;;  %v3929_v62 = vld [vmem:[#allocation7 + $0x1a8] sm:$0xff] }
 0x236   :  { %v618_v24 = vsub.s32 1, %v5414_v14  ;;  %v3878_v52 = vld [vmem:[#allocation7 + $0x10] sm:$0xff] }
 0x237   :  { %3676 = vmatpush1.bf16.msra.mxu0 %v4735_v15  ;;  %3840 = vmatpush1.bf16.msra.mxu1 %v4737_v18  ;;  %v597_v15 = vld [vmem:[#allocation4 + $0xf98] sm:$0xff]  ;;  %v4793_v18 = vcombine.low %v589_v1, %v593_v2  ;;  %v4958_v0 = vpack.c.bf16 %v3879_v53, %v3878_v52  ;;  %v614_v53 = vsub.s32 0, %v5414_v14 }
 0x238   :  { %3677 = vmatprep.subr.bf16.mxu0 %v4744_v19  ;;  %3841 = vmatprep.subr.bf16.mxu1 %v4746_v23  ;;  %v4800_v19 = vcombine.high %v596_v10, %v600_v11  ;;  %v4802_v20 = vcombine.high %v597_v15, %v601_v16  ;;  %v604_v23 = vld [vmem:[#allocation4 + $0xfd0] sm:$0xff]  ;;  %v3910_v55 = vld [vmem:[#allocation7 + $0x110] sm:$0xff] }
 0x239   :  { %v4808_v30 = vcombine.high %v604_v23, %v608_v57  ;;  %v4807_v38 = vcombine.low %v604_v23, %v608_v57  ;;  %v3883_v23 = vld [vmem:[#allocation7 + $0x38] sm:$0xff]  ;;  %v3914_v57 = vld [vmem:[#allocation7 + $0x130] sm:$0xff] }
 0x23a   :  { %v3918_v32 = vld [vmem:[#allocation7 + $0x150] sm:$0xff] }
 0x23b   :  { %3678 = vmatpush1.bf16.msra.mxu0 %v4743_v12  ;;  %3842 = vmatpush1.bf16.msra.mxu1 %v4745_v27  ;;  %v5417_v12 = vld [vmem:[#allocation6] sm:$0xff]  ;;  %v626_v27 = vsub.s32 3, %v5414_v14 }
 0x23c   :  { %3679 = vmatprep.subr.bf16.mxu0 %v4752_v28  ;;  %3843 = vmatprep.subr.bf16.mxu1 %v4754_v29  ;;  %v4799_v28 = vcombine.low %v596_v10, %v600_v11  ;;  %v4801_v29 = vcombine.low %v597_v15, %v601_v16  ;;  %v3913_v10 = vld [vmem:[#allocation7 + $0x128] sm:$0xff]  ;;  %v3898_v11 = vld [vmem:[#allocation7 + $0xb0] sm:$0xff]  ;;  %v3899_v15 = vld [vmem:[#allocation7 + $0xb8] sm:$0xff] }
 0x23d   :  { %v3930_v16 = vld [vmem:[#allocation7 + $0x1b0] sm:$0xff] }
 0x23f   :  { %3680 = vmatpush1.bf16.msra.mxu0 %v4751_v35  ;;  %3844 = vmatpush1.bf16.msra.mxu1 %v4753_v37  ;;  %v619_v35 = vrot.slane %v5417_v12, %v618_v24  ;;  %v3924_v37 = vld [vmem:[#allocation7 + $0x180] sm:$0xff] }
 0x240   :  { %3681 = vmatprep.subr.bf16.mxu0 %v4760_v21  ;;  %3845 = vmatprep.subr.bf16.mxu1 %v4762_v22  ;;  %v3925_v21 = vld [vmem:[#allocation7 + $0x188] sm:$0xff]  ;;  %v627_v22 = vrot.slane %v5417_v12, %v626_v27 }
 0x241   :  { %v5081_v45 = vadd.f32 %v5410_v9, %v619_v35  ;;  %v3901_v27 = vld [vmem:[#allocation7 + $0xc8] sm:$0xff] }
 0x242   :  { %v5083_v48 = vadd.f32 %v5412_v13, %v627_v22  ;;  %v3928_v13 = vld [vmem:[#allocation7 + $0x1a0] sm:$0xff]  ;;  %v4968_v33 = vpack.c.bf16 %v3901_v27, %v3900_v26  ;;  %v3885_v35 = vld [vmem:[#allocation7 + $0x48] sm:$0xff] }
 0x243   :  { %3682 = vmatpush1.bf16.msra.mxu0 %v4759_v36  ;;  %3846 = vmatpush1.bf16.msra.mxu1 %v4761_v42  ;;  %v3877_v36 = vld [vmem:[#allocation7 + $0x8] sm:$0xff]  ;;  %v4984_v42 = vpack.c.bf16 %v3925_v21, %v3924_v37  ;;  %v3869_v9 = vmax.f32 %v5081_v45, 0.0  ;;  %v3916_v37 = vld [vmem:[#allocation7 + $0x140] sm:$0xff]  ;;  %v3887_v45 = vld [vmem:[#allocation7 + $0x58] sm:$0xff] }
 0x244   :  { %3683 = vmatprep.subr.bf16.mxu0 %v4768_v43  ;;  %3847 = vmatprep.subr.bf16.mxu1 %v4770_v44  ;;  %v3908_v43 = vld [vmem:[#allocation7 + $0x100] sm:$0xff]  ;;  %v3909_v44 = vld [vmem:[#allocation7 + $0x108] sm:$0xff]  ;;  %v3871_v63 = vmax.f32 %v5083_v48, 0.0  ;;  %v3919_v48 = vld [vmem:[#allocation7 + $0x158] sm:$0xff] }
 0x245   :  { %v3917_v22 = vld [vmem:[#allocation7 + $0x148] sm:$0xff]  ;;  %v3940_v26 = vld [vmem:[#allocation7 + $0x200] sm:$0xff] }
 0x246   :  { %v3941_v27 = vld [vmem:[#allocation7 + $0x208] sm:$0xff] }
 0x247   :  { %3684 = vmatpush1.bf16.msra.mxu0 %v4767_v49  ;;  %3848 = vmatpush1.bf16.msra.mxu1 %v4769_v50  ;;  %v4954_v49 = vpack.c.bf16 %v3877_v36, %v3876_v41  ;;  %v3926_v50 = vld [vmem:[#allocation7 + $0x190] sm:$0xff]  ;;  %v3935_v41 = vld [vmem:[#allocation7 + $0x1d8] sm:$0xff]  ;;  %v4970_v36 = vpack.c.bf16 %v3885_v35, %v3884_v34 }
 0x248   :  { %3685 = vmatprep.subr.bf16.mxu0 %v4776_v46  ;;  %3849 = vmatprep.subr.bf16.mxu1 %v4778_v51  ;;  %v3927_v46 = vld [vmem:[#allocation7 + $0x198] sm:$0xff]  ;;  %v4986_v51 = vpack.c.bf16 %v3909_v44, %v3908_v43  ;;  %v3886_v44 = vld [vmem:[#allocation7 + $0x50] sm:$0xff] }
 0x249   :  { %v4974_v52 = vpack.c.bf16 %v3887_v45, %v3886_v44  ;;  %v3959_v34 = vld [vmem:[#allocation7 + $0x298] sm:$0xff]  ;;  %v3990_v35 = vld [vmem:[#allocation7 + $0x390] sm:$0xff]  ;;  %v3961_v44 = vld [vmem:[#allocation7 + $0x2a8] sm:$0xff] }
 0x24a   :  { %v3992_v45 = vld [vmem:[#allocation7 + $0x3a0] sm:$0xff] }
 0x24b   :  { %3686 = vmatpush1.bf16.msra.mxu0 %v4775_v58  ;;  %3850 = vmatpush1.bf16.msra.mxu1 %v4777_v59  ;;  %v3911_v58 = vld [vmem:[#allocation7 + $0x118] sm:$0xff]  ;;  %v3896_v59 = vld [vmem:[#allocation7 + $0xa0] sm:$0xff] }
 0x24c   :  { %3687 = vmatprep.subr.bf16.mxu0 %v4784_v60  ;;  %3851 = vmatprep.subr.bf16.mxu1 %v4786_v61  ;;  %v3897_v60 = vld [vmem:[#allocation7 + $0xa8] sm:$0xff]  ;;  %v4988_v61 = vpack.c.bf16 %v3927_v46, %v3926_v50  ;;  %v4990_v1 = vpack.c.bf16 %v3911_v58, %v3910_v55  ;;  %v3936_v46 = vld [vmem:[#allocation7 + $0x1e0] sm:$0xff]  ;;  %v5006_v55 = vpack.c.bf16 %v3919_v48, %v3918_v32 }
 0x24d   :  { %v4960_v2 = vpack.c.bf16 %v3897_v60, %v3896_v59  ;;  %v3905_v50 = vld [vmem:[#allocation7 + $0xe8] sm:$0xff]  ;;  %v3888_v58 = vld [vmem:[#allocation7 + $0x60] sm:$0xff] }
 0x24e   :  { %v3889_v59 = vld [vmem:[#allocation7 + $0x68] sm:$0xff]  ;;  %v3920_v60 = vld [vmem:[#allocation7 + $0x160] sm:$0xff] }
 0x24f   :  { %3688 = vmatpush1.bf16.msra.mxu0 %v4783_v3  ;;  %3852 = vmatpush1.bf16.msra.mxu1 %v4785_v5  ;;  %v3880_v3 = vld [vmem:[#allocation7 + $0x20] sm:$0xff]  ;;  %v3881_v5 = vld [vmem:[#allocation7 + $0x28] sm:$0xff] }
 0x250   :  { %3689 = vmatprep.subr.bf16.mxu0 %v4792_v6  ;;  %3853 = vmatprep.subr.bf16.mxu1 %v4794_v7  ;;  %v3912_v6 = vld [vmem:[#allocation7 + $0x120] sm:$0xff]  ;;  %v4992_v7 = vpack.c.bf16 %v3929_v62, %v3928_v13  ;;  %v3921_v13 = vld [vmem:[#allocation7 + $0x168] sm:$0xff]  ;;  %v3906_v62 = vld [vmem:[#allocation7 + $0xf0] sm:$0xff] }
 0x251   :  { %v3993_v32 = vld [vmem:[#allocation7 + $0x3a8] sm:$0xff] }
 0x253   :  { %3690 = vmatpush1.bf16.msra.mxu0 %v4791_v17  ;;  %3854 = vmatpush1.bf16.msra.mxu1 %v4793_v18  ;;  %v3931_v17 = vld [vmem:[#allocation7 + $0x1b8] sm:$0xff]  ;;  %v4994_v18 = vpack.c.bf16 %v3913_v10, %v3912_v6 }
 0x254   :  { %3691 = vmatprep.subr.bf16.mxu0 %v4800_v19  ;;  %3855 = vmatprep.subr.bf16.mxu1 %v4802_v20  ;;  %v4964_v19 = vpack.c.bf16 %v3899_v15, %v3898_v11  ;;  %v3882_v20 = vld [vmem:[#allocation7 + $0x30] sm:$0xff]  ;;  %v4996_v24 = vpack.c.bf16 %v3931_v17, %v3930_v16  ;;  %v3891_v10 = vld [vmem:[#allocation7 + $0x78] sm:$0xff] }
 0x255   :  { %v3922_v11 = vld [vmem:[#allocation7 + $0x170] sm:$0xff]  ;;  %v3923_v17 = vld [vmem:[#allocation7 + $0x178] sm:$0xff] }
 0x257   :  { %3692 = vmatpush1.bf16.msra.mxu0 %v4799_v28  ;;  %3856 = vmatpush1.bf16.msra.mxu1 %v4801_v29  ;;  %v3932_v28 = vld [vmem:[#allocation7 + $0x1c0] sm:$0xff]  ;;  %v3933_v29 = vld [vmem:[#allocation7 + $0x1c8] sm:$0xff] }
 0x258   :  { %3693 = vmatprep.subr.bf16.mxu0 %v4808_v30  ;;  %3857 = vmatprep.subr.bf16.mxu1 %v4810_v31  ;;  %v4966_v30 = vpack.c.bf16 %v3883_v23, %v3882_v20  ;;  %v4998_v31 = vpack.c.bf16 %v3915_v25, %v3914_v57  ;;  %v5000_v21 = vpack.c.bf16 %v3933_v29, %v3932_v28  ;;  %v3989_v20 = vld [vmem:[#allocation7 + $0x388] sm:$0xff]  ;;  %v3972_v28 = vld [vmem:[#allocation7 + $0x300] sm:$0xff] }
 0x25b   :  { %3694 = vmatpush1.bf16.msra.mxu0 %v4807_v38  ;;  %3858 = vmatpush1.bf16.msra.mxu1 %v4809_v39  ;;  %v3902_v38 = vld [vmem:[#allocation7 + $0xd0] sm:$0xff]  ;;  %v3903_v39 = vld [vmem:[#allocation7 + $0xd8] sm:$0xff] }
 0x25c   :  { %4953 = vmatprep.subr.bf16.mxu0 %v4952_v40  ;;  %4985 = vmatprep.subr.bf16.mxu1 %v4984_v42  ;;  %v3934_v40 = vld [vmem:[#allocation7 + $0x1d0] sm:$0xff]  ;;  %v5002_v42 = vpack.c.bf16 %v3917_v22, %v3916_v37  ;;  %v4972_v43 = vpack.c.bf16 %v3903_v39, %v3902_v38  ;;  %v3991_v37 = vld [vmem:[#allocation7 + $0x398] sm:$0xff] }
 0x25d   :  { %v5004_v47 = vpack.c.bf16 %v3935_v41, %v3934_v40  ;;  %v3942_v39 = vld [vmem:[#allocation7 + $0x210] sm:$0xff]  ;;  %v3943_v40 = vld [vmem:[#allocation7 + $0x218] sm:$0xff] }
 0x25e   :  { %3696 = vmatmul.mubr.bf16.vlgmr.msra.gmra.mrb[4].mxu0 %v5388_v54  ;;  %3860 = vmatmul.mubr.bf16.vlgmr.msra.gmra.mrb[4].mxu1 %v5388_v54  ;;  %v4962_v54 = vpack.c.bf16 %v3881_v5, %v3880_v3  ;;  %v615_v3 = vrot.slane %v5417_v12, %v614_v53  ;;  %v5010_v5 = vpack.c.bf16 %v3921_v13, %v3920_v60  ;;  %v3974_v41 = vld [vmem:[#allocation7 + $0x310] sm:$0xff]  ;;  %v3977_v53 = vld [vmem:[#allocation7 + $0x328] sm:$0xff] }
 0x25f   :  { %4955 = vmatpush3.bf16.msra.mxu0 %v4954_v49  ;;  %4075 = vmatprep.mubr.f32.mxu0 %v3869_v9  ;;  %v3904_v49 = vld [vmem:[#allocation7 + $0xe0] sm:$0xff]  ;;  %v622_v9 = vsub.s32 2, %v5414_v14  ;;  %v3946_v13 = vld [vmem:[#allocation7 + $0x230] sm:$0xff] }
 0x260   :  { %4987 = vmatpush3.bf16.msra.mxu1 %v4986_v51  ;;  %4145 = vmatprep.mubr.f32.mxu1 %v3871_v63  ;;  %v3937_v51 = vld [vmem:[#allocation7 + $0x1e8] sm:$0xff]  ;;  %v3907_v63 = vld [vmem:[#allocation7 + $0xf8] sm:$0xff]  ;;  %v5080_v57 = vadd.f32 %v5406_v4, %v615_v3 }
 0x261   :  { %4957 = vmatprep.subr.bf16.mxu0 %v4956_v56  ;;  %4989 = vmatprep.subr.bf16.mxu1 %v4988_v61  ;;  %v4976_v56 = vpack.c.bf16 %v3905_v50, %v3904_v49  ;;  %v5008_v61 = vpack.c.bf16 %v3937_v51, %v3936_v46  ;;  %v4980_v6 = vpack.c.bf16 %v3907_v63, %v3906_v62  ;;  %v3944_v50 = vld [vmem:[#allocation7 + $0x220] sm:$0xff]  ;;  %v3945_v46 = vld [vmem:[#allocation7 + $0x228] sm:$0xff]  ;;  %v3947_v62 = vld [vmem:[#allocation7 + $0x238] sm:$0xff] }
 0x262   :  { %v623_v15 = vrot.slane %v5417_v12, %v622_v9  ;;  %v3868_v22 = vmax.f32 %v5080_v57, 0.0  ;;  %v3976_v51 = vld [vmem:[#allocation7 + $0x320] sm:$0xff]  ;;  %v5026_v60 = vpack.c.bf16 %v3945_v46, %v3944_v50  ;;  %v3978_v63 = vld [vmem:[#allocation7 + $0x330] sm:$0xff]  ;;  %v3965_v3 = vld [vmem:[#allocation7 + $0x2c8] sm:$0xff] }
 0x263   :  { %4959 = vmatpush3.bf16.msra.mxu0 %v4958_v0  ;;  %v3938_v0 = vld [vmem:[#allocation7 + $0x1f0] sm:$0xff]  ;;  %v5058_v9 = vpack.c.bf16 %v3977_v53, %v3976_v51  ;;  %v3999_v57 = vld [vmem:[#allocation7 + $0x3d8] sm:$0xff] }
 0x264   :  { %4991 = vmatpush3.bf16.msra.mxu1 %v4990_v1  ;;  %4961 = vmatprep.subr.bf16.mxu0 %v4960_v2  ;;  %v3939_v1 = vld [vmem:[#allocation7 + $0x1f8] sm:$0xff]  ;;  %v4978_v2 = vpack.c.bf16 %v3889_v59, %v3888_v58  ;;  %v5082_v29 = vadd.f32 %v5408_v8, %v623_v15  ;;  %v5052_v8 = vpack.c.bf16 %v3991_v37, %v3990_v35  ;;  %v3994_v58 = vld [vmem:[#allocation7 + $0x3b0] sm:$0xff]  ;;  %v3948_v15 = vld [vmem:[#allocation7 + $0x240] sm:$0xff] }
 0x265   :  { %4993 = vmatprep.subr.bf16.mxu1 %v4992_v7  ;;  %v3890_v7 = vld [vmem:[#allocation7 + $0x70] sm:$0xff]  ;;  %v5012_v16 = vpack.c.bf16 %v3939_v1, %v3938_v0  ;;  %v3995_v59 = vld [vmem:[#allocation7 + $0x3b8] sm:$0xff]  ;;  %v4000_v35 = vld [vmem:[#allocation7 + $0x3e0] sm:$0xff] }
 0x266   :  { %v4982_v23 = vpack.c.bf16 %v3891_v10, %v3890_v7  ;;  %v5060_v0 = vpack.c.bf16 %v3995_v59, %v3994_v58  ;;  %v3979_v1 = vld [vmem:[#allocation7 + $0x338] sm:$0xff]  ;;  %v5030_v7 = vpack.c.bf16 %v3947_v62, %v3946_v13  ;;  %v4001_v37 = vld [vmem:[#allocation7 + $0x3e8] sm:$0xff]  ;;  %v3986_v51 = vld [vmem:[#allocation7 + $0x370] sm:$0xff]  ;;  %v634_v58 = vsub.s32 5, %v5414_v14 }
 0x267   :  { %4963 = vmatpush3.bf16.msra.mxu0 %v4962_v54  ;;  %v3956_v54 = vld [vmem:[#allocation7 + $0x280] sm:$0xff]  ;;  %v5062_v10 = vpack.c.bf16 %v3979_v1, %v3978_v63  ;;  %v642_v59 = vsub.s32 7, %v5414_v14 }
 0x268   :  { %4995 = vmatpush3.bf16.msra.mxu1 %v4994_v18  ;;  %4965 = vmatprep.subr.bf16.mxu0 %v4964_v19  ;;  %v3957_v18 = vld [vmem:[#allocation7 + $0x288] sm:$0xff]  ;;  %v3988_v19 = vld [vmem:[#allocation7 + $0x380] sm:$0xff] }
 0x269   :  { %4997 = vmatprep.subr.bf16.mxu1 %v4996_v24  ;;  %v5014_v24 = vpack.c.bf16 %v3923_v17, %v3922_v11  ;;  %v5016_v25 = vpack.c.bf16 %v3957_v18, %v3956_v54  ;;  %v3980_v17 = vld [vmem:[#allocation7 + $0x340] sm:$0xff]  ;;  %v3981_v18 = vld [vmem:[#allocation7 + $0x348] sm:$0xff]  ;;  %v643_v13 = vrot.slane %v5417_v12, %v642_v59 }
 0x26b   :  { %4967 = vmatpush3.bf16.msra.mxu0 %v4966_v30  ;;  %v5048_v30 = vpack.c.bf16 %v3989_v20, %v3988_v19  ;;  %v3966_v19 = vld [vmem:[#allocation7 + $0x2d0] sm:$0xff]  ;;  %v3967_v20 = vld [vmem:[#allocation7 + $0x2d8] sm:$0xff] }
 0x26c   :  { %4999 = vmatpush3.bf16.msra.mxu1 %v4998_v31  ;;  %4969 = vmatprep.subr.bf16.mxu0 %v4968_v33  ;;  %v3973_v31 = vld [vmem:[#allocation7 + $0x308] sm:$0xff]  ;;  %v3958_v33 = vld [vmem:[#allocation7 + $0x290] sm:$0xff] }
 0x26d   :  { %5001 = vmatprep.subr.bf16.mxu1 %v5000_v21  ;;  %v5018_v21 = vpack.c.bf16 %v3941_v27, %v3940_v26  ;;  %v5050_v4 = vpack.c.bf16 %v3973_v31, %v3972_v28  ;;  %v5020_v38 = vpack.c.bf16 %v3959_v34, %v3958_v33  ;;  %v5036_v26 = vpack.c.bf16 %v3967_v20, %v3966_v19  ;;  %v3950_v27 = vld [vmem:[#allocation7 + $0x250] sm:$0xff]  ;;  %v3951_v28 = vld [vmem:[#allocation7 + $0x258] sm:$0xff]  ;;  %v3968_v33 = vld [vmem:[#allocation7 + $0x2e0] sm:$0xff] }
 0x26e   :  { %v3983_v31 = vld [vmem:[#allocation7 + $0x358] sm:$0xff]  ;;  %v3969_v34 = vld [vmem:[#allocation7 + $0x2e8] sm:$0xff]  ;;  %v4811_v19 = vld [vmem:[#allocation9] ss:$0 sm:$0xff] }
 0x26f   :  { %4971 = vmatpush3.bf16.msra.mxu0 %v4970_v36  ;;  %v3870_v36 = vmax.f32 %v5082_v29, 0.0  ;;  %v3982_v29 = vld [vmem:[#allocation7 + $0x350] sm:$0xff] }
 0x270   :  { %5003 = vmatpush3.bf16.msra.mxu1 %v5002_v42  ;;  %4973 = vmatprep.subr.bf16.mxu0 %v4972_v43  ;;  %v3975_v42 = vld [vmem:[#allocation7 + $0x318] sm:$0xff]  ;;  %v3960_v43 = vld [vmem:[#allocation7 + $0x2a0] sm:$0xff] }
 0x271   :  { %5005 = vmatprep.subr.bf16.mxu1 %v5004_v47  ;;  %v5022_v47 = vpack.c.bf16 %v3943_v40, %v3942_v39  ;;  %v5054_v48 = vpack.c.bf16 %v3975_v42, %v3974_v41  ;;  %v5024_v49 = vpack.c.bf16 %v3961_v44, %v3960_v43  ;;  %v3952_v39 = vld [vmem:[#allocation7 + $0x260] sm:$0xff]  ;;  %v3953_v40 = vld [vmem:[#allocation7 + $0x268] sm:$0xff]  ;;  %v3970_v43 = vld [vmem:[#allocation7 + $0x2f0] sm:$0xff] }
 0x272   :  { %v3984_v41 = vld [vmem:[#allocation7 + $0x360] sm:$0xff]  ;;  %v3971_v44 = vld [vmem:[#allocation7 + $0x2f8] sm:$0xff] }
 0x273   :  { %4975 = vmatpush3.bf16.msra.mxu0 %v4974_v52  ;;  %v5056_v52 = vpack.c.bf16 %v3993_v32, %v3992_v45  ;;  %v4002_v45 = vld [vmem:[#allocation7 + $0x3f0] sm:$0xff]  ;;  %v5044_v32 = vpack.c.bf16 %v3971_v44, %v3970_v43 }
 0x274   :  { %5007 = vmatpush3.bf16.msra.mxu1 %v5006_v55  ;;  %4977 = vmatprep.subr.bf16.mxu0 %v4976_v56  ;;  %v3962_v55 = vld [vmem:[#allocation7 + $0x2b0] sm:$0xff]  ;;  %v3963_v56 = vld [vmem:[#allocation7 + $0x2b8] sm:$0xff] }
 0x275   :  { %5009 = vmatprep.subr.bf16.mxu1 %v5008_v61  ;;  %v5028_v61 = vpack.c.bf16 %v3963_v56, %v3962_v55  ;;  %v630_v55 = vsub.s32 4, %v5414_v14  ;;  %v638_v56 = vsub.s32 6, %v5414_v14 }
 0x277   :  { %4979 = vmatpush3.bf16.msra.mxu0 %v4978_v2  ;;  %v3964_v2 = vld [vmem:[#allocation7 + $0x2c0] sm:$0xff] }
 0x278   :  { %5011 = vmatpush3.bf16.msra.mxu1 %v5010_v5  ;;  %4981 = vmatprep.subr.bf16.mxu0 %v4980_v6  ;;  %v3996_v5 = vld [vmem:[#allocation7 + $0x3c0] sm:$0xff]  ;;  %v3997_v6 = vld [vmem:[#allocation7 + $0x3c8] sm:$0xff]  ;;  %v5032_v11 = vpack.c.bf16 %v3965_v3, %v3964_v2 }
 0x279   :  { %5013 = vmatprep.subr.bf16.mxu1 %v5012_v16  ;;  %v3949_v16 = vld [vmem:[#allocation7 + $0x248] sm:$0xff]  ;;  %v5064_v54 = vpack.c.bf16 %v3997_v6, %v3996_v5 }
 0x27b   :  { %4983 = vmatpush3.bf16.msra.mxu0 %v4982_v23  ;;  %v3998_v23 = vld [vmem:[#allocation7 + $0x3d0] sm:$0xff] }
 0x27c   :  { %5015 = vmatpush3.bf16.msra.mxu1 %v5014_v24  ;;  %5017 = vmatprep.subr.bf16.mxu0 %v5016_v25  ;;  %v5034_v24 = vpack.c.bf16 %v3949_v16, %v3948_v15  ;;  %v5066_v25 = vpack.c.bf16 %v3981_v18, %v3980_v17 }
 0x27d   :  { %5049 = vmatprep.subr.bf16.mxu1 %v5048_v30  ;;  %v5068_v30 = vpack.c.bf16 %v3999_v57, %v3998_v23 }
 0x27e   :  { %4076 = vmatmul.mubr.f32.vlgmr.msra.gmra.mrb[8].mxu0 %v3868_v22  ;;  %v5070_v22 = vpack.c.bf16 %v3983_v31, %v3982_v29 }
 0x27f   :  { %4146 = vmatmul.mubr.f32.vlgmr.msra.gmra.mrb[8].mxu1 %v3870_v36  ;;  %5019 = vmatpush3.bf16.msra.mxu0 %v5018_v21  ;;  %v5038_v21 = vpack.c.bf16 %v3951_v28, %v3950_v27  ;;  %v5042_v36 = vpack.c.bf16 %v3953_v40, %v3952_v39 }
 0x280   :  { %5051 = vmatpush3.bf16.msra.mxu1 %v5050_v4  ;;  %5021 = vmatprep.subr.bf16.mxu0 %v5020_v38  ;;  %v5040_v4 = vpack.c.bf16 %v3969_v34, %v3968_v33  ;;  %v5072_v38 = vpack.c.bf16 %v4001_v37, %v4000_v35 }
 0x281   :  { %5053 = vmatprep.subr.bf16.mxu1 %v5052_v8  ;;  %v3985_v8 = vld [vmem:[#allocation7 + $0x368] sm:$0xff] }
 0x282   :  { %v5074_v42 = vpack.c.bf16 %v3985_v8, %v3984_v41 }
 0x283   :  { %5023 = vmatpush3.bf16.msra.mxu0 %v5022_v47  ;;  %v4003_v47 = vld [vmem:[#allocation7 + $0x3f8] sm:$0xff] }
 0x284   :  { %5055 = vmatpush3.bf16.msra.mxu1 %v5054_v48  ;;  %5025 = vmatprep.subr.bf16.mxu0 %v5024_v49  ;;  %v3954_v48 = vld [vmem:[#allocation7 + $0x270] sm:$0xff]  ;;  %v3955_v49 = vld [vmem:[#allocation7 + $0x278] sm:$0xff]  ;;  %v5076_v50 = vpack.c.bf16 %v4003_v47, %v4002_v45 }
 0x285   :  { %5057 = vmatprep.subr.bf16.mxu1 %v5056_v52  ;;  %v5046_v46 = vpack.c.bf16 %v3955_v49, %v3954_v48  ;;  %v3987_v52 = vld [vmem:[#allocation7 + $0x378] sm:$0xff] }
 0x286   :  { %v5078_v53 = vpack.c.bf16 %v3987_v52, %v3986_v51 }
 0x287   :  { %5027 = vmatpush3.bf16.msra.mxu0 %v5026_v60  ;;  %v631_v60 = vrot.slane %v5417_v12, %v630_v55 }
 0x288   :  { %5059 = vmatpush3.bf16.msra.mxu1 %v5058_v9  ;;  %5029 = vmatprep.subr.bf16.mxu0 %v5028_v61  ;;  %v639_v9 = vrot.slane %v5417_v12, %v638_v56  ;;  %v635_v61 = vrot.slane %v5417_v12, %v634_v58 }
 0x289   :  { %5061 = vmatprep.subr.bf16.mxu1 %v5060_v0 }
 0x28b   :  { %5031 = vmatpush3.bf16.msra.mxu0 %v5030_v7 }
 0x28c   :  { %5063 = vmatpush3.bf16.msra.mxu1 %v5062_v10  ;;  %5033 = vmatprep.subr.bf16.mxu0 %v5032_v11 }
 0x28d   :  { %5065 = vmatprep.subr.bf16.mxu1 %v5064_v54 }
 0x28f   :  { %5035 = vmatpush3.bf16.msra.mxu0 %v5034_v24 }
 0x290   :  { %5067 = vmatpush3.bf16.msra.mxu1 %v5066_v25  ;;  %5037 = vmatprep.subr.bf16.mxu0 %v5036_v26 }
 0x291   :  { %5069 = vmatprep.subr.bf16.mxu1 %v5068_v30 }
 0x293   :  { %5039 = vmatpush3.bf16.msra.mxu0 %v5038_v21 }
 0x294   :  { %5071 = vmatpush3.bf16.msra.mxu1 %v5070_v22  ;;  %5041 = vmatprep.subr.bf16.mxu0 %v5040_v4 }
 0x295   :  { %5073 = vmatprep.subr.bf16.mxu1 %v5072_v38 }
 0x297   :  { %5043 = vmatpush3.bf16.msra.mxu0 %v5042_v36 }
 0x298   :  { %5075 = vmatpush3.bf16.msra.mxu1 %v5074_v42  ;;  %5045 = vmatprep.subr.bf16.mxu0 %v5044_v32 }
 0x299   :  { %5077 = vmatprep.subr.bf16.mxu1 %v5076_v50 }
 0x29b   :  { %5047 = vmatpush3.bf16.msra.mxu0 %v5046_v46 }
 0x29c   :  { %5079 = vmatpush3.bf16.msra.mxu1 %v5078_v53 }
 0x331   :  { %v3697_v62 = vpop.f32.mrb[4].mxu0  ;;  %v3861_v0 = vpop.f32.mrb[4].mxu1 }
 0x332   :  { %v5084_v63 = vadd.f32 %v3697_v62, %v631_v60  ;;  %v3699_v1 = vpop.f32.mrb[5].mxu0  ;;  %v5086_v2 = vadd.f32 %v3861_v0, %v639_v9  ;;  %v3863_v5 = vpop.f32.mrb[5].mxu1 }
 0x333   :  { %v5085_v3 = vadd.f32 %v3699_v1, %v635_v61  ;;  %v3701_v6 = vpop.f32.mrb[6].mxu0  ;;  %v5087_v7 = vadd.f32 %v3863_v5, %v643_v13  ;;  %v3865_v10 = vpop.f32.mrb[6].mxu1 }
 0x334   :  { %v3702_v11 = vpop.f32.mrb[7].mxu0  ;;  %v3866_v15 = vpop.f32.mrb[7].mxu1  ;;  %v3872_v16 = vmax.f32 %v5084_v63, 0.0  ;;  %v3874_v54 = vmax.f32 %v5086_v2, 0.0 }
 0x335   :  { %v3873_v14 = vmax.f32 %v5085_v3, 0.0  ;;  %v3875_v17 = vmax.f32 %v5087_v7, 0.0 }
 0x337   :  { %4215 = vmatprep.mubr.f32.mxu0 %v3873_v14  ;;  %4285 = vmatprep.mubr.f32.mxu1 %v3875_v17 }
 0x338   :  { %4216 = vmatmul.mubr.f32.vlgmr.msra.gmra.mrb[10].mxu0 %v3872_v16  ;;  %4286 = vmatmul.mubr.f32.vlgmr.msra.gmra.mrb[10].mxu1 %v3874_v54 }
 0x351   :  { %v4844_v12 = vpop.f32.mrb[8].mxu0 }
 0x352   :  { %v4879_v18 = vpop.f32.mrb[8].mxu1  ;;  %v4845_v20 = vpop.f32.mrb[9].mxu0 }
 0x353   :  { %v4846_v23 = vadd.f32 %v4845_v20, %v4844_v12  ;;  %v4880_v57 = vpop.f32.mrb[9].mxu1 }
 0x354   :  { %v4881_v24 = vadd.f32 %v4880_v57, %v4879_v18 }
 0x355   :  { %v4078_v25 = vadd.f32 %v4846_v23, %v4811_v19 }
 0x357   :  { %v4148_v26 = vadd.f32 %v4881_v24, %v4078_v25 }
 0x40b   :  { %v4914_v27 = vpop.f32.mrb[10].mxu0  ;;  %v4949_v28 = vpop.f32.mrb[10].mxu1 }
 0x40c   :  { %v4915_v29 = vpop.f32.mrb[11].mxu0  ;;  %v4950_v31 = vpop.f32.mrb[11].mxu1 }
 0x40d   :  { %v4916_v30 = vadd.f32 %v4915_v29, %v4914_v27  ;;  %v4951_v33 = vadd.f32 %v4950_v31, %v4949_v28 }
 0x40f   :  { %v4218_v34 = vadd.f32 %v4916_v30, %v4148_v26 }
 0x411   :  { %v4288_v35 = vadd.f32 %v4951_v33, %v4218_v34 }
 0x413   :  { %4291 = vst [vmem:[%s5448_s5] sm:$0xff] %v4288_v35 }
 0x414   :  { %4296 = vsyncpa [#allocation3], 1 }
 0x415   :  { %4297 = vsyncpa [#allocation5], 1 }
 0x416   :  { %4298 = vsyncpa [#allocation8], 1 }

</bundles_post_ra>
